<compile_context>
chip_gen: v6e
topology: v6e:2x2x1
jax: 0.10.0
libtpu: 0.0.40
codegen_flags: <defaults>
</compile_context>

<pallas_src>
import functools

import jax
import jax.numpy as jnp
from jax.experimental import pallas as pl
from jax.experimental.pallas import tpu as pltpu


# ----------------------------------------------------------------------------
# VMEM budgets derived from the actual chip generation.
# ----------------------------------------------------------------------------
def _tpu_vmem_capacity_bytes():
    try:
        info = pltpu.get_tpu_info()
        cap = getattr(info, "vmem_capacity_bytes", None)
        if cap:
            return int(cap)
    except Exception:
        pass
    return 64 * 1024 * 1024  # conservative default (v7x-sized VMEM)


_VMEM_CAP = _tpu_vmem_capacity_bytes()
_VMEM_LIMIT_BYTES = min((_VMEM_CAP * 3) // 4, 112 * 1024 * 1024)
_SMALL_VMEM = _VMEM_CAP <= 96 * 1024 * 1024          # v7x (64 MiB) vs v5e/v6e (128 MiB)
_STREAM_BLOCK_BYTES = (4 if _SMALL_VMEM else 8) * 1024 * 1024
_SPEC_W_BLOCK_BYTES = (4 if _SMALL_VMEM else 16) * 1024 * 1024
_GN_FUSE_SLAB_BYTES = _VMEM_LIMIT_BYTES // 6          # in+out double-buffered -> 4 slabs
_ACC_VREG_BYTES = 128 * 1024                          # keep accumulators ~half the vreg file


def _mosaic_params(*dims):
    return pltpu.CompilerParams(
        dimension_semantics=dims, vmem_limit_bytes=_VMEM_LIMIT_BYTES
    )


def _pick_lane_tile(n, cap_elems):
    """Largest multiple of 128 that divides n (n % 128 == 0) and is <= cap_elems."""
    assert n % 128 == 0
    t = min(n, max(128, (cap_elems // 128) * 128))
    while n % t:
        t -= 128
    return t


def _pad_lanes(x, n_to):
    n = x.shape[-1]
    if n == n_to:
        return x
    pad = [(0, 0)] * (x.ndim - 1) + [(0, n_to - n)]
    return jnp.pad(x, pad)


def _ci_chunk(ci):
    # chunk must be a multiple of 8 (sublane tile) or the full extent
    return 8 if (ci % 8 == 0 and ci >= 8) else ci


# ----------------------------------------------------------------------------
# GroupNorm(num_groups=1): per-sample mean/var over (C, N), per-channel affine.
# Fused single pass (stats + normalize) when the (C, N) slab fits VMEM;
# tiled two-pass fallback otherwise.
# ----------------------------------------------------------------------------
def _gn_fused_kernel(x_ref, gamma_ref, beta_ref, o_ref, *, inv_count, pad_count, eps):
    x = x_ref[0].astype(jnp.float32)                    # (C, Np)
    mean = jnp.sum(x) * inv_count                       # zero pad lanes contribute 0
    xc = x - mean
    # centered variance; subtract the pad lanes' (0-mean)^2 contribution
    var = (jnp.sum(xc * xc) - pad_count * (mean * mean)) * inv_count
    rstd = jax.lax.rsqrt(var + eps)
    scale = gamma_ref[0] * rstd                         # (C, 1)
    shift = beta_ref[0] - mean * scale                  # (C, 1)
    o_ref[...] = (x * scale + shift)[None].astype(o_ref.dtype)


def _gn_stats_kernel(x_ref, gamma_ref, beta_ref, scale_ref, shift_ref, acc_ref,
                     *, inv_count, eps):
    t = pl.program_id(1)

    @pl.when(t == 0)
    def _():
        acc_ref[...] = jnp.zeros_like(acc_ref)

    x = x_ref[...].astype(jnp.float32)                  # (1, C, tn)
    acc_ref[0:1, :] += jnp.sum(x)
    acc_ref[1:2, :] += jnp.sum(x * x)

    @pl.when(t == pl.num_programs(1) - 1)
    def _():
        # TODO(synk): E[x^2]-E[x]^2 in this rarely-used fallback can cancel for huge N.
        mean = acc_ref[0:1, 0:1] * inv_count            # (1, 1)
        var = acc_ref[1:2, 0:1] * inv_count - mean * mean
        rstd = jax.lax.rsqrt(var + eps)
        scale = gamma_ref[0] * rstd                     # (C, 1): gamma*rstd folded
        scale_ref[...] = scale[None]
        shift_ref[...] = (beta_ref[0] - mean * scale)[None]


def _gn_apply_kernel(x_ref, scale_ref, shift_ref, o_ref):
    x = x_ref[...].astype(jnp.float32)                  # (1, C, tn)
    o_ref[...] = (x * scale_ref[...] + shift_ref[...]).astype(o_ref.dtype)


def group_norm(x_bcn, gamma, beta, eps=1e-5, valid_n=None):
    B, C, Np = x_bcn.shape
    if valid_n is None:
        valid_n = Np
    inv_count = 1.0 / float(C * valid_n)
    pad_count = float(C * (Np - valid_n))
    gamma3 = gamma.reshape(1, C, 1).astype(jnp.float32)
    beta3 = beta.reshape(1, C, 1).astype(jnp.float32)

    slab_bytes = C * Np * 4
    if slab_bytes <= _GN_FUSE_SLAB_BYTES:
        # single fused pass: one HBM read + one write of x per sample, one launch
        return pl.pallas_call(
            functools.partial(_gn_fused_kernel, inv_count=inv_count,
                              pad_count=pad_count, eps=eps),
            out_shape=jax.ShapeDtypeStruct((B, C, Np), x_bcn.dtype),
            grid=(B,),
            in_specs=[
                pl.BlockSpec((1, C, Np), lambda b: (b, 0, 0)),
                pl.BlockSpec((1, C, 1), lambda b: (0, 0, 0)),
                pl.BlockSpec((1, C, 1), lambda b: (0, 0, 0)),
            ],
            out_specs=pl.BlockSpec((1, C, Np), lambda b: (b, 0, 0)),
            compiler_params=_mosaic_params("parallel"),
        )(x_bcn, gamma3, beta3)

    # ---- fallback: tiled two-pass scheme for very large (C, N) slabs ----
    tn = _pick_lane_tile(Np, _STREAM_BLOCK_BYTES // (C * 4))
    nt = Np // tn
    x_spec = pl.BlockSpec((1, C, tn), lambda b, t: (b, 0, t))
    cs_spec = pl.BlockSpec((1, C, 1), lambda b, t: (b, 0, 0))
    g_spec = pl.BlockSpec((1, C, 1), lambda b, t: (0, 0, 0))

    scale, shift = pl.pallas_call(
        functools.partial(_gn_stats_kernel, inv_count=inv_count, eps=eps),
        out_shape=(jax.ShapeDtypeStruct((B, C, 1), jnp.float32),
                   jax.ShapeDtypeStruct((B, C, 1), jnp.float32)),
        grid=(B, nt),
        in_specs=[x_spec, g_spec, g_spec],
        out_specs=(cs_spec, cs_spec),
        scratch_shapes=[pltpu.VMEM((2, 128), jnp.float32)],
        compiler_params=_mosaic_params("parallel", "arbitrary"),
    )(x_bcn, gamma3, beta3)

    return pl.pallas_call(
        _gn_apply_kernel,
        out_shape=jax.ShapeDtypeStruct((B, C, Np), x_bcn.dtype),
        grid=(B, nt),
        in_specs=[x_spec, cs_spec, cs_spec],
        out_specs=x_spec,
        compiler_params=_mosaic_params("parallel", "parallel"),
    )(x_bcn, scale, shift)


# ----------------------------------------------------------------------------
# Spectral mode multiply: out[b,o,m] = sum_i x[b,i,m] * w[i,o,m]   (complex)
#   or = xr*wr - xi*wi ; oi = xr*wi + xi*wr
# Ci is tiled onto an 'arbitrary' grid axis (chunks of <= 8) with VMEM scratch
# accumulators; the mode axis M is tiled so weights stream through VMEM.
# ----------------------------------------------------------------------------
def _spectral_mul_kernel(xr_ref, xi_ref, wr_ref, wi_ref, or_ref, oi_ref,
                         acc_r, acc_i):
    k = pl.program_id(2)

    @pl.when(k == 0)
    def _():
        acc_r[...] = jnp.zeros_like(acc_r)
        acc_i[...] = jnp.zeros_like(acc_i)

    tci = wr_ref.shape[0]
    ar = acc_r[...]                                      # (Co, tm)
    ai = acc_i[...]
    for j in range(tci):                                 # bounded unroll (tci <= 8 typical)
        xr_j = xr_ref[0, j:j + 1, :]                     # (1, tm)
        xi_j = xi_ref[0, j:j + 1, :]
        wr_j = wr_ref[j]                                 # (Co, tm)
        wi_j = wi_ref[j]
        ar = ar + xr_j * wr_j - xi_j * wi_j
        ai = ai + xr_j * wi_j + xi_j * wr_j
    acc_r[...] = ar
    acc_i[...] = ai

    @pl.when(k == pl.num_programs(2) - 1)
    def _():
        or_ref[...] = ar[None]
        oi_ref[...] = ai[None]


def spectral_mul(xr, xi, wr, wi):
    B, Ci, M = xr.shape
    Co = wr.shape[1]
    Mp = ((M + 127) // 128) * 128
    if Mp != M:
        xr, xi, wr, wi = (_pad_lanes(a, Mp) for a in (xr, xi, wr, wi))

    tci = _ci_chunk(Ci)
    nk = Ci // tci
    cap = min(_SPEC_W_BLOCK_BYTES // (tci * Co * 4),      # weight tile budget
              max(128, _ACC_VREG_BYTES // (2 * Co * 4)))  # keep r/i accumulators in vregs
    tm = _pick_lane_tile(Mp, cap)
    nm = Mp // tm

    x_spec = pl.BlockSpec((1, tci, tm), lambda m, b, k: (b, k, m))
    w_spec = pl.BlockSpec((tci, Co, tm), lambda m, b, k: (k, 0, m))
    o_spec = pl.BlockSpec((1, Co, tm), lambda m, b, k: (b, 0, m))

    # v7x megacore: split cores on the mode-tile axis when possible (disjoint weight
    # halves per core); fall back to splitting B when there is a single mode tile.
    if nm >= 2:
        dims = ("parallel", "arbitrary", "arbitrary")
    else:
        dims = ("arbitrary", "parallel", "arbitrary")

    out_r, out_i = pl.pallas_call(
        _spectral_mul_kernel,
        out_shape=(jax.ShapeDtypeStruct((B, Co, Mp), jnp.float32),
                   jax.ShapeDtypeStruct((B, Co, Mp), jnp.float32)),
        grid=(nm, B, nk),
        in_specs=[x_spec, x_spec, w_spec, w_spec],
        out_specs=(o_spec, o_spec),
        scratch_shapes=[pltpu.VMEM((Co, tm), jnp.float32),
                        pltpu.VMEM((Co, tm), jnp.float32)],
        compiler_params=_mosaic_params(*dims),
    )(xr, xi, wr, wi)

    if Mp != M:
        out_r, out_i = out_r[..., :M], out_i[..., :M]
    return out_r, out_i


# ----------------------------------------------------------------------------
# Fused: 1x1 conv (channel mix) + spectral add + optional input-injection add + GELU.
# MXU path when min(Ci, Co) >= 32, VPU broadcast-MAC path for small channel counts.
# ----------------------------------------------------------------------------
def _pointwise_kernel(*refs, has_inj, use_mxu):
    if has_inj:
        x_ref, spec_ref, inj_ref, w_ref, b_ref, o_ref = refs
    else:
        x_ref, spec_ref, w_ref, b_ref, o_ref = refs
        inj_ref = None
    co, tn = o_ref.shape[1], o_ref.shape[2]
    ci = x_ref.shape[1]

    if use_mxu:
        # (Co, Ci) x (Ci, tn) on the MXU
        y = jax.lax.dot_general(
            w_ref[...], x_ref[0].astype(jnp.float32),
            dimension_numbers=(((1,), (0,)), ((), ())),
            preferred_element_type=jnp.float32,
        )                                               # (Co, tn)
    else:
        # small-channel path: VPU broadcast MACs, per-row loads inside the loop
        y = jnp.zeros((co, tn), jnp.float32)
        for j in range(ci):
            x_j = x_ref[0, j:j + 1, :].astype(jnp.float32)  # (1, tn)
            w_j = w_ref[j]                                  # (Co, 1)
            y = y + w_j * x_j

    y = y + b_ref[...]                                  # (Co, 1) broadcast over lanes
    y = y + spec_ref[0].astype(jnp.float32)
    if has_inj:
        y = y + inj_ref[0].astype(jnp.float32)
    # TODO(synk): PyTorch's default nn.GELU is the exact erf form; tanh approximation here.
    o_ref[...] = jax.nn.gelu(y, approximate=True)[None].astype(o_ref.dtype)


def pointwise_add_activ(x_bcn, spec_bcn, inj_bcn, w_oi, bias):
    B, Ci, Np = x_bcn.shape
    Co = w_oi.shape[0]
    has_inj = inj_bcn is not None
    use_mxu = min(Ci, Co) >= 32

    cap = min(_STREAM_BLOCK_BYTES // (max(Ci, Co) * 4),
              max(128, _ACC_VREG_BYTES // (Co * 4)))
    tn = _pick_lane_tile(Np, cap)
    nt = Np // tn

    x_spec = pl.BlockSpec((1, Ci, tn), lambda b, t: (b, 0, t))
    y_spec = pl.BlockSpec((1, Co, tn), lambda b, t: (b, 0, t))
    b_spec = pl.BlockSpec((Co, 1), lambda b, t: (0, 0))

    if use_mxu:
        w_arr = w_oi.astype(jnp.float32)                       # (Co, Ci)
        w_spec = pl.BlockSpec((Co, Ci), lambda b, t: (0, 0))
    else:
        w_arr = jnp.transpose(w_oi).reshape(Ci, Co, 1).astype(jnp.float32)
        w_spec = pl.BlockSpec((Ci, Co, 1), lambda b, t: (0, 0, 0))

    in_specs = [x_spec, y_spec] + ([y_spec] if has_inj else []) + [w_spec, b_spec]
    args = [x_bcn, spec_bcn] + ([inj_bcn] if has_inj else []) + \
           [w_arr, bias.reshape(Co, 1).astype(jnp.float32)]

    return pl.pallas_call(
        functools.partial(_pointwise_kernel, has_inj=has_inj, use_mxu=use_mxu),
        out_shape=jax.ShapeDtypeStruct((B, Co, Np), jnp.float32),
        grid=(B, nt),
        in_specs=in_specs,
        out_specs=y_spec,
        compiler_params=_mosaic_params("parallel", "parallel"),
    )(*args)


# ----------------------------------------------------------------------------
# Full FNO block forward (FFT + glue in plain JAX, hot paths in Pallas kernels)
# ----------------------------------------------------------------------------
def fno_block(x, params, input_inj=None, normalize=True):
    B, C, D, H, W = x.shape
    N = D * H * W
    Np = ((N + 127) // 128) * 128
    m1, m2, m3 = params["modes"]

    x_bcn = _pad_lanes(x.reshape(B, C, N).astype(jnp.float32), Np)
    if normalize:
        x_bcn = group_norm(x_bcn, params["gn_gamma"], params["gn_beta"], valid_n=N)

    # ---- SpectralConv3d ----
    # TODO(synk): FFT has no Pallas/Mosaic primitive; rfftn/irfftn run as plain XLA ops.
    x5 = x_bcn[..., :N].reshape(B, C, D, H, W)
    x_ft = jnp.fft.rfftn(x5, axes=(-3, -2, -1))          # (B, C, D, H, Wf) complex64
    Wf = x_ft.shape[-1]

    # gather the 4 low/high retained-mode corner blocks with 2 concats + 1 slice
    xd = jnp.concatenate([x_ft[:, :, :m1], x_ft[:, :, D - m1:]], axis=2)
    xm = jnp.concatenate([xd[:, :, :, :m2], xd[:, :, :, H - m2:]], axis=3)[..., :m3]
    Mtot = 4 * m1 * m2 * m3
    xm = xm.reshape(B, C, Mtot)

    out_r, out_i = spectral_mul(
        jnp.real(xm).astype(jnp.float32), jnp.imag(xm).astype(jnp.float32),
        params["spec_wr"], params["spec_wi"])
    om = (out_r + 1j * out_i).astype(x_ft.dtype).reshape(B, C, 2, m1, 2, m2, m3)

    # scatter back into the zero-padded spectrum via concats of zero blocks
    zH = jnp.zeros((B, C, 2, m1, H - 2 * m2, m3), om.dtype)
    oh = jnp.concatenate([om[:, :, :, :, 0], zH, om[:, :, :, :, 1]], axis=4)
    zD = jnp.zeros((B, C, D - 2 * m1, H, m3), om.dtype)
    od = jnp.concatenate([oh[:, :, 0], zD, oh[:, :, 1]], axis=2)
    zW = jnp.zeros((B, C, D, H, Wf - m3), om.dtype)
    out_ft = jnp.concatenate([od, zW], axis=4)           # (B, C, D, H, Wf)

    spec = jnp.fft.irfftn(out_ft, s=(D, H, W), axes=(-3, -2, -1))
    spec_bcn = _pad_lanes(spec.reshape(B, C, N).astype(jnp.float32), Np)

    inj_bcn = (_pad_lanes(input_inj.reshape(B, C, N).astype(jnp.float32), Np)
               if input_inj is not None else None)

    # ---- 1x1 conv + adds + activation (fused, lane-dense) ----
    y = pointwise_add_activ(x_bcn, spec_bcn, inj_bcn,
                            params["filt_w"], params["filt_b"])
    return y[..., :N].reshape(B, C, D, H, W)


# ----------------------------------------------------------------------------
# Deterministic parameter init (shapes match the PyTorch module __init__)
# ----------------------------------------------------------------------------
def init_params(key, C, modes, init_weight_scale=1.0, use_weight_norm=True):
    m1, m2, m3 = modes
    M4 = 4 * m1 * m2 * m3
    k1, k2, k3, k4 = jax.random.split(key, 4)

    # SpectralConv3d: 4 complex weight corners (Ci, Co, m1, m2, m3), scale = s/(Ci*Co),
    # stored flattened/concatenated along the mode axis as real + imag parts.
    scale = init_weight_scale / (C * C)
    spec_wr = scale * jax.random.uniform(k1, (C, C, M4), jnp.float32)
    spec_wi = scale * jax.random.uniform(k2, (C, C, M4), jnp.float32)

    # Conv3d(C, C, kernel_size=1, bias=True): weight (Cout, Cin, 1, 1, 1), bias (Cout,)
    bound = 1.0 / jnp.sqrt(C)
    v = jax.random.uniform(k3, (C, C), jnp.float32, -bound, bound)    # (Cout, Cin)
    if use_weight_norm:
        # weight_norm (dim=0): w = g * v / ||v||, with g = ||v|| at init (identity).
        nrm = jnp.linalg.norm(v, axis=1, keepdims=True)
        w_eff = nrm * (v / nrm)
    else:
        w_eff = v
    filt_w = w_eff                                                    # (Cout, Cin)
    filt_b = jax.random.uniform(k4, (C,), jnp.float32, -bound, bound)

    return {
        "modes": modes,
        "spec_wr": spec_wr,
        "spec_wi": spec_wi,
        "filt_w": filt_w,
        "filt_b": filt_b,
        "gn_gamma": jnp.ones((C,), jnp.float32),
        "gn_beta": jnp.zeros((C,), jnp.float32),
    }


if __name__ == "__main__":
    key = jax.random.PRNGKey(0)
    B, C, D, H, W = 2, 8, 16, 16, 16
    modes = (4, 4, 4)

    kx, ki, kp = jax.random.split(key, 3)
    x = jax.random.normal(kx, (B, C, D, H, W), jnp.float32)
    input_inj = jax.random.normal(ki, (B, C, D, H, W), jnp.float32)
    params = init_params(kp, C, modes, init_weight_scale=1.0, use_weight_norm=True)

    fwd = jax.jit(lambda x, inj: fno_block(x, params, input_inj=inj, normalize=True))
    y = fwd(x, input_inj)
    jax.block_until_ready(y)
    assert y.shape == (B, C, D, H, W) and y.dtype == jnp.float32
    assert bool(jnp.all(jnp.isfinite(y)))

    # also exercise the no-injection kernel variant (no zero stream fed)
    fwd_noinj = jax.jit(lambda x: fno_block(x, params, input_inj=None, normalize=True))
    y2 = fwd_noinj(x)
    jax.block_until_ready(y2)
    assert y2.shape == (B, C, D, H, W)
    assert bool(jnp.all(jnp.isfinite(y2)))

    print("KERNEL_OK")
</pallas_src>

<mosaic_0001>
module attributes {stable_mosaic.version = 11 : i64} {
  func.func @_gn_fused_kernel(%arg0: i32, %arg1: memref<1x8x4096xf32, #tpu.memory_space<vmem>>, %arg2: memref<1x8x1xf32, #tpu.memory_space<vmem>>, %arg3: memref<1x8x1xf32, #tpu.memory_space<vmem>>, %arg4: memref<1x8x4096xf32, #tpu.memory_space<vmem>>) attributes {dimension_semantics = [#tpu.dimension_semantics<parallel>], iteration_bounds = array<i64: 2>, scalar_prefetch = 0 : i64, scratch_operands = 0 : i64, tpu.core_type = #tpu.core_type<tc>, window_params = [{transform_indices = @transform_0, window_bounds = array<i64: 1, 8, 4096>}, {pipeline_mode = #tpu.pipeline_mode<synchronous>, transform_indices = @transform_1, window_bounds = array<i64: 1, 8, 1>}, {pipeline_mode = #tpu.pipeline_mode<synchronous>, transform_indices = @transform_2, window_bounds = array<i64: 1, 8, 1>}, {transform_indices = @transform_3, window_bounds = array<i64: 1, 8, 4096>}]} {
    %c0 = arith.constant 0 : index
    %c0_0 = arith.constant 0 : index
    %c0_1 = arith.constant 0 : index
    %0 = vector.load %arg1[%c0, %c0_0, %c0_1] : memref<1x8x4096xf32, #tpu.memory_space<vmem>>, vector<1x8x4096xf32>
    %1 = vector.shape_cast %0 : vector<1x8x4096xf32> to vector<8x4096xf32>
    %2 = vector.shape_cast %1 : vector<8x4096xf32> to vector<1x8x4096xf32>
    %cst = arith.constant dense<0.000000e+00> : vector<1xf32>
    %3 = vector.multi_reduction <add>, %2, %cst [1, 2] : vector<1x8x4096xf32> to vector<1xf32>
    %4 = vector.shape_cast %3 : vector<1xf32> to vector<1x1x1xf32>
    %5 = vector.extract %4[0, 0, 0] : f32 from vector<1x1x1xf32>
    %cst_2 = arith.constant 3.05175781E-5 : f32
    %6 = arith.mulf %5, %cst_2 : f32
    %7 = vector.broadcast %6 : f32 to vector<8x4096xf32>
    %8 = arith.subf %1, %7 : vector<8x4096xf32>
    %9 = arith.mulf %8, %8 : vector<8x4096xf32>
    %10 = vector.shape_cast %9 : vector<8x4096xf32> to vector<1x8x4096xf32>
    %cst_3 = arith.constant dense<0.000000e+00> : vector<1xf32>
    %11 = vector.multi_reduction <add>, %10, %cst_3 [1, 2] : vector<1x8x4096xf32> to vector<1xf32>
    %12 = vector.shape_cast %11 : vector<1xf32> to vector<1x1x1xf32>
    %13 = vector.extract %12[0, 0, 0] : f32 from vector<1x1x1xf32>
    %14 = arith.mulf %6, %6 : f32
    %cst_4 = arith.constant 0.000000e+00 : f32
    %15 = arith.mulf %cst_4, %14 : f32
    %16 = arith.subf %13, %15 : f32
    %cst_5 = arith.constant 3.05175781E-5 : f32
    %17 = arith.mulf %16, %cst_5 : f32
    %cst_6 = arith.constant 9.99999974E-6 : f32
    %18 = arith.addf %17, %cst_6 : f32
    %19 = math.rsqrt %18 : f32
    %c0_7 = arith.constant 0 : index
    %c0_8 = arith.constant 0 : index
    %c0_9 = arith.constant 0 : index
    %20 = vector.load %arg2[%c0_7, %c0_8, %c0_9] : memref<1x8x1xf32, #tpu.memory_space<vmem>>, vector<1x8x1xf32>
    %21 = vector.shape_cast %20 : vector<1x8x1xf32> to vector<8x1xf32>
    %22 = vector.broadcast %19 : f32 to vector<8x1xf32>
    %23 = arith.mulf %21, %22 : vector<8x1xf32>
    %c0_10 = arith.constant 0 : index
    %c0_11 = arith.constant 0 : index
    %c0_12 = arith.constant 0 : index
    %24 = vector.load %arg3[%c0_10, %c0_11, %c0_12] : memref<1x8x1xf32, #tpu.memory_space<vmem>>, vector<1x8x1xf32>
    %25 = vector.shape_cast %24 : vector<1x8x1xf32> to vector<8x1xf32>
    %26 = vector.broadcast %6 : f32 to vector<8x1xf32>
    %27 = arith.mulf %26, %23 : vector<8x1xf32>
    %28 = arith.subf %25, %27 : vector<8x1xf32>
    %29 = vector.broadcast %23 : vector<8x1xf32> to vector<8x4096xf32>
    %30 = arith.mulf %1, %29 : vector<8x4096xf32>
    %31 = vector.broadcast %28 : vector<8x1xf32> to vector<8x4096xf32>
    %32 = arith.addf %30, %31 : vector<8x4096xf32>
    %33 = vector.shape_cast %32 : vector<8x4096xf32> to vector<1x8x4096xf32>
    %c0_13 = arith.constant 0 : index
    %c0_14 = arith.constant 0 : index
    %c0_15 = arith.constant 0 : index
    %34 = vector.load %arg4[%c0_13, %c0_14, %c0_15] : memref<1x8x4096xf32, #tpu.memory_space<vmem>>, vector<1x8x4096xf32>
    tpu.vector_store %arg4[%c0_13, %c0_14, %c0_15], %33 {strides = array<i32>} : memref<1x8x4096xf32, #tpu.memory_space<vmem>>, vector<1x8x4096xf32>,
    return
  }
  func.func @transform_0(%arg0: i32) -> (i32, i32, i32) {
    %c0_i32 = arith.constant 0 : i32
    %c0_i32_0 = arith.constant 0 : i32
    %c0_i32_1 = arith.constant 0 : i32
    return %arg0, %c0_i32, %c0_i32_0 : i32, i32, i32
  }
  func.func @transform_1(%arg0: i32) -> (i32, i32, i32) {
    %c0_i32 = arith.constant 0 : i32
    %c0_i32_0 = arith.constant 0 : i32
    %c0_i32_1 = arith.constant 0 : i32
    %c0_i32_2 = arith.constant 0 : i32
    return %c0_i32, %c0_i32_0, %c0_i32_1 : i32, i32, i32
  }
  func.func @transform_2(%arg0: i32) -> (i32, i32, i32) {
    %c0_i32 = arith.constant 0 : i32
    %c0_i32_0 = arith.constant 0 : i32
    %c0_i32_1 = arith.constant 0 : i32
    %c0_i32_2 = arith.constant 0 : i32
    return %c0_i32, %c0_i32_0, %c0_i32_1 : i32, i32, i32
  }
  func.func @transform_3(%arg0: i32) -> (i32, i32, i32) {
    %c0_i32 = arith.constant 0 : i32
    %c0_i32_0 = arith.constant 0 : i32
    %c0_i32_1 = arith.constant 0 : i32
    return %arg0, %c0_i32, %c0_i32_0 : i32, i32, i32
  }
}

module attributes {stable_mosaic.version = 11 : i64} {
  func.func @_spectral_mul_kernel(%arg0: i32, %arg1: i32, %arg2: i32, %arg3: memref<1x8x256xf32, #tpu.memory_space<vmem>>, %arg4: memref<1x8x256xf32, #tpu.memory_space<vmem>>, %arg5: memref<8x8x256xf32, #tpu.memory_space<vmem>>, %arg6: memref<8x8x256xf32, #tpu.memory_space<vmem>>, %arg7: memref<1x8x256xf32, #tpu.memory_space<vmem>>, %arg8: memref<1x8x256xf32, #tpu.memory_space<vmem>>, %arg9: memref<8x256xf32, #tpu.memory_space<vmem>>, %arg10: memref<8x256xf32, #tpu.memory_space<vmem>>) attributes {dimension_semantics = [#tpu.dimension_semantics<arbitrary>, #tpu.dimension_semantics<parallel>, #tpu.dimension_semantics<arbitrary>], iteration_bounds = array<i64: 1, 2, 1>, scalar_prefetch = 0 : i64, scratch_operands = 2 : i64, tpu.core_type = #tpu.core_type<tc>, window_params = [{transform_indices = @transform_0, window_bounds = array<i64: 1, 8, 256>}, {transform_indices = @transform_1, window_bounds = array<i64: 1, 8, 256>}, {transform_indices = @transform_2, window_bounds = array<i64: 8, 8, 256>}, {transform_indices = @transform_3, window_bounds = array<i64: 8, 8, 256>}, {transform_indices = @transform_4, window_bounds = array<i64: 1, 8, 256>}, {transform_indices = @transform_5, window_bounds = array<i64: 1, 8, 256>}]} {
    %c0_i32 = arith.constant 0 : i32
    %0 = arith.cmpi eq, %arg2, %c0_i32 : i32
    %1 = arith.extui %0 : i1 to i32
    %c0_i32_0 = arith.constant 0 : i32
    %2 = arith.cmpi ne, %1, %c0_i32_0 : i32
    scf.if %2 {
      %cst = arith.constant 0.000000e+00 : f32
      %170 = vector.broadcast %cst : f32 to vector<8x256xf32>
      %c0_99 = arith.constant 0 : index
      %c0_100 = arith.constant 0 : index
      %171 = vector.load %arg9[%c0_99, %c0_100] : memref<8x256xf32, #tpu.memory_space<vmem>>, vector<8x256xf32>
      tpu.vector_store %arg9[%c0_99, %c0_100], %170 {strides = array<i32>} : memref<8x256xf32, #tpu.memory_space<vmem>>, vector<8x256xf32>,
      %cst_101 = arith.constant 0.000000e+00 : f32
      %172 = vector.broadcast %cst_101 : f32 to vector<8x256xf32>
      %c0_102 = arith.constant 0 : index
      %c0_103 = arith.constant 0 : index
      %173 = vector.load %arg10[%c0_102, %c0_103] : memref<8x256xf32, #tpu.memory_space<vmem>>, vector<8x256xf32>
      tpu.vector_store %arg10[%c0_102, %c0_103], %172 {strides = array<i32>} : memref<8x256xf32, #tpu.memory_space<vmem>>, vector<8x256xf32>,
    } else {
    }
    %c0 = arith.constant 0 : index
    %c0_1 = arith.constant 0 : index
    %3 = vector.load %arg9[%c0, %c0_1] : memref<8x256xf32, #tpu.memory_space<vmem>>, vector<8x256xf32>
    %c0_2 = arith.constant 0 : index
    %c0_3 = arith.constant 0 : index
    %4 = vector.load %arg10[%c0_2, %c0_3] : memref<8x256xf32, #tpu.memory_space<vmem>>, vector<8x256xf32>
    %c0_4 = arith.constant 0 : index
    %c0_5 = arith.constant 0 : index
    %c0_6 = arith.constant 0 : index
    %5 = vector.load %arg3[%c0_4, %c0_5, %c0_6] : memref<1x8x256xf32, #tpu.memory_space<vmem>>, vector<1x1x256xf32>
    %6 = vector.shape_cast %5 : vector<1x1x256xf32> to vector<1x256xf32>
    %c0_7 = arith.constant 0 : index
    %c0_8 = arith.constant 0 : index
    %c0_9 = arith.constant 0 : index
    %7 = vector.load %arg4[%c0_7, %c0_8, %c0_9] : memref<1x8x256xf32, #tpu.memory_space<vmem>>, vector<1x1x256xf32>
    %8 = vector.shape_cast %7 : vector<1x1x256xf32> to vector<1x256xf32>
    %c0_10 = arith.constant 0 : index
    %c0_11 = arith.constant 0 : index
    %c0_12 = arith.constant 0 : index
    %9 = vector.load %arg5[%c0_10, %c0_11, %c0_12] : memref<8x8x256xf32, #tpu.memory_space<vmem>>, vector<1x8x256xf32>
    %10 = vector.shape_cast %9 : vector<1x8x256xf32> to vector<8x256xf32>
    %c0_13 = arith.constant 0 : index
    %c0_14 = arith.constant 0 : index
    %c0_15 = arith.constant 0 : index
    %11 = vector.load %arg6[%c0_13, %c0_14, %c0_15] : memref<8x8x256xf32, #tpu.memory_space<vmem>>, vector<1x8x256xf32>
    %12 = vector.shape_cast %11 : vector<1x8x256xf32> to vector<8x256xf32>
    %13 = vector.broadcast %6 : vector<1x256xf32> to vector<8x256xf32>
    %14 = arith.mulf %13, %10 : vector<8x256xf32>
    %15 = arith.addf %3, %14 : vector<8x256xf32>
    %16 = vector.broadcast %8 : vector<1x256xf32> to vector<8x256xf32>
    %17 = arith.mulf %16, %12 : vector<8x256xf32>
    %18 = arith.subf %15, %17 : vector<8x256xf32>
    %19 = vector.broadcast %6 : vector<1x256xf32> to vector<8x256xf32>
    %20 = arith.mulf %19, %12 : vector<8x256xf32>
    %21 = arith.addf %4, %20 : vector<8x256xf32>
    %22 = vector.broadcast %8 : vector<1x256xf32> to vector<8x256xf32>
    %23 = arith.mulf %22, %10 : vector<8x256xf32>
    %24 = arith.addf %21, %23 : vector<8x256xf32>
    %c0_16 = arith.constant 0 : index
    %c1 = arith.constant 1 : index
    %c0_17 = arith.constant 0 : index
    %25 = vector.load %arg3[%c0_16, %c1, %c0_17] : memref<1x8x256xf32, #tpu.memory_space<vmem>>, vector<1x1x256xf32>
    %26 = vector.shape_cast %25 : vector<1x1x256xf32> to vector<1x256xf32>
    %c0_18 = arith.constant 0 : index
    %c1_19 = arith.constant 1 : index
    %c0_20 = arith.constant 0 : index
    %27 = vector.load %arg4[%c0_18, %c1_19, %c0_20] : memref<1x8x256xf32, #tpu.memory_space<vmem>>, vector<1x1x256xf32>
    %28 = vector.shape_cast %27 : vector<1x1x256xf32> to vector<1x256xf32>
    %c1_21 = arith.constant 1 : index
    %c0_22 = arith.constant 0 : index
    %c0_23 = arith.constant 0 : index
    %29 = vector.load %arg5[%c1_21, %c0_22, %c0_23] : memref<8x8x256xf32, #tpu.memory_space<vmem>>, vector<1x8x256xf32>
    %30 = vector.shape_cast %29 : vector<1x8x256xf32> to vector<8x256xf32>
    %c1_24 = arith.constant 1 : index
    %c0_25 = arith.constant 0 : index
    %c0_26 = arith.constant 0 : index
    %31 = vector.load %arg6[%c1_24, %c0_25, %c0_26] : memref<8x8x256xf32, #tpu.memory_space<vmem>>, vector<1x8x256xf32>
    %32 = vector.shape_cast %31 : vector<1x8x256xf32> to vector<8x256xf32>
    %33 = vector.broadcast %26 : vector<1x256xf32> to vector<8x256xf32>
    %34 = arith.mulf %33, %30 : vector<8x256xf32>
    %35 = arith.addf %18, %34 : vector<8x256xf32>
    %36 = vector.broadcast %28 : vector<1x256xf32> to vector<8x256xf32>
    %37 = arith.mulf %36, %32 : vector<8x256xf32>
    %38 = arith.subf %35, %37 : vector<8x256xf32>
    %39 = vector.broadcast %26 : vector<1x256xf32> to vector<8x256xf32>
    %40 = arith.mulf %39, %32 : vector<8x256xf32>
    %41 = arith.addf %24, %40 : vector<8x256xf32>
    %42 = vector.broadcast %28 : vector<1x256xf32> to vector<8x256xf32>
    %43 = arith.mulf %42, %30 : vector<8x256xf32>
    %44 = arith.addf %41, %43 : vector<8x256xf32>
    %c0_27 = arith.constant 0 : index
    %c2 = arith.constant 2 : index
    %c0_28 = arith.constant 0 : index
    %45 = vector.load %arg3[%c0_27, %c2, %c0_28] : memref<1x8x256xf32, #tpu.memory_space<vmem>>, vector<1x1x256xf32>
    %46 = vector.shape_cast %45 : vector<1x1x256xf32> to vector<1x256xf32>
    %c0_29 = arith.constant 0 : index
    %c2_30 = arith.constant 2 : index
    %c0_31 = arith.constant 0 : index
    %47 = vector.load %arg4[%c0_29, %c2_30, %c0_31] : memref<1x8x256xf32, #tpu.memory_space<vmem>>, vector<1x1x256xf32>
    %48 = vector.shape_cast %47 : vector<1x1x256xf32> to vector<1x256xf32>
    %c2_32 = arith.constant 2 : index
    %c0_33 = arith.constant 0 : index
    %c0_34 = arith.constant 0 : index
    %49 = vector.load %arg5[%c2_32, %c0_33, %c0_34] : memref<8x8x256xf32, #tpu.memory_space<vmem>>, vector<1x8x256xf32>
    %50 = vector.shape_cast %49 : vector<1x8x256xf32> to vector<8x256xf32>
    %c2_35 = arith.constant 2 : index
    %c0_36 = arith.constant 0 : index
    %c0_37 = arith.constant 0 : index
    %51 = vector.load %arg6[%c2_35, %c0_36, %c0_37] : memref<8x8x256xf32, #tpu.memory_space<vmem>>, vector<1x8x256xf32>
    %52 = vector.shape_cast %51 : vector<1x8x256xf32> to vector<8x256xf32>
    %53 = vector.broadcast %46 : vector<1x256xf32> to vector<8x256xf32>
    %54 = arith.mulf %53, %50 : vector<8x256xf32>
    %55 = arith.addf %38, %54 : vector<8x256xf32>
    %56 = vector.broadcast %48 : vector<1x256xf32> to vector<8x256xf32>
    %57 = arith.mulf %56, %52 : vector<8x256xf32>
    %58 = arith.subf %55, %57 : vector<8x256xf32>
    %59 = vector.broadcast %46 : vector<1x256xf32> to vector<8x256xf32>
    %60 = arith.mulf %59, %52 : vector<8x256xf32>
    %61 = arith.addf %44, %60 : vector<8x256xf32>
    %62 = vector.broadcast %48 : vector<1x256xf32> to vector<8x256xf32>
    %63 = arith.mulf %62, %50 : vector<8x256xf32>
    %64 = arith.addf %61, %63 : vector<8x256xf32>
    %c0_38 = arith.constant 0 : index
    %c3 = arith.constant 3 : index
    %c0_39 = arith.constant 0 : index
    %65 = vector.load %arg3[%c0_38, %c3, %c0_39] : memref<1x8x256xf32, #tpu.memory_space<vmem>>, vector<1x1x256xf32>
    %66 = vector.shape_cast %65 : vector<1x1x256xf32> to vector<1x256xf32>
    %c0_40 = arith.constant 0 : index
    %c3_41 = arith.constant 3 : index
    %c0_42 = arith.constant 0 : index
    %67 = vector.load %arg4[%c0_40, %c3_41, %c0_42] : memref<1x8x256xf32, #tpu.memory_space<vmem>>, vector<1x1x256xf32>
    %68 = vector.shape_cast %67 : vector<1x1x256xf32> to vector<1x256xf32>
    %c3_43 = arith.constant 3 : index
    %c0_44 = arith.constant 0 : index
    %c0_45 = arith.constant 0 : index
    %69 = vector.load %arg5[%c3_43, %c0_44, %c0_45] : memref<8x8x256xf32, #tpu.memory_space<vmem>>, vector<1x8x256xf32>
    %70 = vector.shape_cast %69 : vector<1x8x256xf32> to vector<8x256xf32>
    %c3_46 = arith.constant 3 : index
    %c0_47 = arith.constant 0 : index
    %c0_48 = arith.constant 0 : index
    %71 = vector.load %arg6[%c3_46, %c0_47, %c0_48] : memref<8x8x256xf32, #tpu.memory_space<vmem>>, vector<1x8x256xf32>
    %72 = vector.shape_cast %71 : vector<1x8x256xf32> to vector<8x256xf32>
    %73 = vector.broadcast %66 : vector<1x256xf32> to vector<8x256xf32>
    %74 = arith.mulf %73, %70 : vector<8x256xf32>
    %75 = arith.addf %58, %74 : vector<8x256xf32>
    %76 = vector.broadcast %68 : vector<1x256xf32> to vector<8x256xf32>
    %77 = arith.mulf %76, %72 : vector<8x256xf32>
    %78 = arith.subf %75, %77 : vector<8x256xf32>
    %79 = vector.broadcast %66 : vector<1x256xf32> to vector<8x256xf32>
    %80 = arith.mulf %79, %72 : vector<8x256xf32>
    %81 = arith.addf %64, %80 : vector<8x256xf32>
    %82 = vector.broadcast %68 : vector<1x256xf32> to vector<8x256xf32>
    %83 = arith.mulf %82, %70 : vector<8x256xf32>
    %84 = arith.addf %81, %83 : vector<8x256xf32>
    %c0_49 = arith.constant 0 : index
    %c4 = arith.constant 4 : index
    %c0_50 = arith.constant 0 : index
    %85 = vector.load %arg3[%c0_49, %c4, %c0_50] : memref<1x8x256xf32, #tpu.memory_space<vmem>>, vector<1x1x256xf32>
    %86 = vector.shape_cast %85 : vector<1x1x256xf32> to vector<1x256xf32>
    %c0_51 = arith.constant 0 : index
    %c4_52 = arith.constant 4 : index
    %c0_53 = arith.constant 0 : index
    %87 = vector.load %arg4[%c0_51, %c4_52, %c0_53] : memref<1x8x256xf32, #tpu.memory_space<vmem>>, vector<1x1x256xf32>
    %88 = vector.shape_cast %87 : vector<1x1x256xf32> to vector<1x256xf32>
    %c4_54 = arith.constant 4 : index
    %c0_55 = arith.constant 0 : index
    %c0_56 = arith.constant 0 : index
    %89 = vector.load %arg5[%c4_54, %c0_55, %c0_56] : memref<8x8x256xf32, #tpu.memory_space<vmem>>, vector<1x8x256xf32>
    %90 = vector.shape_cast %89 : vector<1x8x256xf32> to vector<8x256xf32>
    %c4_57 = arith.constant 4 : index
    %c0_58 = arith.constant 0 : index
    %c0_59 = arith.constant 0 : index
    %91 = vector.load %arg6[%c4_57, %c0_58, %c0_59] : memref<8x8x256xf32, #tpu.memory_space<vmem>>, vector<1x8x256xf32>
    %92 = vector.shape_cast %91 : vector<1x8x256xf32> to vector<8x256xf32>
    %93 = vector.broadcast %86 : vector<1x256xf32> to vector<8x256xf32>
    %94 = arith.mulf %93, %90 : vector<8x256xf32>
    %95 = arith.addf %78, %94 : vector<8x256xf32>
    %96 = vector.broadcast %88 : vector<1x256xf32> to vector<8x256xf32>
    %97 = arith.mulf %96, %92 : vector<8x256xf32>
    %98 = arith.subf %95, %97 : vector<8x256xf32>
    %99 = vector.broadcast %86 : vector<1x256xf32> to vector<8x256xf32>
    %100 = arith.mulf %99, %92 : vector<8x256xf32>
    %101 = arith.addf %84, %100 : vector<8x256xf32>
    %102 = vector.broadcast %88 : vector<1x256xf32> to vector<8x256xf32>
    %103 = arith.mulf %102, %90 : vector<8x256xf32>
    %104 = arith.addf %101, %103 : vector<8x256xf32>
    %c0_60 = arith.constant 0 : index
    %c5 = arith.constant 5 : index
    %c0_61 = arith.constant 0 : index
    %105 = vector.load %arg3[%c0_60, %c5, %c0_61] : memref<1x8x256xf32, #tpu.memory_space<vmem>>, vector<1x1x256xf32>
    %106 = vector.shape_cast %105 : vector<1x1x256xf32> to vector<1x256xf32>
    %c0_62 = arith.constant 0 : index
    %c5_63 = arith.constant 5 : index
    %c0_64 = arith.constant 0 : index
    %107 = vector.load %arg4[%c0_62, %c5_63, %c0_64] : memref<1x8x256xf32, #tpu.memory_space<vmem>>, vector<1x1x256xf32>
    %108 = vector.shape_cast %107 : vector<1x1x256xf32> to vector<1x256xf32>
    %c5_65 = arith.constant 5 : index
    %c0_66 = arith.constant 0 : index
    %c0_67 = arith.constant 0 : index
    %109 = vector.load %arg5[%c5_65, %c0_66, %c0_67] : memref<8x8x256xf32, #tpu.memory_space<vmem>>, vector<1x8x256xf32>
    %110 = vector.shape_cast %109 : vector<1x8x256xf32> to vector<8x256xf32>
    %c5_68 = arith.constant 5 : index
    %c0_69 = arith.constant 0 : index
    %c0_70 = arith.constant 0 : index
    %111 = vector.load %arg6[%c5_68, %c0_69, %c0_70] : memref<8x8x256xf32, #tpu.memory_space<vmem>>, vector<1x8x256xf32>
    %112 = vector.shape_cast %111 : vector<1x8x256xf32> to vector<8x256xf32>
    %113 = vector.broadcast %106 : vector<1x256xf32> to vector<8x256xf32>
    %114 = arith.mulf %113, %110 : vector<8x256xf32>
    %115 = arith.addf %98, %114 : vector<8x256xf32>
    %116 = vector.broadcast %108 : vector<1x256xf32> to vector<8x256xf32>
    %117 = arith.mulf %116, %112 : vector<8x256xf32>
    %118 = arith.subf %115, %117 : vector<8x256xf32>
    %119 = vector.broadcast %106 : vector<1x256xf32> to vector<8x256xf32>
    %120 = arith.mulf %119, %112 : vector<8x256xf32>
    %121 = arith.addf %104, %120 : vector<8x256xf32>
    %122 = vector.broadcast %108 : vector<1x256xf32> to vector<8x256xf32>
    %123 = arith.mulf %122, %110 : vector<8x256xf32>
    %124 = arith.addf %121, %123 : vector<8x256xf32>
    %c0_71 = arith.constant 0 : index
    %c6 = arith.constant 6 : index
    %c0_72 = arith.constant 0 : index
    %125 = vector.load %arg3[%c0_71, %c6, %c0_72] : memref<1x8x256xf32, #tpu.memory_space<vmem>>, vector<1x1x256xf32>
    %126 = vector.shape_cast %125 : vector<1x1x256xf32> to vector<1x256xf32>
    %c0_73 = arith.constant 0 : index
    %c6_74 = arith.constant 6 : index
    %c0_75 = arith.constant 0 : index
    %127 = vector.load %arg4[%c0_73, %c6_74, %c0_75] : memref<1x8x256xf32, #tpu.memory_space<vmem>>, vector<1x1x256xf32>
    %128 = vector.shape_cast %127 : vector<1x1x256xf32> to vector<1x256xf32>
    %c6_76 = arith.constant 6 : index
    %c0_77 = arith.constant 0 : index
    %c0_78 = arith.constant 0 : index
    %129 = vector.load %arg5[%c6_76, %c0_77, %c0_78] : memref<8x8x256xf32, #tpu.memory_space<vmem>>, vector<1x8x256xf32>
    %130 = vector.shape_cast %129 : vector<1x8x256xf32> to vector<8x256xf32>
    %c6_79 = arith.constant 6 : index
    %c0_80 = arith.constant 0 : index
    %c0_81 = arith.constant 0 : index
    %131 = vector.load %arg6[%c6_79, %c0_80, %c0_81] : memref<8x8x256xf32, #tpu.memory_space<vmem>>, vector<1x8x256xf32>
    %132 = vector.shape_cast %131 : vector<1x8x256xf32> to vector<8x256xf32>
    %133 = vector.broadcast %126 : vector<1x256xf32> to vector<8x256xf32>
    %134 = arith.mulf %133, %130 : vector<8x256xf32>
    %135 = arith.addf %118, %134 : vector<8x256xf32>
    %136 = vector.broadcast %128 : vector<1x256xf32> to vector<8x256xf32>
    %137 = arith.mulf %136, %132 : vector<8x256xf32>
    %138 = arith.subf %135, %137 : vector<8x256xf32>
    %139 = vector.broadcast %126 : vector<1x256xf32> to vector<8x256xf32>
    %140 = arith.mulf %139, %132 : vector<8x256xf32>
    %141 = arith.addf %124, %140 : vector<8x256xf32>
    %142 = vector.broadcast %128 : vector<1x256xf32> to vector<8x256xf32>
    %143 = arith.mulf %142, %130 : vector<8x256xf32>
    %144 = arith.addf %141, %143 : vector<8x256xf32>
    %c0_82 = arith.constant 0 : index
    %c7 = arith.constant 7 : index
    %c0_83 = arith.constant 0 : index
    %145 = vector.load %arg3[%c0_82, %c7, %c0_83] : memref<1x8x256xf32, #tpu.memory_space<vmem>>, vector<1x1x256xf32>
    %146 = vector.shape_cast %145 : vector<1x1x256xf32> to vector<1x256xf32>
    %c0_84 = arith.constant 0 : index
    %c7_85 = arith.constant 7 : index
    %c0_86 = arith.constant 0 : index
    %147 = vector.load %arg4[%c0_84, %c7_85, %c0_86] : memref<1x8x256xf32, #tpu.memory_space<vmem>>, vector<1x1x256xf32>
    %148 = vector.shape_cast %147 : vector<1x1x256xf32> to vector<1x256xf32>
    %c7_87 = arith.constant 7 : index
    %c0_88 = arith.constant 0 : index
    %c0_89 = arith.constant 0 : index
    %149 = vector.load %arg5[%c7_87, %c0_88, %c0_89] : memref<8x8x256xf32, #tpu.memory_space<vmem>>, vector<1x8x256xf32>
    %150 = vector.shape_cast %149 : vector<1x8x256xf32> to vector<8x256xf32>
    %c7_90 = arith.constant 7 : index
    %c0_91 = arith.constant 0 : index
    %c0_92 = arith.constant 0 : index
    %151 = vector.load %arg6[%c7_90, %c0_91, %c0_92] : memref<8x8x256xf32, #tpu.memory_space<vmem>>, vector<1x8x256xf32>
    %152 = vector.shape_cast %151 : vector<1x8x256xf32> to vector<8x256xf32>
    %153 = vector.broadcast %146 : vector<1x256xf32> to vector<8x256xf32>
    %154 = arith.mulf %153, %150 : vector<8x256xf32>
    %155 = arith.addf %138, %154 : vector<8x256xf32>
    %156 = vector.broadcast %148 : vector<1x256xf32> to vector<8x256xf32>
    %157 = arith.mulf %156, %152 : vector<8x256xf32>
    %158 = arith.subf %155, %157 : vector<8x256xf32>
    %159 = vector.broadcast %146 : vector<1x256xf32> to vector<8x256xf32>
    %160 = arith.mulf %159, %152 : vector<8x256xf32>
    %161 = arith.addf %144, %160 : vector<8x256xf32>
    %162 = vector.broadcast %148 : vector<1x256xf32> to vector<8x256xf32>
    %163 = arith.mulf %162, %150 : vector<8x256xf32>
    %164 = arith.addf %161, %163 : vector<8x256xf32>
    %c0_93 = arith.constant 0 : index
    %c0_94 = arith.constant 0 : index
    %165 = vector.load %arg9[%c0_93, %c0_94] : memref<8x256xf32, #tpu.memory_space<vmem>>, vector<8x256xf32>
    tpu.vector_store %arg9[%c0_93, %c0_94], %158 {strides = array<i32>} : memref<8x256xf32, #tpu.memory_space<vmem>>, vector<8x256xf32>,
    %c0_95 = arith.constant 0 : index
    %c0_96 = arith.constant 0 : index
    %166 = vector.load %arg10[%c0_95, %c0_96] : memref<8x256xf32, #tpu.memory_space<vmem>>, vector<8x256xf32>
    tpu.vector_store %arg10[%c0_95, %c0_96], %164 {strides = array<i32>} : memref<8x256xf32, #tpu.memory_space<vmem>>, vector<8x256xf32>,
    %c0_i32_97 = arith.constant 0 : i32
    %167 = arith.cmpi eq, %arg2, %c0_i32_97 : i32
    %168 = arith.extui %167 : i1 to i32
    %c0_i32_98 = arith.constant 0 : i32
    %169 = arith.cmpi ne, %168, %c0_i32_98 : i32
    scf.if %169 {
      %170 = vector.shape_cast %158 : vector<8x256xf32> to vector<1x8x256xf32>
      %c0_99 = arith.constant 0 : index
      %c0_100 = arith.constant 0 : index
      %c0_101 = arith.constant 0 : index
      %171 = vector.load %arg7[%c0_99, %c0_100, %c0_101] : memref<1x8x256xf32, #tpu.memory_space<vmem>>, vector<1x8x256xf32>
      tpu.vector_store %arg7[%c0_99, %c0_100, %c0_101], %170 {strides = array<i32>} : memref<1x8x256xf32, #tpu.memory_space<vmem>>, vector<1x8x256xf32>,
      %172 = vector.shape_cast %164 : vector<8x256xf32> to vector<1x8x256xf32>
      %c0_102 = arith.constant 0 : index
      %c0_103 = arith.constant 0 : index
      %c0_104 = arith.constant 0 : index
      %173 = vector.load %arg8[%c0_102, %c0_103, %c0_104] : memref<1x8x256xf32, #tpu.memory_space<vmem>>, vector<1x8x256xf32>
      tpu.vector_store %arg8[%c0_102, %c0_103, %c0_104], %172 {strides = array<i32>} : memref<1x8x256xf32, #tpu.memory_space<vmem>>, vector<1x8x256xf32>,
    } else {
    }
    return
  }
  func.func @transform_0(%arg0: i32, %arg1: i32, %arg2: i32) -> (i32, i32, i32) {
    %c0_i32 = arith.constant 0 : i32
    return %arg1, %arg2, %arg0 : i32, i32, i32
  }
  func.func @transform_1(%arg0: i32, %arg1: i32, %arg2: i32) -> (i32, i32, i32) {
    %c0_i32 = arith.constant 0 : i32
    return %arg1, %arg2, %arg0 : i32, i32, i32
  }
  func.func @transform_2(%arg0: i32, %arg1: i32, %arg2: i32) -> (i32, i32, i32) {
    %c0_i32 = arith.constant 0 : i32
    %c0_i32_0 = arith.constant 0 : i32
    return %arg2, %c0_i32, %arg0 : i32, i32, i32
  }
  func.func @transform_3(%arg0: i32, %arg1: i32, %arg2: i32) -> (i32, i32, i32) {
    %c0_i32 = arith.constant 0 : i32
    %c0_i32_0 = arith.constant 0 : i32
    return %arg2, %c0_i32, %arg0 : i32, i32, i32
  }
  func.func @transform_4(%arg0: i32, %arg1: i32, %arg2: i32) -> (i32, i32, i32) {
    %c0_i32 = arith.constant 0 : i32
    %c0_i32_0 = arith.constant 0 : i32
    return %arg1, %c0_i32, %arg0 : i32, i32, i32
  }
  func.func @transform_5(%arg0: i32, %arg1: i32, %arg2: i32) -> (i32, i32, i32) {
    %c0_i32 = arith.constant 0 : i32
    %c0_i32_0 = arith.constant 0 : i32
    return %arg1, %c0_i32, %arg0 : i32, i32, i32
  }
}

module attributes {stable_mosaic.version = 11 : i64} {
  func.func @_pointwise_kernel(%arg0: i32, %arg1: i32, %arg2: memref<1x8x4096xf32, #tpu.memory_space<vmem>>, %arg3: memref<1x8x4096xf32, #tpu.memory_space<vmem>>, %arg4: memref<1x8x4096xf32, #tpu.memory_space<vmem>>, %arg5: memref<8x8x1xf32, #tpu.memory_space<vmem>>, %arg6: memref<8x1xf32, #tpu.memory_space<vmem>>, %arg7: memref<1x8x4096xf32, #tpu.memory_space<vmem>>) attributes {dimension_semantics = [#tpu.dimension_semantics<parallel>, #tpu.dimension_semantics<parallel>], iteration_bounds = array<i64: 2, 1>, scalar_prefetch = 0 : i64, scratch_operands = 0 : i64, tpu.core_type = #tpu.core_type<tc>, window_params = [{transform_indices = @transform_0, window_bounds = array<i64: 1, 8, 4096>}, {transform_indices = @transform_1, window_bounds = array<i64: 1, 8, 4096>}, {transform_indices = @transform_2, window_bounds = array<i64: 1, 8, 4096>}, {pipeline_mode = #tpu.pipeline_mode<synchronous>, transform_indices = @transform_3, window_bounds = array<i64: 8, 8, 1>}, {pipeline_mode = #tpu.pipeline_mode<synchronous>, transform_indices = @transform_4, window_bounds = array<i64: 8, 1>}, {transform_indices = @transform_5, window_bounds = array<i64: 1, 8, 4096>}]} {
    %cst = arith.constant 0.000000e+00 : f32
    %0 = vector.broadcast %cst : f32 to vector<8x4096xf32>
    %c0 = arith.constant 0 : index
    %c0_0 = arith.constant 0 : index
    %c0_1 = arith.constant 0 : index
    %1 = vector.load %arg2[%c0, %c0_0, %c0_1] : memref<1x8x4096xf32, #tpu.memory_space<vmem>>, vector<1x1x4096xf32>
    %2 = vector.shape_cast %1 : vector<1x1x4096xf32> to vector<1x4096xf32>
    %c0_2 = arith.constant 0 : index
    %c0_3 = arith.constant 0 : index
    %c0_4 = arith.constant 0 : index
    %3 = vector.load %arg5[%c0_2, %c0_3, %c0_4] : memref<8x8x1xf32, #tpu.memory_space<vmem>>, vector<1x8x1xf32>
    %4 = vector.shape_cast %3 : vector<1x8x1xf32> to vector<8x1xf32>
    %5 = vector.broadcast %4 : vector<8x1xf32> to vector<8x4096xf32>
    %6 = vector.broadcast %2 : vector<1x4096xf32> to vector<8x4096xf32>
    %7 = arith.mulf %5, %6 : vector<8x4096xf32>
    %8 = arith.addf %0, %7 : vector<8x4096xf32>
    %c0_5 = arith.constant 0 : index
    %c1 = arith.constant 1 : index
    %c0_6 = arith.constant 0 : index
    %9 = vector.load %arg2[%c0_5, %c1, %c0_6] : memref<1x8x4096xf32, #tpu.memory_space<vmem>>, vector<1x1x4096xf32>
    %10 = vector.shape_cast %9 : vector<1x1x4096xf32> to vector<1x4096xf32>
    %c1_7 = arith.constant 1 : index
    %c0_8 = arith.constant 0 : index
    %c0_9 = arith.constant 0 : index
    %11 = vector.load %arg5[%c1_7, %c0_8, %c0_9] : memref<8x8x1xf32, #tpu.memory_space<vmem>>, vector<1x8x1xf32>
    %12 = vector.shape_cast %11 : vector<1x8x1xf32> to vector<8x1xf32>
    %13 = vector.broadcast %12 : vector<8x1xf32> to vector<8x4096xf32>
    %14 = vector.broadcast %10 : vector<1x4096xf32> to vector<8x4096xf32>
    %15 = arith.mulf %13, %14 : vector<8x4096xf32>
    %16 = arith.addf %8, %15 : vector<8x4096xf32>
    %c0_10 = arith.constant 0 : index
    %c2 = arith.constant 2 : index
    %c0_11 = arith.constant 0 : index
    %17 = vector.load %arg2[%c0_10, %c2, %c0_11] : memref<1x8x4096xf32, #tpu.memory_space<vmem>>, vector<1x1x4096xf32>
    %18 = vector.shape_cast %17 : vector<1x1x4096xf32> to vector<1x4096xf32>
    %c2_12 = arith.constant 2 : index
    %c0_13 = arith.constant 0 : index
    %c0_14 = arith.constant 0 : index
    %19 = vector.load %arg5[%c2_12, %c0_13, %c0_14] : memref<8x8x1xf32, #tpu.memory_space<vmem>>, vector<1x8x1xf32>
    %20 = vector.shape_cast %19 : vector<1x8x1xf32> to vector<8x1xf32>
    %21 = vector.broadcast %20 : vector<8x1xf32> to vector<8x4096xf32>
    %22 = vector.broadcast %18 : vector<1x4096xf32> to vector<8x4096xf32>
    %23 = arith.mulf %21, %22 : vector<8x4096xf32>
    %24 = arith.addf %16, %23 : vector<8x4096xf32>
    %c0_15 = arith.constant 0 : index
    %c3 = arith.constant 3 : index
    %c0_16 = arith.constant 0 : index
    %25 = vector.load %arg2[%c0_15, %c3, %c0_16] : memref<1x8x4096xf32, #tpu.memory_space<vmem>>, vector<1x1x4096xf32>
    %26 = vector.shape_cast %25 : vector<1x1x4096xf32> to vector<1x4096xf32>
    %c3_17 = arith.constant 3 : index
    %c0_18 = arith.constant 0 : index
    %c0_19 = arith.constant 0 : index
    %27 = vector.load %arg5[%c3_17, %c0_18, %c0_19] : memref<8x8x1xf32, #tpu.memory_space<vmem>>, vector<1x8x1xf32>
    %28 = vector.shape_cast %27 : vector<1x8x1xf32> to vector<8x1xf32>
    %29 = vector.broadcast %28 : vector<8x1xf32> to vector<8x4096xf32>
    %30 = vector.broadcast %26 : vector<1x4096xf32> to vector<8x4096xf32>
    %31 = arith.mulf %29, %30 : vector<8x4096xf32>
    %32 = arith.addf %24, %31 : vector<8x4096xf32>
    %c0_20 = arith.constant 0 : index
    %c4 = arith.constant 4 : index
    %c0_21 = arith.constant 0 : index
    %33 = vector.load %arg2[%c0_20, %c4, %c0_21] : memref<1x8x4096xf32, #tpu.memory_space<vmem>>, vector<1x1x4096xf32>
    %34 = vector.shape_cast %33 : vector<1x1x4096xf32> to vector<1x4096xf32>
    %c4_22 = arith.constant 4 : index
    %c0_23 = arith.constant 0 : index
    %c0_24 = arith.constant 0 : index
    %35 = vector.load %arg5[%c4_22, %c0_23, %c0_24] : memref<8x8x1xf32, #tpu.memory_space<vmem>>, vector<1x8x1xf32>
    %36 = vector.shape_cast %35 : vector<1x8x1xf32> to vector<8x1xf32>
    %37 = vector.broadcast %36 : vector<8x1xf32> to vector<8x4096xf32>
    %38 = vector.broadcast %34 : vector<1x4096xf32> to vector<8x4096xf32>
    %39 = arith.mulf %37, %38 : vector<8x4096xf32>
    %40 = arith.addf %32, %39 : vector<8x4096xf32>
    %c0_25 = arith.constant 0 : index
    %c5 = arith.constant 5 : index
    %c0_26 = arith.constant 0 : index
    %41 = vector.load %arg2[%c0_25, %c5, %c0_26] : memref<1x8x4096xf32, #tpu.memory_space<vmem>>, vector<1x1x4096xf32>
    %42 = vector.shape_cast %41 : vector<1x1x4096xf32> to vector<1x4096xf32>
    %c5_27 = arith.constant 5 : index
    %c0_28 = arith.constant 0 : index
    %c0_29 = arith.constant 0 : index
    %43 = vector.load %arg5[%c5_27, %c0_28, %c0_29] : memref<8x8x1xf32, #tpu.memory_space<vmem>>, vector<1x8x1xf32>
    %44 = vector.shape_cast %43 : vector<1x8x1xf32> to vector<8x1xf32>
    %45 = vector.broadcast %44 : vector<8x1xf32> to vector<8x4096xf32>
    %46 = vector.broadcast %42 : vector<1x4096xf32> to vector<8x4096xf32>
    %47 = arith.mulf %45, %46 : vector<8x4096xf32>
    %48 = arith.addf %40, %47 : vector<8x4096xf32>
    %c0_30 = arith.constant 0 : index
    %c6 = arith.constant 6 : index
    %c0_31 = arith.constant 0 : index
    %49 = vector.load %arg2[%c0_30, %c6, %c0_31] : memref<1x8x4096xf32, #tpu.memory_space<vmem>>, vector<1x1x4096xf32>
    %50 = vector.shape_cast %49 : vector<1x1x4096xf32> to vector<1x4096xf32>
    %c6_32 = arith.constant 6 : index
    %c0_33 = arith.constant 0 : index
    %c0_34 = arith.constant 0 : index
    %51 = vector.load %arg5[%c6_32, %c0_33, %c0_34] : memref<8x8x1xf32, #tpu.memory_space<vmem>>, vector<1x8x1xf32>
    %52 = vector.shape_cast %51 : vector<1x8x1xf32> to vector<8x1xf32>
    %53 = vector.broadcast %52 : vector<8x1xf32> to vector<8x4096xf32>
    %54 = vector.broadcast %50 : vector<1x4096xf32> to vector<8x4096xf32>
    %55 = arith.mulf %53, %54 : vector<8x4096xf32>
    %56 = arith.addf %48, %55 : vector<8x4096xf32>
    %c0_35 = arith.constant 0 : index
    %c7 = arith.constant 7 : index
    %c0_36 = arith.constant 0 : index
    %57 = vector.load %arg2[%c0_35, %c7, %c0_36] : memref<1x8x4096xf32, #tpu.memory_space<vmem>>, vector<1x1x4096xf32>
    %58 = vector.shape_cast %57 : vector<1x1x4096xf32> to vector<1x4096xf32>
    %c7_37 = arith.constant 7 : index
    %c0_38 = arith.constant 0 : index
    %c0_39 = arith.constant 0 : index
    %59 = vector.load %arg5[%c7_37, %c0_38, %c0_39] : memref<8x8x1xf32, #tpu.memory_space<vmem>>, vector<1x8x1xf32>
    %60 = vector.shape_cast %59 : vector<1x8x1xf32> to vector<8x1xf32>
    %61 = vector.broadcast %60 : vector<8x1xf32> to vector<8x4096xf32>
    %62 = vector.broadcast %58 : vector<1x4096xf32> to vector<8x4096xf32>
    %63 = arith.mulf %61, %62 : vector<8x4096xf32>
    %64 = arith.addf %56, %63 : vector<8x4096xf32>
    %c0_40 = arith.constant 0 : index
    %c0_41 = arith.constant 0 : index
    %65 = vector.load %arg6[%c0_40, %c0_41] : memref<8x1xf32, #tpu.memory_space<vmem>>, vector<8x1xf32>
    %66 = vector.broadcast %65 : vector<8x1xf32> to vector<8x4096xf32>
    %67 = arith.addf %64, %66 : vector<8x4096xf32>
    %c0_42 = arith.constant 0 : index
    %c0_43 = arith.constant 0 : index
    %c0_44 = arith.constant 0 : index
    %68 = vector.load %arg3[%c0_42, %c0_43, %c0_44] : memref<1x8x4096xf32, #tpu.memory_space<vmem>>, vector<1x8x4096xf32>
    %69 = vector.shape_cast %68 : vector<1x8x4096xf32> to vector<8x4096xf32>
    %70 = arith.addf %67, %69 : vector<8x4096xf32>
    %c0_45 = arith.constant 0 : index
    %c0_46 = arith.constant 0 : index
    %c0_47 = arith.constant 0 : index
    %71 = vector.load %arg4[%c0_45, %c0_46, %c0_47] : memref<1x8x4096xf32, #tpu.memory_space<vmem>>, vector<1x8x4096xf32>
    %72 = vector.shape_cast %71 : vector<1x8x4096xf32> to vector<8x4096xf32>
    %73 = arith.addf %70, %72 : vector<8x4096xf32>
    %74 = arith.mulf %73, %73 : vector<8x4096xf32>
    %75 = arith.mulf %73, %74 : vector<8x4096xf32>
    %cst_48 = arith.constant 4.471500e-02 : f32
    %76 = vector.broadcast %cst_48 : f32 to vector<8x4096xf32>
    %77 = arith.mulf %76, %75 : vector<8x4096xf32>
    %78 = arith.addf %73, %77 : vector<8x4096xf32>
    %cst_49 = arith.constant 0.797884583 : f32
    %79 = vector.broadcast %cst_49 : f32 to vector<8x4096xf32>
    %80 = arith.mulf %79, %78 : vector<8x4096xf32>
    %81 = math.tanh %80 : vector<8x4096xf32>
    %cst_50 = arith.constant 1.000000e+00 : f32
    %82 = vector.broadcast %cst_50 : f32 to vector<8x4096xf32>
    %83 = arith.addf %82, %81 : vector<8x4096xf32>
    %cst_51 = arith.constant 5.000000e-01 : f32
    %84 = vector.broadcast %cst_51 : f32 to vector<8x4096xf32>
    %85 = arith.mulf %84, %83 : vector<8x4096xf32>
    %86 = arith.mulf %73, %85 : vector<8x4096xf32>
    %87 = vector.shape_cast %86 : vector<8x4096xf32> to vector<1x8x4096xf32>
    %c0_52 = arith.constant 0 : index
    %c0_53 = arith.constant 0 : index
    %c0_54 = arith.constant 0 : index
    %88 = vector.load %arg7[%c0_52, %c0_53, %c0_54] : memref<1x8x4096xf32, #tpu.memory_space<vmem>>, vector<1x8x4096xf32>
    tpu.vector_store %arg7[%c0_52, %c0_53, %c0_54], %87 {strides = array<i32>} : memref<1x8x4096xf32, #tpu.memory_space<vmem>>, vector<1x8x4096xf32>,
    return
  }
  func.func @transform_0(%arg0: i32, %arg1: i32) -> (i32, i32, i32) {
    %c0_i32 = arith.constant 0 : i32
    %c0_i32_0 = arith.constant 0 : i32
    return %arg0, %c0_i32, %arg1 : i32, i32, i32
  }
  func.func @transform_1(%arg0: i32, %arg1: i32) -> (i32, i32, i32) {
    %c0_i32 = arith.constant 0 : i32
    %c0_i32_0 = arith.constant 0 : i32
    return %arg0, %c0_i32, %arg1 : i32, i32, i32
  }
  func.func @transform_2(%arg0: i32, %arg1: i32) -> (i32, i32, i32) {
    %c0_i32 = arith.constant 0 : i32
    %c0_i32_0 = arith.constant 0 : i32
    return %arg0, %c0_i32, %arg1 : i32, i32, i32
  }
  func.func @transform_3(%arg0: i32, %arg1: i32) -> (i32, i32, i32) {
    %c0_i32 = arith.constant 0 : i32
    %c0_i32_0 = arith.constant 0 : i32
    %c0_i32_1 = arith.constant 0 : i32
    %c0_i32_2 = arith.constant 0 : i32
    return %c0_i32, %c0_i32_0, %c0_i32_1 : i32, i32, i32
  }
  func.func @transform_4(%arg0: i32, %arg1: i32) -> (i32, i32) {
    %c0_i32 = arith.constant 0 : i32
    %c0_i32_0 = arith.constant 0 : i32
    %c0_i32_1 = arith.constant 0 : i32
    return %c0_i32, %c0_i32_0 : i32, i32
  }
  func.func @transform_5(%arg0: i32, %arg1: i32) -> (i32, i32, i32) {
    %c0_i32 = arith.constant 0 : i32
    %c0_i32_0 = arith.constant 0 : i32
    return %arg0, %c0_i32, %arg1 : i32, i32, i32
  }
}

</mosaic_0001>

<bundles_post_ra>
// kernel: _lambda_.3
= control target key start
LH: loop header
LB: loop body
LE: loop exit
PB: predicated region body
PF: predicated region fallthrough
CT: control target
= control target key end

     0   :  { %s585_s12 = smov 0   ;;  %s883_s0 = inlined_call_operand.vmem [shape: f32[2,8,4096], index: 0, kind: input, shape index: {}]   ;;  %s884_s1 = inlined_call_operand.vmem [shape: f32[1,8,1], index: 1, kind: input, shape index: {}]   ;;  %s885_s2 = inlined_call_operand.vmem [shape: f32[1,8,1], index: 2, kind: input, shape index: {}]   ;;  %s886_s3 = inlined_call_operand.vmem [shape: f32[2,8,4096], index: 3, kind: output, shape index: {}]  }
   0x1 LB: > { %s524_s13 = sadd.s32 4294967295, %s562_s12   ;;  %p528_p0 = scmp.ge.s32.totalorder %s562_s12, 1  ;;  %s562_s12 = sphi %s585_s12, %s13_s12  }
   0x2   : > { %p137_p1 = scmp.lt.s32.totalorder %s562_s12, 3 }
   0x4   : > { %p138_p2 = pnand %p528_p0, %p137_p1 }
   0x5   : > { %p161_p3 = scmp.lt.s32.totalorder (!%p138_p2), %s524_s13, 1 }
   0x6   : > { %141 = sbr.rel (%p138_p2) target bundleno = 771 (0x303), region = 32 }
   0xb   : > { %s888_s13 = smov (!%p161_p3, %s524_s13), 1 }
   0xc   : > { %s535_s14 = sshll.u32 %s888_s13, 8 }
   0xd   : > { %s601_s17 = scalar_lea.vmem %s883_s0, %s535_s14  ;;  %s842_s6 = scalar_lea.vmem %s886_s3, %s535_s14 }
   0xe   : > { %v604_v0 = vld [vmem:[%s601_s17] sm:$0xff]  ;;  %v607_v1 = vld [vmem:[%s601_s17 + $0x8] sm:$0xff]  ;;  %v610_v2 = vld [vmem:[%s601_s17 + $0x10] sm:$0xff] }
   0xf   : > { %v203_v3 = vadd.f32 %v607_v1, %v604_v0  ;;  %v615_v4 = vld [vmem:[%s601_s17 + $0x18] sm:$0xff]  ;;  %v619_v6 = vld [vmem:[%s601_s17 + $0x20] sm:$0xff]  ;;  %v623_v8 = vld [vmem:[%s601_s17 + $0x28] sm:$0xff] }
  0x10   : > { %v627_v10 = vld [vmem:[%s601_s17 + $0x30] sm:$0xff]  ;;  %v631_v12 = vld [vmem:[%s601_s17 + $0x38] sm:$0xff]  ;;  %v635_v14 = vld [vmem:[%s601_s17 + $0x40] sm:$0xff] }
  0x11   : > { %v204_v5 = vadd.f32 %v203_v3, %v610_v2  ;;  %v639_v16 = vld [vmem:[%s601_s17 + $0x48] sm:$0xff]  ;;  %v643_v18 = vld [vmem:[%s601_s17 + $0x50] sm:$0xff]  ;;  %v647_v20 = vld [vmem:[%s601_s17 + $0x58] sm:$0xff] }
  0x12   : > { %v651_v22 = vld [vmem:[%s601_s17 + $0x60] sm:$0xff]  ;;  %v655_v24 = vld [vmem:[%s601_s17 + $0x68] sm:$0xff]  ;;  %v659_v26 = vld [vmem:[%s601_s17 + $0x70] sm:$0xff] }
  0x13   : > { %v205_v7 = vadd.f32 %v204_v5, %v615_v4  ;;  %v663_v28 = vld [vmem:[%s601_s17 + $0x78] sm:$0xff]  ;;  %v667_v30 = vld [vmem:[%s601_s17 + $0x80] sm:$0xff]  ;;  %v671_v32 = vld [vmem:[%s601_s17 + $0x88] sm:$0xff] }
  0x14   : > { %v675_v34 = vld [vmem:[%s601_s17 + $0x90] sm:$0xff]  ;;  %v679_v36 = vld [vmem:[%s601_s17 + $0x98] sm:$0xff]  ;;  %v683_v38 = vld [vmem:[%s601_s17 + $0xa0] sm:$0xff] }
  0x15   : > { %v206_v9 = vadd.f32 %v205_v7, %v619_v6  ;;  %v687_v40 = vld [vmem:[%s601_s17 + $0xa8] sm:$0xff]  ;;  %v691_v42 = vld [vmem:[%s601_s17 + $0xb0] sm:$0xff]  ;;  %v695_v44 = vld [vmem:[%s601_s17 + $0xb8] sm:$0xff] }
  0x16   : > { %v699_v46 = vld [vmem:[%s601_s17 + $0xc0] sm:$0xff]  ;;  %v703_v48 = vld [vmem:[%s601_s17 + $0xc8] sm:$0xff]  ;;  %v707_v50 = vld [vmem:[%s601_s17 + $0xd0] sm:$0xff] }
  0x17   : > { %v207_v11 = vadd.f32 %v206_v9, %v623_v8  ;;  %v711_v52 = vld [vmem:[%s601_s17 + $0xd8] sm:$0xff]  ;;  %v715_v54 = vld [vmem:[%s601_s17 + $0xe0] sm:$0xff]  ;;  %v719_v56 = vld [vmem:[%s601_s17 + $0xe8] sm:$0xff] }
  0x18   : > { %v723_v58 = vld [vmem:[%s601_s17 + $0xf0] sm:$0xff]  ;;  %v727_v60 = vld [vmem:[%s601_s17 + $0xf8] sm:$0xff] }
  0x19   : > { %v208_v13 = vadd.f32 %v207_v11, %v627_v10 }
  0x1b   : > { %v209_v15 = vadd.f32 %v208_v13, %v631_v12 }
  0x1d   : > { %v210_v17 = vadd.f32 %v209_v15, %v635_v14 }
  0x1f   : > { %v211_v19 = vadd.f32 %v210_v17, %v639_v16 }
  0x21   : > { %v212_v21 = vadd.f32 %v211_v19, %v643_v18 }
  0x23   : > { %v213_v23 = vadd.f32 %v212_v21, %v647_v20 }
  0x25   : > { %v214_v25 = vadd.f32 %v213_v23, %v651_v22 }
  0x27   : > { %v215_v27 = vadd.f32 %v214_v25, %v655_v24 }
  0x29   : > { %v216_v29 = vadd.f32 %v215_v27, %v659_v26 }
  0x2b   : > { %v217_v31 = vadd.f32 %v216_v29, %v663_v28 }
  0x2d   : > { %v218_v33 = vadd.f32 %v217_v31, %v667_v30 }
  0x2f   : > { %v219_v35 = vadd.f32 %v218_v33, %v671_v32 }
  0x31   : > { %v220_v37 = vadd.f32 %v219_v35, %v675_v34 }
  0x33   : > { %v221_v39 = vadd.f32 %v220_v37, %v679_v36 }
  0x35   : > { %v222_v41 = vadd.f32 %v221_v39, %v683_v38 }
  0x37   : > { %v223_v43 = vadd.f32 %v222_v41, %v687_v40 }
  0x39   : > { %v224_v45 = vadd.f32 %v223_v43, %v691_v42 }
  0x3b   : > { %v225_v47 = vadd.f32 %v224_v45, %v695_v44 }
  0x3d   : > { %v226_v49 = vadd.f32 %v225_v47, %v699_v46 }
  0x3f   : > { %v227_v51 = vadd.f32 %v226_v49, %v703_v48 }
  0x41   : > { %v228_v53 = vadd.f32 %v227_v51, %v707_v50 }
  0x43   : > { %v229_v55 = vadd.f32 %v228_v53, %v711_v52 }
  0x45   : > { %v230_v57 = vadd.f32 %v229_v55, %v715_v54 }
  0x47   : > { %v231_v59 = vadd.f32 %v230_v57, %v719_v56 }
  0x49   : > { %v232_v61 = vadd.f32 %v231_v59, %v723_v58 }
  0x4b   : > { %v233_v62 = vadd.f32 %v232_v61, %v727_v60 }
  0x4d   : > { %234 = vadd.xlane.f32.xlu0 %v233_v62 }
  0xd6   : > { %v235_v63 = vpop.xlane.xlu0 %234 }
  0xd7   : > { %v236_v3 = vrot.slane %v235_v63, 4 }
  0xd9   : > { %v237_v5 = vadd.f32 %v236_v3, %v235_v63 }
  0xdb   : > { %v238_v7 = vrot.slane %v237_v5, 2 }
  0xdd   : > { %v239_v9 = vadd.f32 %v238_v7, %v237_v5 }
  0xdf   : > { %v240_v11 = vrot.slane %v239_v9, 1 }
  0xe1   : > { %v241_v13 = vadd.f32 %v240_v11, %v239_v9 }
  0xe3   : > { %537 = vpush %v241_v13 }
 0x114   : > { %s538_s18 = spop %537 }
 0x115   : > { %s731_s19 = smul.f32 3.0517578e-05, %s538_s18 }
 0x117   : > { %v734_v15 = vstv %s731_s19  ;;  %s349_s20 = smul.f32 %s731_s19, %s731_s19 }
 0x118   : > { %v245_v17 = vsub.f32 %v604_v0, %v734_v15  ;;  %v246_v19 = vsub.f32 %v607_v1, %v734_v15  ;;  %v247_v21 = vsub.f32 %v610_v2, %v734_v15  ;;  %v248_v27 = vsub.f32 %v615_v4, %v734_v15 }
 0x119   : > { %v249_v29 = vsub.f32 %v619_v6, %v734_v15  ;;  %v250_v35 = vsub.f32 %v623_v8, %v734_v15  ;;  %v251_v41 = vsub.f32 %v627_v10, %v734_v15  ;;  %v252_v47 = vsub.f32 %v631_v12, %v734_v15  ;;  %s350_s21 = smul.f32 0.0, %s349_s20 }
 0x11a   : > { %v277_v23 = vmul.f32 %v245_v17, %v245_v17  ;;  %v278_v25 = vmul.f32 %v246_v19, %v246_v19  ;;  %v279_v31 = vmul.f32 %v247_v21, %v247_v21  ;;  %v280_v37 = vmul.f32 %v248_v27, %v248_v27 }
 0x11b   : > { %v281_v43 = vmul.f32 %v249_v29, %v249_v29  ;;  %v282_v49 = vmul.f32 %v250_v35, %v250_v35  ;;  %v253_v53 = vsub.f32 %v635_v14, %v734_v15  ;;  %v283_v55 = vmul.f32 %v251_v41, %v251_v41 }
 0x11c   : > { %v309_v33 = vadd.f32 %v278_v25, %v277_v23  ;;  %v254_v59 = vsub.f32 %v639_v16, %v734_v15  ;;  %v284_v61 = vmul.f32 %v252_v47, %v252_v47  ;;  %v255_v63 = vsub.f32 %v643_v18, %v734_v15 }
 0x11d   : > { %v285_v3 = vmul.f32 %v253_v53, %v253_v53  ;;  %v256_v7 = vsub.f32 %v647_v20, %v734_v15  ;;  %v257_v13 = vsub.f32 %v651_v22, %v734_v15  ;;  %v258_v21 = vsub.f32 %v655_v24, %v734_v15 }
 0x11e   : > { %v310_v39 = vadd.f32 %v309_v33, %v279_v31  ;;  %v286_v9 = vmul.f32 %v254_v59, %v254_v59  ;;  %v287_v17 = vmul.f32 %v255_v63, %v255_v63  ;;  %v259_v27 = vsub.f32 %v659_v26, %v734_v15 }
 0x11f   : > { %v288_v23 = vmul.f32 %v256_v7, %v256_v7  ;;  %v289_v29 = vmul.f32 %v257_v13, %v257_v13  ;;  %v260_v33 = vsub.f32 %v663_v28, %v734_v15  ;;  %v290_v35 = vmul.f32 %v258_v21, %v258_v21 }
 0x120   : > { %v311_v45 = vadd.f32 %v310_v39, %v280_v37  ;;  %v261_v39 = vsub.f32 %v667_v30, %v734_v15  ;;  %v291_v41 = vmul.f32 %v259_v27, %v259_v27 }
 0x121   : > { %v292_v47 = vmul.f32 %v260_v33, %v260_v33 }
 0x122   : > { %v312_v51 = vadd.f32 %v311_v45, %v281_v43  ;;  %v262_v45 = vsub.f32 %v671_v32, %v734_v15  ;;  %v293_v53 = vmul.f32 %v261_v39, %v261_v39 }
 0x124   : > { %v313_v57 = vadd.f32 %v312_v51, %v282_v49  ;;  %v263_v51 = vsub.f32 %v675_v34, %v734_v15  ;;  %v294_v59 = vmul.f32 %v262_v45, %v262_v45 }
 0x126   : > { %v314_v62 = vadd.f32 %v313_v57, %v283_v55  ;;  %v264_v57 = vsub.f32 %v679_v36, %v734_v15  ;;  %v295_v63 = vmul.f32 %v263_v51, %v263_v51 }
 0x128   : > { %v315_v5 = vadd.f32 %v314_v62, %v284_v61  ;;  %v265_v62 = vsub.f32 %v683_v38, %v734_v15  ;;  %v296_v7 = vmul.f32 %v264_v57, %v264_v57 }
 0x12a   : > { %v316_v11 = vadd.f32 %v315_v5, %v285_v3  ;;  %v266_v5 = vsub.f32 %v687_v40, %v734_v15  ;;  %v297_v13 = vmul.f32 %v265_v62, %v265_v62 }
 0x12c   : > { %v317_v19 = vadd.f32 %v316_v11, %v286_v9  ;;  %v267_v11 = vsub.f32 %v691_v42, %v734_v15  ;;  %v298_v21 = vmul.f32 %v266_v5, %v266_v5 }
 0x12e   : > { %v318_v25 = vadd.f32 %v317_v19, %v287_v17  ;;  %v268_v19 = vsub.f32 %v695_v44, %v734_v15  ;;  %v299_v27 = vmul.f32 %v267_v11, %v267_v11 }
 0x130   : > { %v319_v31 = vadd.f32 %v318_v25, %v288_v23  ;;  %v269_v25 = vsub.f32 %v699_v46, %v734_v15  ;;  %v300_v33 = vmul.f32 %v268_v19, %v268_v19 }
 0x132   : > { %v320_v37 = vadd.f32 %v319_v31, %v289_v29  ;;  %v270_v31 = vsub.f32 %v703_v48, %v734_v15  ;;  %v301_v39 = vmul.f32 %v269_v25, %v269_v25 }
 0x134   : > { %v321_v43 = vadd.f32 %v320_v37, %v290_v35  ;;  %v271_v37 = vsub.f32 %v707_v50, %v734_v15  ;;  %v302_v45 = vmul.f32 %v270_v31, %v270_v31 }
 0x136   : > { %v322_v49 = vadd.f32 %v321_v43, %v291_v41  ;;  %v272_v43 = vsub.f32 %v711_v52, %v734_v15  ;;  %v303_v51 = vmul.f32 %v271_v37, %v271_v37 }
 0x138   : > { %v323_v55 = vadd.f32 %v322_v49, %v292_v47  ;;  %v273_v49 = vsub.f32 %v715_v54, %v734_v15  ;;  %v304_v57 = vmul.f32 %v272_v43, %v272_v43 }
 0x13a   : > { %v324_v61 = vadd.f32 %v323_v55, %v293_v53  ;;  %v274_v55 = vsub.f32 %v719_v56, %v734_v15  ;;  %v305_v62 = vmul.f32 %v273_v49, %v273_v49 }
 0x13c   : > { %v325_v3 = vadd.f32 %v324_v61, %v294_v59  ;;  %v275_v61 = vsub.f32 %v723_v58, %v734_v15  ;;  %v306_v5 = vmul.f32 %v274_v55, %v274_v55 }
 0x13e   : > { %v326_v9 = vadd.f32 %v325_v3, %v295_v63  ;;  %v276_v3 = vsub.f32 %v727_v60, %v734_v15 }
 0x140   : > { %v327_v17 = vadd.f32 %v326_v9, %v296_v7  ;;  %v307_v9 = vmul.f32 %v275_v61, %v275_v61 }
 0x142   : > { %v328_v23 = vadd.f32 %v327_v17, %v297_v13  ;;  %v308_v13 = vmul.f32 %v276_v3, %v276_v3 }
 0x144   : > { %v329_v29 = vadd.f32 %v328_v23, %v298_v21 }
 0x146   : > { %v330_v35 = vadd.f32 %v329_v29, %v299_v27 }
 0x148   : > { %v331_v41 = vadd.f32 %v330_v35, %v300_v33  ;;  %v564_v33 = vmov 0  }
 0x149   : > { %552 = vset.pattern.permute.xlu1 %v564_v33  ;;  %553 = vset.pattern.permute.xlu0 %v564_v33 }
 0x14a   : > { %v332_v47 = vadd.f32 %v331_v41, %v301_v39  ;;  %v357_v41 = vld [vmem:[%s884_s1] sm:$0xff] }
 0x14c   : > { %v333_v53 = vadd.f32 %v332_v47, %v302_v45  ;;  %v360_v47 = vld [vmem:[%s885_s2] sm:$0xff] }
 0x14e   : > { %v334_v59 = vadd.f32 %v333_v53, %v303_v51 }
 0x150   : > { %v335_v63 = vadd.f32 %v334_v59, %v304_v57 }
 0x152   : > { %v336_v7 = vadd.f32 %v335_v63, %v305_v62 }
 0x154   : > { %v337_v11 = vadd.f32 %v336_v7, %v306_v5 }
 0x156   : > { %v338_v17 = vadd.f32 %v337_v11, %v307_v9 }
 0x158   : > { %v339_v19 = vadd.f32 %v338_v17, %v308_v13 }
 0x15a   : > { %340 = vadd.xlane.f32.xlu0 %v339_v19 }
 0x1e3   : > { %v341_v21 = vpop.xlane.xlu0 %340 }
 0x1e4   : > { %v342_v23 = vrot.slane %v341_v21, 4 }
 0x1e6   : > { %v343_v25 = vadd.f32 %v342_v23, %v341_v21 }
 0x1e8   : > { %v344_v27 = vrot.slane %v343_v25, 2 }
 0x1ea   : > { %v345_v29 = vadd.f32 %v344_v27, %v343_v25 }
 0x1ec   : > { %v346_v31 = vrot.slane %v345_v29, 1 }
 0x1ee   : > { %v347_v35 = vadd.f32 %v346_v31, %v345_v29 }
 0x1f0   : > { %539 = vpush %v347_v35 }
 0x221   : > { %s540_s22 = spop %539 }
 0x222   : > { %s351_s23 = ssub.f32 %s540_s22, %s350_s21 }
 0x224   : > { %s352_s24 = smul.f32 3.0517578e-05, %s351_s23 }
 0x226   : > { %s353_s25 = sadd.f32 1e-05, %s352_s24 }
 0x228   : > { %v354_v37 = vstv %s353_s25 }
 0x229   : > { %554 = vrsqrt.f32 %v354_v37 }
 0x236   : > { %v555_v39 = vpop.eup %554 }
 0x237   : > { %541 = vpush %v555_v39 }
 0x268   : > { %s542_s28 = spop %541 }
 0x269   : > { %v358_v43 = vstv %s542_s28 }
 0x26a   : > { %v359_v45 = vmul.f32 %v358_v43, %v357_v41 }
 0x26c   : > { %v361_v49 = vmul.f32 %v359_v45, %v734_v15  ;;  %365 = vperm.xlu1 %552, %v359_v45  }
 0x26e   : > { %v362_v51 = vsub.f32 %v360_v47, %v361_v49 }
 0x270   : > { %402 = vperm.xlu1 %552, %v362_v51  }
 0x2e7   : > { %v366_v53 = vpop.permute.xlu1 %365 }
 0x2e8   : > { %v368_v55 = vmul.f32 %v366_v53, %v604_v0  ;;  %v369_v57 = vmul.f32 %v366_v53, %v607_v1  ;;  %v370_v59 = vmul.f32 %v366_v53, %v610_v2  ;;  %v371_v61 = vmul.f32 %v366_v53, %v615_v4 }
 0x2e9   : > { %v372_v62 = vmul.f32 %v366_v53, %v619_v6  ;;  %v373_v63 = vmul.f32 %v366_v53, %v623_v8  ;;  %v374_v3 = vmul.f32 %v366_v53, %v627_v10  ;;  %v375_v15 = vmul.f32 %v366_v53, %v631_v12 }
 0x2ea   : > { %v376_v5 = vmul.f32 %v366_v53, %v635_v14  ;;  %v377_v7 = vmul.f32 %v366_v53, %v639_v16  ;;  %v378_v0 = vmul.f32 %v366_v53, %v643_v18  ;;  %v379_v1 = vmul.f32 %v366_v53, %v647_v20 }
 0x2eb   : > { %v380_v2 = vmul.f32 %v366_v53, %v651_v22  ;;  %v381_v4 = vmul.f32 %v366_v53, %v655_v24  ;;  %v382_v6 = vmul.f32 %v366_v53, %v659_v26  ;;  %v383_v8 = vmul.f32 %v366_v53, %v663_v28  ;;  %v403_v9 = vpop.permute.xlu1 %402 }
 0x2ec   : > { %v384_v10 = vmul.f32 %v366_v53, %v667_v30  ;;  %v385_v12 = vmul.f32 %v366_v53, %v671_v32  ;;  %v386_v14 = vmul.f32 %v366_v53, %v675_v34  ;;  %v387_v16 = vmul.f32 %v366_v53, %v679_v36 }
 0x2ed   : > { %v388_v18 = vmul.f32 %v366_v53, %v683_v38  ;;  %v389_v20 = vmul.f32 %v366_v53, %v687_v40  ;;  %v390_v22 = vmul.f32 %v366_v53, %v691_v42  ;;  %v391_v24 = vmul.f32 %v366_v53, %v695_v44 }
 0x2ee   : > { %v392_v26 = vmul.f32 %v366_v53, %v699_v46  ;;  %v393_v28 = vmul.f32 %v366_v53, %v703_v48  ;;  %v394_v30 = vmul.f32 %v366_v53, %v707_v50  ;;  %v395_v32 = vmul.f32 %v366_v53, %v711_v52 }
 0x2ef   : > { %v396_v34 = vmul.f32 %v366_v53, %v715_v54  ;;  %v397_v36 = vmul.f32 %v366_v53, %v719_v56  ;;  %v398_v38 = vmul.f32 %v366_v53, %v723_v58  ;;  %v399_v40 = vmul.f32 %v366_v53, %v727_v60 }
 0x2f0   : > { %v405_v42 = vadd.f32 %v403_v9, %v368_v55  ;;  %v406_v44 = vadd.f32 %v403_v9, %v369_v57  ;;  %v407_v46 = vadd.f32 %v403_v9, %v370_v59  ;;  %v408_v48 = vadd.f32 %v403_v9, %v371_v61 }
 0x2f1   : > { %v409_v50 = vadd.f32 %v403_v9, %v372_v62  ;;  %v410_v52 = vadd.f32 %v403_v9, %v373_v63  ;;  %v411_v11 = vadd.f32 %v403_v9, %v374_v3  ;;  %v412_v54 = vadd.f32 %v403_v9, %v375_v15 }
 0x2f2   : > { %v413_v56 = vadd.f32 %v403_v9, %v376_v5  ;;  %v414_v13 = vadd.f32 %v403_v9, %v377_v7  ;;  %v415_v17 = vadd.f32 %v403_v9, %v378_v0  ;;  %v416_v58 = vadd.f32 %v403_v9, %v379_v1  ;;  %437 = vst [vmem:[%s842_s6] sm:$0xff] %v405_v42 }
 0x2f3   : > { %438 = vst [vmem:[%s842_s6 + $0x8] sm:$0xff] %v406_v44  ;;  %439 = vst [vmem:[%s842_s6 + $0x10] sm:$0xff] %v407_v46  ;;  %v417_v60 = vadd.f32 %v403_v9, %v380_v2  ;;  %v418_v19 = vadd.f32 %v403_v9, %v381_v4  ;;  %v419_v21 = vadd.f32 %v403_v9, %v382_v6 }
 0x2f4   : > { %440 = vst [vmem:[%s842_s6 + $0x18] sm:$0xff] %v408_v48  ;;  %v420_v23 = vadd.f32 %v403_v9, %v383_v8  ;;  %441 = vst [vmem:[%s842_s6 + $0x20] sm:$0xff] %v409_v50  ;;  %v421_v25 = vadd.f32 %v403_v9, %v384_v10  ;;  %v422_v27 = vadd.f32 %v403_v9, %v385_v12 }
 0x2f5   : > { %442 = vst [vmem:[%s842_s6 + $0x28] sm:$0xff] %v410_v52  ;;  %443 = vst [vmem:[%s842_s6 + $0x30] sm:$0xff] %v411_v11  ;;  %v423_v29 = vadd.f32 %v403_v9, %v386_v14  ;;  %v424_v31 = vadd.f32 %v403_v9, %v387_v16  ;;  %v425_v33 = vadd.f32 %v403_v9, %v388_v18 }
 0x2f6   : > { %444 = vst [vmem:[%s842_s6 + $0x38] sm:$0xff] %v412_v54  ;;  %445 = vst [vmem:[%s842_s6 + $0x40] sm:$0xff] %v413_v56  ;;  %v426_v35 = vadd.f32 %v403_v9, %v389_v20  ;;  %v427_v37 = vadd.f32 %v403_v9, %v390_v22  ;;  %v428_v39 = vadd.f32 %v403_v9, %v391_v24 }
 0x2f7   : > { %446 = vst [vmem:[%s842_s6 + $0x48] sm:$0xff] %v414_v13  ;;  %447 = vst [vmem:[%s842_s6 + $0x50] sm:$0xff] %v415_v17  ;;  %v429_v41 = vadd.f32 %v403_v9, %v392_v26  ;;  %v430_v43 = vadd.f32 %v403_v9, %v393_v28  ;;  %v431_v45 = vadd.f32 %v403_v9, %v394_v30 }
 0x2f8   : > { %448 = vst [vmem:[%s842_s6 + $0x58] sm:$0xff] %v416_v58  ;;  %449 = vst [vmem:[%s842_s6 + $0x60] sm:$0xff] %v417_v60  ;;  %v432_v47 = vadd.f32 %v403_v9, %v395_v32  ;;  %v433_v49 = vadd.f32 %v403_v9, %v396_v34  ;;  %v434_v51 = vadd.f32 %v403_v9, %v397_v36 }
 0x2f9   : > { %450 = vst [vmem:[%s842_s6 + $0x68] sm:$0xff] %v418_v19  ;;  %451 = vst [vmem:[%s842_s6 + $0x70] sm:$0xff] %v419_v21  ;;  %v435_v53 = vadd.f32 %v403_v9, %v398_v38  ;;  %v436_v55 = vadd.f32 %v403_v9, %v399_v40 }
 0x2fa   : > { %452 = vst [vmem:[%s842_s6 + $0x78] sm:$0xff] %v420_v23  ;;  %453 = vst [vmem:[%s842_s6 + $0x80] sm:$0xff] %v421_v25 }
 0x2fb   : > { %454 = vst [vmem:[%s842_s6 + $0x88] sm:$0xff] %v422_v27  ;;  %455 = vst [vmem:[%s842_s6 + $0x90] sm:$0xff] %v423_v29 }
 0x2fc   : > { %456 = vst [vmem:[%s842_s6 + $0x98] sm:$0xff] %v424_v31  ;;  %457 = vst [vmem:[%s842_s6 + $0xa0] sm:$0xff] %v425_v33 }
 0x2fd   : > { %458 = vst [vmem:[%s842_s6 + $0xa8] sm:$0xff] %v426_v35  ;;  %459 = vst [vmem:[%s842_s6 + $0xb0] sm:$0xff] %v427_v37 }
 0x2fe   : > { %460 = vst [vmem:[%s842_s6 + $0xb8] sm:$0xff] %v428_v39  ;;  %461 = vst [vmem:[%s842_s6 + $0xc0] sm:$0xff] %v429_v41 }
 0x2ff   : > { %462 = vst [vmem:[%s842_s6 + $0xc8] sm:$0xff] %v430_v43  ;;  %463 = vst [vmem:[%s842_s6 + $0xd0] sm:$0xff] %v431_v45 }
 0x300   : > { %464 = vst [vmem:[%s842_s6 + $0xd8] sm:$0xff] %v432_v47  ;;  %465 = vst [vmem:[%s842_s6 + $0xe0] sm:$0xff] %v433_v49 }
 0x301   : > { %466 = vst [vmem:[%s842_s6 + $0xe8] sm:$0xff] %v434_v51  ;;  %467 = vst [vmem:[%s842_s6 + $0xf0] sm:$0xff] %v435_v53 }
 0x302   : > { %468 = vst [vmem:[%s842_s6 + $0xf8] sm:$0xff] %v436_v55 }
 0x303 PF: > { %s13_s12 = sadd.s32 1, %s562_s12  }
 0x304   : > { %p10_p4 = scmp.ge.s32.totalorder %s13_s12, 4  }
 0x306   :  { %12 = sbr.rel (!%p10_p4) target bundleno = 1 (0x1), region = 62 }

// kernel: _lambda_.4
= control target key start
LH: loop header
LB: loop body
LE: loop exit
PB: predicated region body
PF: predicated region fallthrough
CT: control target
= control target key end

     0   :  { %s1197_s18 = smov 0   ;;  %s1199_s19 = smov 0   ;;  %s1604_s0 = inlined_call_operand.vmem [shape: f32[2,8,256], index: 0, kind: input, shape index: {}]   ;;  %s1605_s1 = inlined_call_operand.vmem [shape: f32[2,8,256], index: 1, kind: input, shape index: {}]   ;;  %s1606_s2 = inlined_call_operand.vmem [shape: f32[8,8,256], index: 2, kind: input, shape index: {}]   ;;  %s1607_s3 = inlined_call_operand.vmem [shape: f32[8,8,256], index: 3, kind: input, shape index: {}]   ;;  %s1608_s4 = inlined_call_operand.vmem [shape: f32[2,8,256], index: 4, kind: output, shape index: {0}]   ;;  %s1609_s5 = inlined_call_operand.vmem [shape: f32[2,8,256], index: 5, kind: output, shape index: {1}]  }
   0x1   :  { %s1201_s20 = smov 0  }
   0x2 LB: > { %s31_s21 = sadd.s32 1, %s1161_s19  ;;  %p1062_p0 = scmp.ge.s32.totalorder %s1165_s20, 1  ;;  %s1165_s20 = sphi %s1201_s20, %s16_s20   ;;  %s1161_s19 = sphi %s1199_s19, %s1617_s19   ;;  %s1157_s18 = sphi %s1197_s18, %s1616_s18  }
   0x3   : > { %p33_p1 = scmp.ge.s32.totalorder %s31_s21, 2  ;;  %p287_p2 = scmp.lt.s32.totalorder %s1165_s20, 3 }
   0x5   : > { %s1619_s21 = smov (%p33_p1, %s31_s21), 0  ;;  %p288_p3 = pnand %p1062_p0, %p287_p2 }
   0x7   : > { %291 = sbr.rel (%p288_p3) target bundleno = 74 (0x4a), region = 36 }
   0xc   : > { %p370_p4 = scmp.lt.s32.totalorder %s1157_s18, 1  ;;  %v460_v0 = vlaneseq  ;;  %v455_v3 = vld [vmem:[%s1606_s2] sm:$0xff]  ;;  %v1248_v12 = vld [vmem:[%s1606_s2 + $0x10] sm:$0xff]  ;;  %v456_v23 = vld [vmem:[%s1606_s2 + $0x8] sm:$0xff] }
   0xd   : > { %v457_v4 = vld [vmem:[%s1607_s3] sm:$0xff]  ;;  %v1259_v17 = vld [vmem:[%s1607_s3 + $0x10] sm:$0xff]  ;;  %v458_v24 = vld [vmem:[%s1607_s3 + $0x8] sm:$0xff] }
   0xe   : > { %s1621_s18 = smov (!%p370_p4, %s1157_s18), 1  ;;  %v461_v1 = vshrl.u32 %v460_v0, 7  ;;  %v1279_v28 = vld [vmem:[%s1606_s2 + $0x20] sm:$0xff]  ;;  %v1289_v32 = vld [vmem:[%s1606_s2 + $0x18] sm:$0xff]  ;;  %v1310_v41 = vld [vmem:[%s1606_s2 + $0x30] sm:$0xff] }
   0xf   : > { %s1215_s22 = sshll.u32 %s1621_s18, 4  ;;  %v1303_v39 = vld [vmem:[%s1607_s3 + $0x20] sm:$0xff]  ;;  %v1076_v50 = vld [vmem:[%s1607_s3 + $0x18] sm:$0xff]  ;;  %v1335_v55 = vld [vmem:[%s1606_s2 + $0x28] sm:$0xff] }
  0x10   : > { %v1217_v2 = vsub.s32 0, %v461_v1  ;;  %s1223_s25 = scalar_lea.vmem %s1604_s0, %s1215_s22  ;;  %s1229_s28 = scalar_lea.vmem %s1605_s1, %s1215_s22  ;;  %v1237_v5 = vsub.s32 1, %v461_v1  ;;  %v1342_v58 = vld [vmem:[%s1607_s3 + $0x30] sm:$0xff]  ;;  %v1347_v59 = vld [vmem:[%s1606_s2 + $0x40] sm:$0xff] }
  0x11   : > { %v453_v6 = vld [vmem:[%s1223_s25] ss:$8 sm:$0x3]  ;;  %v1071_v10 = vld [vmem:[%s1223_s25 + $0x1] ss:$8 sm:$0x3]  ;;  %s1556_s7 = scalar_lea.vmem %s1608_s4, %s1215_s22  ;;  %s439_s12 = scalar_lea.vmem %s1609_s5, %s1215_s22 }
  0x12   : > { %v454_v7 = vld [vmem:[%s1229_s28] ss:$8 sm:$0x3]  ;;  %v463_v8 = vrot.slane %v453_v6, %v1217_v2  ;;  %v1072_v11 = vld [vmem:[%s1229_s28 + $0x1] ss:$8 sm:$0x3]  ;;  %v1251_v13 = vrot.slane %v1071_v10, %v1217_v2  ;;  %v467_v19 = vrot.slane %v453_v6, %v1237_v5  ;;  %v515_v29 = vrot.slane %v1071_v10, %v1237_v5 }
  0x13   : > { %v478_v9 = vrot.slane %v454_v7, %v1217_v2  ;;  %v1254_v14 = vrot.slane %v1072_v11, %v1217_v2  ;;  %v1077_v18 = vld [vmem:[%s1223_s25 + $0x2] ss:$8 sm:$0x3]  ;;  %v482_v20 = vrot.slane %v454_v7, %v1237_v5  ;;  %v1083_v22 = vld [vmem:[%s1223_s25 + $0x3] ss:$8 sm:$0x3]  ;;  %v1298_v38 = vrot.slane %v1072_v11, %v1237_v5 }
  0x14   : > { %v470_v15 = vmul.f32 %v463_v8, %v455_v3  ;;  %v1078_v21 = vld [vmem:[%s1229_s28 + $0x2] ss:$8 sm:$0x3]  ;;  %v518_v26 = vmul.f32 %v1248_v12, %v1251_v13  ;;  %v1283_v30 = vrot.slane %v1077_v18, %v1217_v2  ;;  %v1084_v31 = vld [vmem:[%s1229_s28 + $0x3] ss:$8 sm:$0x3]  ;;  %v1295_v35 = vrot.slane %v1083_v22, %v1217_v2 }
  0x15   : > { %v485_v16 = vmul.f32 %v478_v9, %v457_v4  ;;  %v533_v27 = vmul.f32 %v1259_v17, %v1254_v14  ;;  %v1292_v34 = vrot.slane %v1078_v21, %v1217_v2  ;;  %v471_v36 = vmul.f32 %v467_v19, %v456_v23  ;;  %v1089_v42 = vld [vmem:[%s1223_s25 + $0x4] ss:$8 sm:$0x3]  ;;  %v1095_v54 = vld [vmem:[%s1223_s25 + $0x5] ss:$8 sm:$0x3] }
  0x16   : > { %v486_v37 = vmul.f32 %v482_v20, %v458_v24  ;;  %v566_v40 = vmul.f32 %v1279_v28, %v1283_v30  ;;  %v1316_v45 = vrot.slane %v1084_v31, %v1217_v2  ;;  %v519_v46 = vmul.f32 %v1289_v32, %v515_v29  ;;  %v1090_v48 = vld [vmem:[%s1229_s28 + $0x4] ss:$8 sm:$0x3]  ;;  %v1096_v60 = vld [vmem:[%s1229_s28 + $0x5] ss:$8 sm:$0x3] }
  0x17   : > { %v487_v25 = vsub.f32 %v470_v15, %v485_v16  ;;  %v581_v44 = vmul.f32 %v1303_v39, %v1292_v34  ;;  %v1320_v47 = vrot.slane %v1077_v18, %v1237_v5  ;;  %v489_v49 = vmul.f32 %v463_v8, %v457_v4  ;;  %v1361_v4 = vld [vmem:[%s1607_s3 + $0x40] sm:$0xff]  ;;  %v1379_v16 = vld [vmem:[%s1606_s2 + $0x50] sm:$0xff] }
  0x18   : > { %v614_v52 = vmul.f32 %v1310_v41, %v1295_v35  ;;  %v1329_v53 = vrot.slane %v1089_v42, %v1217_v2  ;;  %v1337_v56 = vmul.f32 %v467_v19, %v458_v24  ;;  %v493_v57 = vmul.f32 %v478_v9, %v455_v3  ;;  %v1367_v7 = vld [vmem:[%s1223_s25 + $0x6] ss:$8 sm:$0x3] }
  0x19   : > { %v520_v33 = vadd.f32 %v518_v26, %v487_v25  ;;  %v488_v61 = vsub.f32 %v471_v36, %v486_v37  ;;  %v534_v62 = vmul.f32 %v1076_v50, %v1298_v38  ;;  %v1351_v63 = vmul.f32 %v482_v20, %v456_v23  ;;  %v1387_v19 = vld [vmem:[%s1607_s3 + $0x28] sm:$0xff]  ;;  %v1392_v20 = vld [vmem:[%s1606_s2 + $0x38] sm:$0xff] }
  0x1a   : > { %v629_v1 = vmul.f32 %v1342_v58, %v1316_v45  ;;  %v1356_v3 = vrot.slane %v1090_v48, %v1217_v2  ;;  %v1364_v6 = vrot.slane %v1095_v54, %v1217_v2  ;;  %v567_v9 = vmul.f32 %v1335_v55, %v1320_v47  ;;  %v1102_v24 = vld [vmem:[%s1229_s28 + $0x6] ss:$8 sm:$0x3]  ;;  %v1401_v25 = vld [vmem:[%s1223_s25 + $0x7] ss:$8 sm:$0x3] }
  0x1b   : > { %v535_v43 = vsub.f32 %v520_v33, %v533_v27  ;;  %v521_v8 = vadd.f32 %v519_v46, %v488_v61  ;;  %v1372_v10 = vrot.slane %v1078_v21, %v1237_v5  ;;  %v662_v15 = vmul.f32 %v1347_v59, %v1329_v53 }
  0x1c   : > { %v1382_v18 = vrot.slane %v1096_v60, %v1217_v2  ;;  %v1395_v21 = vrot.slane %v1083_v22, %v1237_v5  ;;  %v537_v23 = vmul.f32 %v1259_v17, %v1251_v13  ;;  %v1406_v33 = vrot.slane %v1084_v31, %v1237_v5  ;;  %v1417_v13 = vld [vmem:[%s1607_s3 + $0x50] sm:$0xff]  ;;  %v1427_v31 = vld [vmem:[%s1229_s28 + $0x7] ss:$8 sm:$0x3] }
  0x1d   : > { %v568_v51 = vadd.f32 %v566_v40, %v535_v43  ;;  %v536_v26 = vsub.f32 %v521_v8, %v534_v62  ;;  %v582_v27 = vmul.f32 %v1387_v19, %v1372_v10  ;;  %v538_v36 = vmul.f32 %v1076_v50, %v515_v29  ;;  %v1424_v29 = vld [vmem:[%s1606_s2 + $0x60] sm:$0xff]  ;;  %v1446_v62 = vld [vmem:[%s1607_s3 + $0x38] sm:$0xff] }
  0x1e   : > { %v677_v40 = vmul.f32 %v1361_v4, %v1356_v3  ;;  %v1412_v22 = vrot.slane %v1367_v7, %v1217_v2  ;;  %v710_v17 = vmul.f32 %v1379_v16, %v1364_v6  ;;  %1612 = vst [vmem:[#allocation4_spill] sm:$0xff] %v1424_v29  ;;  %v1432_v46 = vrot.slane %v1089_v42, %v1237_v5  ;;  %v1451_v42 = vld [vmem:[%s1606_s2 + $0x48] sm:$0xff] }
  0x1f   : > { %v583_v0 = vsub.f32 %v568_v51, %v581_v44  ;;  %v569_v43 = vadd.f32 %v567_v9, %v536_v26  ;;  %v615_v44 = vmul.f32 %v1392_v20, %v1395_v21  ;;  %v725_v51 = vmul.f32 %v1417_v13, %v1382_v18 }
  0x20   : > { %v1441_v61 = vrot.slane %v1401_v25, %v1217_v2  ;;  %v1456_v8 = vrot.slane %v1090_v48, %v1237_v5  ;;  %v495_v9 = vadd.f32 %v493_v57, %v489_v49  ;;  %v1462_v26 = vrot.slane %v1427_v31, %v1217_v2  ;;  %v1475_v48 = vld [vmem:[%s1606_s2 + $0x70] sm:$0xff] }
  0x21   : > { %v616_v11 = vadd.f32 %v614_v52, %v583_v0  ;;  %v1437_v52 = vrot.slane %v1102_v24, %v1217_v2  ;;  %v584_v0 = vsub.f32 %v569_v43, %v582_v27  ;;  %v1470_v27 = vld [vmem:[%s1607_s3 + $0x60] sm:$0xff]  ;;  %v663_v57 = vmul.f32 %v1451_v42, %v1432_v46  ;;  %v1482_v2 = vld [vmem:[%s1606_s2 + $0x58] sm:$0xff] }
  0x23   : > { %v631_v37 = vsub.f32 %v616_v11, %v629_v1  ;;  %1613 = vst [vmem:[#allocation5_spill] sm:$0xff] %v1437_v52  ;;  %v630_v1 = vmul.f32 %v1446_v62, %v1406_v33  ;;  %v617_v49 = vadd.f32 %v615_v44, %v584_v0  ;;  %v1094_v44 = vld [vmem:[%s1607_s3 + $0x48] sm:$0xff]  ;;  %v1492_v0 = vrot.slane %v1096_v60, %v1237_v5 }
  0x24   : > { %v806_v60 = vmul.f32 %v1475_v48, %v1441_v61 }
  0x25   : > { %v664_v50 = vadd.f32 %v662_v15, %v631_v37  ;;  %v758_v15 = vmul.f32 %v1424_v29, %v1412_v22  ;;  %v1465_v37 = vrot.slane %v1095_v54, %v1237_v5  ;;  %v539_v54 = vadd.f32 %v537_v23, %v495_v9  ;;  %v1499_v23 = vld [vmem:[%s1607_s3 + $0x70] sm:$0xff] }
  0x26   : > { %v585_v29 = vmul.f32 %v1303_v39, %v1283_v30  ;;  %v589_v9 = vmul.f32 %v1279_v28, %v1292_v34  ;;  %v633_v34 = vmul.f32 %v1342_v58, %v1295_v35  ;;  %v542_v35 = vmul.f32 %v1289_v32, %v1298_v38  ;;  %v1106_v32 = vld [vmem:[%s1607_s3 + $0x68] sm:$0xff]  ;;  %v1110_v38 = vld [vmem:[%s1606_s2 + $0x78] sm:$0xff] }
  0x27   : > { %v679_v11 = vsub.f32 %v664_v50, %v677_v40  ;;  %v541_v40 = vmul.f32 %v1248_v12, %v1254_v14  ;;  %v773_v50 = vmul.f32 %v1470_v27, %v1437_v52  ;;  %v632_v12 = vsub.f32 %v617_v49, %v630_v1  ;;  %v1100_v1 = vld [vmem:[%s1607_s3 + $0x58] sm:$0xff] }
  0x28   : > { %v678_v14 = vmul.f32 %v1094_v44, %v1456_v8  ;;  %v821_v52 = vmul.f32 %v1499_v23, %v1462_v26  ;;  %v711_v30 = vmul.f32 %v1482_v2, %v1465_v37  ;;  %v1515_v49 = vrot.slane %v1367_v7, %v1237_v5 }
  0x29   : > { %v712_v43 = vadd.f32 %v710_v17, %v679_v11  ;;  %v543_v17 = vadd.f32 %v541_v40, %v539_v54  ;;  %v665_v39 = vadd.f32 %v663_v57, %v632_v12  ;;  %v726_v54 = vmul.f32 %v1100_v1, %v1492_v0  ;;  %v1523_v40 = vld [vmem:[%s1606_s2 + $0x68] sm:$0xff] }
  0x2a   : > { %v1526_v57 = vrot.slane %v1102_v24, %v1237_v5  ;;  %v586_v24 = vmul.f32 %v1387_v19, %v1320_v47  ;;  %v818_v47 = vrot.slane %v1427_v31, %v1237_v5 }
  0x2b   : > { %v727_v11 = vsub.f32 %v712_v43, %v725_v51  ;;  %v587_v28 = vadd.f32 %v585_v29, %v543_v17  ;;  %v496_v43 = vadd.f32 %v1351_v63, %v1337_v56  ;;  %v680_v7 = vsub.f32 %v665_v39, %v678_v14 }
  0x2c   : > { %v637_v29 = vmul.f32 %v1310_v41, %v1316_v45  ;;  %v759_v56 = vmul.f32 %v1523_v40, %v1515_v49  ;;  %v681_v41 = vmul.f32 %v1361_v4, %v1329_v53  ;;  %v774_v4 = vmul.f32 %v1106_v32, %v1526_v57 }
  0x2d   : > { %v760_v51 = vadd.f32 %v758_v15, %v727_v11  ;;  %v591_v12 = vadd.f32 %v589_v9, %v587_v28  ;;  %v803_v15 = vrot.slane %v1401_v25, %v1237_v5  ;;  %v540_v17 = vadd.f32 %v538_v36, %v496_v43 }
  0x2e   : > { %v713_v11 = vadd.f32 %v711_v30, %v680_v7  ;;  %v590_v25 = vmul.f32 %v1335_v55, %v1372_v10  ;;  %v634_v5 = vmul.f32 %v1446_v62, %v1395_v21  ;;  %v1112_v30 = vld [vmem:[%s1607_s3 + $0x78] sm:$0xff]  ;;  %v733_v21 = vmul.f32 %v1379_v16, %v1382_v18  ;;  %v1614_v7 = vld [vmem:[#allocation5_spill] sm:$0xff] }
  0x2f   : > { %v775_v58 = vsub.f32 %v760_v51, %v773_v50  ;;  %v635_v63 = vadd.f32 %v633_v34, %v591_v12  ;;  %v544_v19 = vadd.f32 %v542_v35, %v540_v17  ;;  %v685_v50 = vmul.f32 %v1347_v59, %v1356_v3  ;;  %v1615_v12 = vld [vmem:[#allocation4_spill] sm:$0xff] }
  0x30   : > { %v728_v53 = vsub.f32 %v713_v11, %v726_v54  ;;  %v807_v55 = vmul.f32 %v1110_v38, %v803_v15  ;;  %v638_v59 = vmul.f32 %v1392_v20, %v1406_v33  ;;  %v682_v34 = vmul.f32 %v1094_v44, %v1432_v46 }
  0x31   : > { %v808_v45 = vadd.f32 %v806_v60, %v775_v58  ;;  %v639_v36 = vadd.f32 %v637_v29, %v635_v63  ;;  %v588_v9 = vadd.f32 %v586_v24, %v544_v19  ;;  %v729_v60 = vmul.f32 %v1417_v13, %v1364_v6 }
  0x32   : > { %v761_v31 = vadd.f32 %v759_v56, %v728_v53  ;;  %v777_v51 = vmul.f32 %v1470_v27, %v1412_v22  ;;  %v686_v43 = vmul.f32 %v1451_v42, %v1456_v8  ;;  %v781_v29 = vmul.f32 %v1615_v12, %v1614_v7 }
  0x33   : > { %v823_v14 = vsub.f32 %v808_v45, %v821_v52  ;;  %v683_v10 = vadd.f32 %v681_v41, %v639_v36  ;;  %v592_v39 = vadd.f32 %v590_v25, %v588_v9  ;;  %v822_v52 = vmul.f32 %v1112_v30, %v818_v47 }
  0x34   : > { %v776_v3 = vsub.f32 %v761_v31, %v774_v4  ;;  %v730_v16 = vmul.f32 %v1100_v1, %v1465_v37  ;;  %v825_v46 = vmul.f32 %v1499_v23, %v1441_v61  ;;  %v734_v22 = vmul.f32 %v1482_v2, %v1492_v0 }
  0x35   : > { %840 = vst [vmem:[%s1556_s7] sm:$0xff] %v823_v14  ;;  %v687_v28 = vadd.f32 %v685_v50, %v683_v10  ;;  %v636_v62 = vadd.f32 %v634_v5, %v592_v39  ;;  %v829_v42 = vmul.f32 %v1475_v48, %v1462_v26  ;;  %v778_v58 = vmul.f32 %v1106_v32, %v1515_v49 }
  0x36   : > { %v809_v6 = vadd.f32 %v807_v55, %v776_v3  ;;  %v782_v61 = vmul.f32 %v1523_v40, %v1526_v57  ;;  %v826_v24 = vmul.f32 %v1112_v30, %v803_v15  ;;  %v830_v0 = vmul.f32 %v1110_v38, %v818_v47 }
  0x37   : > { %v731_v13 = vadd.f32 %v729_v60, %v687_v28  ;;  %v640_v54 = vadd.f32 %v638_v59, %v636_v62 }
  0x38   : > { %v824_v20 = vsub.f32 %v809_v6, %v822_v52 }
  0x39   : > { %v735_v33 = vadd.f32 %v733_v21, %v731_v13  ;;  %v684_v35 = vadd.f32 %v682_v34, %v640_v54 }
  0x3a   : > { %841 = vst [vmem:[%s1556_s7 + $0x8] sm:$0xff] %v824_v20 }
  0x3b   : > { %v779_v18 = vadd.f32 %v777_v51, %v735_v33  ;;  %v688_v44 = vadd.f32 %v686_v43, %v684_v35 }
  0x3d   : > { %v783_v27 = vadd.f32 %v781_v29, %v779_v18  ;;  %v732_v8 = vadd.f32 %v730_v16, %v688_v44 }
  0x3f   : > { %v827_v17 = vadd.f32 %v825_v46, %v783_v27  ;;  %v736_v37 = vadd.f32 %v734_v22, %v732_v8 }
  0x41   : > { %v831_v23 = vadd.f32 %v829_v42, %v827_v17  ;;  %v780_v1 = vadd.f32 %v778_v58, %v736_v37 }
  0x43   : > { %842 = vst [vmem:[%s439_s12] sm:$0xff] %v831_v23  ;;  %v784_v2 = vadd.f32 %v782_v61, %v780_v1 }
  0x45   : > { %v828_v11 = vadd.f32 %v826_v24, %v784_v2 }
  0x47   : > { %v832_v26 = vadd.f32 %v830_v0, %v828_v11 }
  0x49   : > { %843 = vst [vmem:[%s439_s12 + $0x8] sm:$0xff] %v832_v26 }
  0x4a PF: > { %s16_s20 = sadd.s32 1, %s1165_s20   ;;  %s1616_s18 = smov %s1161_s19 }
  0x4b   : > { %p13_p5 = scmp.ge.s32.totalorder %s16_s20, 4   ;;  %s1617_s19 = smov %s1619_s21 }
  0x4d   :  { %15 = sbr.rel (!%p13_p5) target bundleno = 2 (0x2), region = 123 }

// kernel: reverse.1
= control target key start
LH: loop header
LB: loop body
LE: loop exit
PB: predicated region body
PF: predicated region fallthrough
CT: control target
= control target key end

     0   :  { %s2696_s0 = inlined_call_operand.vmem [shape: f32[2,8,16,16,7], index: 0, kind: input, shape index: {}]   ;;  %s2697_s1 = inlined_call_operand.vmem [shape: f32[2,8,16,16,7], index: 1, kind: output, shape index: {}]  }
   0x1   :  { %v896_v0 = vld [vmem:[%s2696_s0 + $0x60] sm:$0xff]  ;;  %v899_v2 = vld [vmem:[%s2696_s0 + $0xd0] sm:$0xff] }
   0x2   :  { %v897_v1 = vld [vmem:[%s2696_s0 + $0x3e0] sm:$0xff]  ;;  %4 = vst [vmem:[%s2697_s1] sm:$0xff] %v896_v0  ;;  %900 = vst [vmem:[%s2697_s1 + $0x70] sm:$0xff] %v899_v2  ;;  %v901_v3 = vld [vmem:[%s2696_s0 + $0x450] sm:$0xff] }
   0x3   :  { %898 = vst [vmem:[%s2697_s1 + $0x380] sm:$0xff] %v897_v1  ;;  %v903_v4 = vld [vmem:[%s2696_s0 + $0x140] sm:$0xff]  ;;  %902 = vst [vmem:[%s2697_s1 + $0x3f0] sm:$0xff] %v901_v3  ;;  %v907_v6 = vld [vmem:[%s2696_s0 + $0x1b0] sm:$0xff] }
   0x4   :  { %v905_v5 = vld [vmem:[%s2696_s0 + $0x4c0] sm:$0xff]  ;;  %904 = vst [vmem:[%s2697_s1 + $0xe0] sm:$0xff] %v903_v4  ;;  %v909_v7 = vld [vmem:[%s2696_s0 + $0x530] sm:$0xff]  ;;  %908 = vst [vmem:[%s2697_s1 + $0x150] sm:$0xff] %v907_v6 }
   0x5   :  { %906 = vst [vmem:[%s2697_s1 + $0x460] sm:$0xff] %v905_v5  ;;  %v911_v8 = vld [vmem:[%s2696_s0 + $0x220] sm:$0xff]  ;;  %910 = vst [vmem:[%s2697_s1 + $0x4d0] sm:$0xff] %v909_v7  ;;  %v915_v10 = vld [vmem:[%s2696_s0 + $0x290] sm:$0xff] }
   0x6   :  { %912 = vst [vmem:[%s2697_s1 + $0x1c0] sm:$0xff] %v911_v8  ;;  %v913_v9 = vld [vmem:[%s2696_s0 + $0x5a0] sm:$0xff]  ;;  %v917_v11 = vld [vmem:[%s2696_s0 + $0x610] sm:$0xff]  ;;  %916 = vst [vmem:[%s2697_s1 + $0x230] sm:$0xff] %v915_v10 }
   0x7   :  { %914 = vst [vmem:[%s2697_s1 + $0x540] sm:$0xff] %v913_v9  ;;  %918 = vst [vmem:[%s2697_s1 + $0x5b0] sm:$0xff] %v917_v11  ;;  %v919_v12 = vld [vmem:[%s2696_s0 + $0x300] sm:$0xff]  ;;  %v923_v14 = vld [vmem:[%s2696_s0 + $0x370] sm:$0xff] }
   0x8   :  { %v921_v13 = vld [vmem:[%s2696_s0 + $0x680] sm:$0xff]  ;;  %920 = vst [vmem:[%s2697_s1 + $0x2a0] sm:$0xff] %v919_v12  ;;  %924 = vst [vmem:[%s2697_s1 + $0x310] sm:$0xff] %v923_v14  ;;  %v925_v15 = vld [vmem:[%s2696_s0 + $0x6f0] sm:$0xff] }
   0x9   :  { %922 = vst [vmem:[%s2697_s1 + $0x620] sm:$0xff] %v921_v13  ;;  %v927_v16 = vld [vmem:[%s2696_s0 + $0x50] sm:$0xff]  ;;  %926 = vst [vmem:[%s2697_s1 + $0x690] sm:$0xff] %v925_v15  ;;  %v931_v18 = vld [vmem:[%s2696_s0 + $0xc0] sm:$0xff] }
   0xa   :  { %v929_v17 = vld [vmem:[%s2696_s0 + $0x3d0] sm:$0xff]  ;;  %928 = vst [vmem:[%s2697_s1 + $0x10] sm:$0xff] %v927_v16  ;;  %v933_v19 = vld [vmem:[%s2696_s0 + $0x440] sm:$0xff]  ;;  %932 = vst [vmem:[%s2697_s1 + $0x80] sm:$0xff] %v931_v18 }
   0xb   :  { %930 = vst [vmem:[%s2697_s1 + $0x390] sm:$0xff] %v929_v17  ;;  %v935_v20 = vld [vmem:[%s2696_s0 + $0x130] sm:$0xff]  ;;  %934 = vst [vmem:[%s2697_s1 + $0x400] sm:$0xff] %v933_v19  ;;  %v939_v22 = vld [vmem:[%s2696_s0 + $0x1a0] sm:$0xff] }
   0xc   :  { %936 = vst [vmem:[%s2697_s1 + $0xf0] sm:$0xff] %v935_v20  ;;  %v937_v21 = vld [vmem:[%s2696_s0 + $0x4b0] sm:$0xff]  ;;  %v941_v23 = vld [vmem:[%s2696_s0 + $0x520] sm:$0xff]  ;;  %940 = vst [vmem:[%s2697_s1 + $0x160] sm:$0xff] %v939_v22 }
   0xd   :  { %938 = vst [vmem:[%s2697_s1 + $0x470] sm:$0xff] %v937_v21  ;;  %942 = vst [vmem:[%s2697_s1 + $0x4e0] sm:$0xff] %v941_v23  ;;  %v943_v24 = vld [vmem:[%s2696_s0 + $0x210] sm:$0xff]  ;;  %v947_v26 = vld [vmem:[%s2696_s0 + $0x280] sm:$0xff] }
   0xe   :  { %v945_v25 = vld [vmem:[%s2696_s0 + $0x590] sm:$0xff]  ;;  %944 = vst [vmem:[%s2697_s1 + $0x1d0] sm:$0xff] %v943_v24  ;;  %948 = vst [vmem:[%s2697_s1 + $0x240] sm:$0xff] %v947_v26  ;;  %v949_v27 = vld [vmem:[%s2696_s0 + $0x600] sm:$0xff] }
   0xf   :  { %946 = vst [vmem:[%s2697_s1 + $0x550] sm:$0xff] %v945_v25  ;;  %v951_v28 = vld [vmem:[%s2696_s0 + $0x2f0] sm:$0xff]  ;;  %950 = vst [vmem:[%s2697_s1 + $0x5c0] sm:$0xff] %v949_v27  ;;  %v955_v30 = vld [vmem:[%s2696_s0 + $0x360] sm:$0xff] }
  0x10   :  { %v953_v29 = vld [vmem:[%s2696_s0 + $0x670] sm:$0xff]  ;;  %952 = vst [vmem:[%s2697_s1 + $0x2b0] sm:$0xff] %v951_v28  ;;  %v957_v31 = vld [vmem:[%s2696_s0 + $0x6e0] sm:$0xff]  ;;  %956 = vst [vmem:[%s2697_s1 + $0x320] sm:$0xff] %v955_v30 }
  0x11   :  { %954 = vst [vmem:[%s2697_s1 + $0x630] sm:$0xff] %v953_v29  ;;  %v959_v32 = vld [vmem:[%s2696_s0 + $0x40] sm:$0xff]  ;;  %958 = vst [vmem:[%s2697_s1 + $0x6a0] sm:$0xff] %v957_v31  ;;  %v963_v34 = vld [vmem:[%s2696_s0 + $0xb0] sm:$0xff] }
  0x12   :  { %960 = vst [vmem:[%s2697_s1 + $0x20] sm:$0xff] %v959_v32  ;;  %v961_v33 = vld [vmem:[%s2696_s0 + $0x3c0] sm:$0xff]  ;;  %v965_v35 = vld [vmem:[%s2696_s0 + $0x430] sm:$0xff]  ;;  %964 = vst [vmem:[%s2697_s1 + $0x90] sm:$0xff] %v963_v34 }
  0x13   :  { %962 = vst [vmem:[%s2697_s1 + $0x3a0] sm:$0xff] %v961_v33  ;;  %966 = vst [vmem:[%s2697_s1 + $0x410] sm:$0xff] %v965_v35  ;;  %v967_v36 = vld [vmem:[%s2696_s0 + $0x120] sm:$0xff]  ;;  %v971_v38 = vld [vmem:[%s2696_s0 + $0x190] sm:$0xff] }
  0x14   :  { %v969_v37 = vld [vmem:[%s2696_s0 + $0x4a0] sm:$0xff]  ;;  %968 = vst [vmem:[%s2697_s1 + $0x100] sm:$0xff] %v967_v36  ;;  %972 = vst [vmem:[%s2697_s1 + $0x170] sm:$0xff] %v971_v38  ;;  %v973_v39 = vld [vmem:[%s2696_s0 + $0x510] sm:$0xff] }
  0x15   :  { %970 = vst [vmem:[%s2697_s1 + $0x480] sm:$0xff] %v969_v37  ;;  %v975_v40 = vld [vmem:[%s2696_s0 + $0x200] sm:$0xff]  ;;  %974 = vst [vmem:[%s2697_s1 + $0x4f0] sm:$0xff] %v973_v39  ;;  %v979_v42 = vld [vmem:[%s2696_s0 + $0x270] sm:$0xff] }
  0x16   :  { %v977_v41 = vld [vmem:[%s2696_s0 + $0x580] sm:$0xff]  ;;  %976 = vst [vmem:[%s2697_s1 + $0x1e0] sm:$0xff] %v975_v40  ;;  %v981_v43 = vld [vmem:[%s2696_s0 + $0x5f0] sm:$0xff]  ;;  %980 = vst [vmem:[%s2697_s1 + $0x250] sm:$0xff] %v979_v42 }
  0x17   :  { %978 = vst [vmem:[%s2697_s1 + $0x560] sm:$0xff] %v977_v41  ;;  %v983_v44 = vld [vmem:[%s2696_s0 + $0x2e0] sm:$0xff]  ;;  %982 = vst [vmem:[%s2697_s1 + $0x5d0] sm:$0xff] %v981_v43  ;;  %v987_v46 = vld [vmem:[%s2696_s0 + $0x350] sm:$0xff] }
  0x18   :  { %984 = vst [vmem:[%s2697_s1 + $0x2c0] sm:$0xff] %v983_v44  ;;  %v985_v45 = vld [vmem:[%s2696_s0 + $0x660] sm:$0xff]  ;;  %v989_v47 = vld [vmem:[%s2696_s0 + $0x6d0] sm:$0xff]  ;;  %988 = vst [vmem:[%s2697_s1 + $0x330] sm:$0xff] %v987_v46 }
  0x19   :  { %986 = vst [vmem:[%s2697_s1 + $0x640] sm:$0xff] %v985_v45  ;;  %990 = vst [vmem:[%s2697_s1 + $0x6b0] sm:$0xff] %v989_v47  ;;  %v991_v48 = vld [vmem:[%s2696_s0 + $0x30] sm:$0xff]  ;;  %v995_v50 = vld [vmem:[%s2696_s0 + $0xa0] sm:$0xff] }
  0x1a   :  { %v993_v49 = vld [vmem:[%s2696_s0 + $0x3b0] sm:$0xff]  ;;  %992 = vst [vmem:[%s2697_s1 + $0x30] sm:$0xff] %v991_v48  ;;  %996 = vst [vmem:[%s2697_s1 + $0xa0] sm:$0xff] %v995_v50  ;;  %v997_v51 = vld [vmem:[%s2696_s0 + $0x420] sm:$0xff] }
  0x1b   :  { %994 = vst [vmem:[%s2697_s1 + $0x3b0] sm:$0xff] %v993_v49  ;;  %v999_v52 = vld [vmem:[%s2696_s0 + $0x110] sm:$0xff]  ;;  %998 = vst [vmem:[%s2697_s1 + $0x420] sm:$0xff] %v997_v51  ;;  %v1003_v54 = vld [vmem:[%s2696_s0 + $0x180] sm:$0xff] }
  0x1c   :  { %v1001_v53 = vld [vmem:[%s2696_s0 + $0x490] sm:$0xff]  ;;  %1000 = vst [vmem:[%s2697_s1 + $0x110] sm:$0xff] %v999_v52  ;;  %v1005_v55 = vld [vmem:[%s2696_s0 + $0x500] sm:$0xff]  ;;  %1004 = vst [vmem:[%s2697_s1 + $0x180] sm:$0xff] %v1003_v54 }
  0x1d   :  { %1002 = vst [vmem:[%s2697_s1 + $0x490] sm:$0xff] %v1001_v53  ;;  %v1007_v56 = vld [vmem:[%s2696_s0 + $0x1f0] sm:$0xff]  ;;  %1006 = vst [vmem:[%s2697_s1 + $0x500] sm:$0xff] %v1005_v55  ;;  %v1011_v58 = vld [vmem:[%s2696_s0 + $0x260] sm:$0xff] }
  0x1e   :  { %1008 = vst [vmem:[%s2697_s1 + $0x1f0] sm:$0xff] %v1007_v56  ;;  %v1009_v57 = vld [vmem:[%s2696_s0 + $0x570] sm:$0xff]  ;;  %v1013_v59 = vld [vmem:[%s2696_s0 + $0x5e0] sm:$0xff]  ;;  %1012 = vst [vmem:[%s2697_s1 + $0x260] sm:$0xff] %v1011_v58 }
  0x1f   :  { %1010 = vst [vmem:[%s2697_s1 + $0x570] sm:$0xff] %v1009_v57  ;;  %1014 = vst [vmem:[%s2697_s1 + $0x5e0] sm:$0xff] %v1013_v59  ;;  %v1015_v60 = vld [vmem:[%s2696_s0 + $0x2d0] sm:$0xff]  ;;  %v1019_v62 = vld [vmem:[%s2696_s0 + $0x340] sm:$0xff] }
  0x20   :  { %v1017_v61 = vld [vmem:[%s2696_s0 + $0x650] sm:$0xff]  ;;  %1016 = vst [vmem:[%s2697_s1 + $0x2d0] sm:$0xff] %v1015_v60  ;;  %1020 = vst [vmem:[%s2697_s1 + $0x340] sm:$0xff] %v1019_v62  ;;  %v1021_v63 = vld [vmem:[%s2696_s0 + $0x6c0] sm:$0xff] }
  0x21   :  { %1018 = vst [vmem:[%s2697_s1 + $0x650] sm:$0xff] %v1017_v61  ;;  %v1023_v0 = vld [vmem:[%s2696_s0 + $0x20] sm:$0xff]  ;;  %1022 = vst [vmem:[%s2697_s1 + $0x6c0] sm:$0xff] %v1021_v63  ;;  %v1027_v2 = vld [vmem:[%s2696_s0 + $0x90] sm:$0xff] }
  0x22   :  { %v1025_v1 = vld [vmem:[%s2696_s0 + $0x3a0] sm:$0xff]  ;;  %1024 = vst [vmem:[%s2697_s1 + $0x40] sm:$0xff] %v1023_v0  ;;  %v1029_v3 = vld [vmem:[%s2696_s0 + $0x410] sm:$0xff]  ;;  %1028 = vst [vmem:[%s2697_s1 + $0xb0] sm:$0xff] %v1027_v2 }
  0x23   :  { %1026 = vst [vmem:[%s2697_s1 + $0x3c0] sm:$0xff] %v1025_v1  ;;  %v1031_v4 = vld [vmem:[%s2696_s0 + $0x100] sm:$0xff]  ;;  %1030 = vst [vmem:[%s2697_s1 + $0x430] sm:$0xff] %v1029_v3  ;;  %v1035_v6 = vld [vmem:[%s2696_s0 + $0x170] sm:$0xff] }
  0x24   :  { %1032 = vst [vmem:[%s2697_s1 + $0x120] sm:$0xff] %v1031_v4  ;;  %v1033_v5 = vld [vmem:[%s2696_s0 + $0x480] sm:$0xff]  ;;  %v1037_v7 = vld [vmem:[%s2696_s0 + $0x4f0] sm:$0xff]  ;;  %1036 = vst [vmem:[%s2697_s1 + $0x190] sm:$0xff] %v1035_v6 }
  0x25   :  { %1034 = vst [vmem:[%s2697_s1 + $0x4a0] sm:$0xff] %v1033_v5  ;;  %1038 = vst [vmem:[%s2697_s1 + $0x510] sm:$0xff] %v1037_v7  ;;  %v1039_v8 = vld [vmem:[%s2696_s0 + $0x1e0] sm:$0xff]  ;;  %v1043_v10 = vld [vmem:[%s2696_s0 + $0x250] sm:$0xff] }
  0x26   :  { %v1041_v9 = vld [vmem:[%s2696_s0 + $0x560] sm:$0xff]  ;;  %1040 = vst [vmem:[%s2697_s1 + $0x200] sm:$0xff] %v1039_v8  ;;  %1044 = vst [vmem:[%s2697_s1 + $0x270] sm:$0xff] %v1043_v10  ;;  %v1045_v11 = vld [vmem:[%s2696_s0 + $0x5d0] sm:$0xff] }
  0x27   :  { %1042 = vst [vmem:[%s2697_s1 + $0x580] sm:$0xff] %v1041_v9  ;;  %v1047_v12 = vld [vmem:[%s2696_s0 + $0x2c0] sm:$0xff]  ;;  %1046 = vst [vmem:[%s2697_s1 + $0x5f0] sm:$0xff] %v1045_v11  ;;  %v1051_v14 = vld [vmem:[%s2696_s0 + $0x330] sm:$0xff] }
  0x28   :  { %v1049_v13 = vld [vmem:[%s2696_s0 + $0x640] sm:$0xff]  ;;  %1048 = vst [vmem:[%s2697_s1 + $0x2e0] sm:$0xff] %v1047_v12  ;;  %v1053_v15 = vld [vmem:[%s2696_s0 + $0x6b0] sm:$0xff]  ;;  %1052 = vst [vmem:[%s2697_s1 + $0x350] sm:$0xff] %v1051_v14 }
  0x29   :  { %1050 = vst [vmem:[%s2697_s1 + $0x660] sm:$0xff] %v1049_v13  ;;  %v1055_v16 = vld [vmem:[%s2696_s0 + $0x10] sm:$0xff]  ;;  %1054 = vst [vmem:[%s2697_s1 + $0x6d0] sm:$0xff] %v1053_v15  ;;  %v1059_v18 = vld [vmem:[%s2696_s0 + $0x80] sm:$0xff] }
  0x2a   :  { %1056 = vst [vmem:[%s2697_s1 + $0x50] sm:$0xff] %v1055_v16  ;;  %v1057_v17 = vld [vmem:[%s2696_s0 + $0x390] sm:$0xff]  ;;  %v1061_v19 = vld [vmem:[%s2696_s0 + $0x400] sm:$0xff]  ;;  %1060 = vst [vmem:[%s2697_s1 + $0xc0] sm:$0xff] %v1059_v18 }
  0x2b   :  { %1058 = vst [vmem:[%s2697_s1 + $0x3d0] sm:$0xff] %v1057_v17  ;;  %1062 = vst [vmem:[%s2697_s1 + $0x440] sm:$0xff] %v1061_v19  ;;  %v1063_v20 = vld [vmem:[%s2696_s0 + $0xf0] sm:$0xff]  ;;  %v1067_v22 = vld [vmem:[%s2696_s0 + $0x160] sm:$0xff] }
  0x2c   :  { %v1065_v21 = vld [vmem:[%s2696_s0 + $0x470] sm:$0xff]  ;;  %1064 = vst [vmem:[%s2697_s1 + $0x130] sm:$0xff] %v1063_v20  ;;  %1068 = vst [vmem:[%s2697_s1 + $0x1a0] sm:$0xff] %v1067_v22  ;;  %v1069_v23 = vld [vmem:[%s2696_s0 + $0x4e0] sm:$0xff] }
  0x2d   :  { %1066 = vst [vmem:[%s2697_s1 + $0x4b0] sm:$0xff] %v1065_v21  ;;  %v1071_v24 = vld [vmem:[%s2696_s0 + $0x1d0] sm:$0xff]  ;;  %1070 = vst [vmem:[%s2697_s1 + $0x520] sm:$0xff] %v1069_v23  ;;  %v1075_v26 = vld [vmem:[%s2696_s0 + $0x240] sm:$0xff] }
  0x2e   :  { %v1073_v25 = vld [vmem:[%s2696_s0 + $0x550] sm:$0xff]  ;;  %1072 = vst [vmem:[%s2697_s1 + $0x210] sm:$0xff] %v1071_v24  ;;  %v1077_v27 = vld [vmem:[%s2696_s0 + $0x5c0] sm:$0xff]  ;;  %1076 = vst [vmem:[%s2697_s1 + $0x280] sm:$0xff] %v1075_v26 }
  0x2f   :  { %1074 = vst [vmem:[%s2697_s1 + $0x590] sm:$0xff] %v1073_v25  ;;  %v1079_v28 = vld [vmem:[%s2696_s0 + $0x2b0] sm:$0xff]  ;;  %1078 = vst [vmem:[%s2697_s1 + $0x600] sm:$0xff] %v1077_v27  ;;  %v1083_v30 = vld [vmem:[%s2696_s0 + $0x320] sm:$0xff] }
  0x30   :  { %1080 = vst [vmem:[%s2697_s1 + $0x2f0] sm:$0xff] %v1079_v28  ;;  %v1081_v29 = vld [vmem:[%s2696_s0 + $0x630] sm:$0xff]  ;;  %v1085_v31 = vld [vmem:[%s2696_s0 + $0x6a0] sm:$0xff]  ;;  %1084 = vst [vmem:[%s2697_s1 + $0x360] sm:$0xff] %v1083_v30 }
  0x31   :  { %1082 = vst [vmem:[%s2697_s1 + $0x670] sm:$0xff] %v1081_v29  ;;  %1086 = vst [vmem:[%s2697_s1 + $0x6e0] sm:$0xff] %v1085_v31  ;;  %v385_v32 = vld [vmem:[%s2696_s0] sm:$0xff]  ;;  %v1090_v34 = vld [vmem:[%s2696_s0 + $0x70] sm:$0xff] }
  0x32   :  { %v1088_v33 = vld [vmem:[%s2696_s0 + $0x380] sm:$0xff]  ;;  %1087 = vst [vmem:[%s2697_s1 + $0x60] sm:$0xff] %v385_v32  ;;  %1091 = vst [vmem:[%s2697_s1 + $0xd0] sm:$0xff] %v1090_v34  ;;  %v1092_v35 = vld [vmem:[%s2696_s0 + $0x3f0] sm:$0xff] }
  0x33   :  { %1089 = vst [vmem:[%s2697_s1 + $0x3e0] sm:$0xff] %v1088_v33  ;;  %v1094_v36 = vld [vmem:[%s2696_s0 + $0xe0] sm:$0xff]  ;;  %1093 = vst [vmem:[%s2697_s1 + $0x450] sm:$0xff] %v1092_v35  ;;  %v1098_v38 = vld [vmem:[%s2696_s0 + $0x150] sm:$0xff] }
  0x34   :  { %v1096_v37 = vld [vmem:[%s2696_s0 + $0x460] sm:$0xff]  ;;  %1095 = vst [vmem:[%s2697_s1 + $0x140] sm:$0xff] %v1094_v36  ;;  %v1100_v39 = vld [vmem:[%s2696_s0 + $0x4d0] sm:$0xff]  ;;  %1099 = vst [vmem:[%s2697_s1 + $0x1b0] sm:$0xff] %v1098_v38 }
  0x35   :  { %1097 = vst [vmem:[%s2697_s1 + $0x4c0] sm:$0xff] %v1096_v37  ;;  %v1102_v40 = vld [vmem:[%s2696_s0 + $0x1c0] sm:$0xff]  ;;  %1101 = vst [vmem:[%s2697_s1 + $0x530] sm:$0xff] %v1100_v39  ;;  %v1106_v42 = vld [vmem:[%s2696_s0 + $0x230] sm:$0xff] }
  0x36   :  { %1103 = vst [vmem:[%s2697_s1 + $0x220] sm:$0xff] %v1102_v40  ;;  %v1104_v41 = vld [vmem:[%s2696_s0 + $0x540] sm:$0xff]  ;;  %v1108_v43 = vld [vmem:[%s2696_s0 + $0x5b0] sm:$0xff]  ;;  %1107 = vst [vmem:[%s2697_s1 + $0x290] sm:$0xff] %v1106_v42 }
  0x37   :  { %1105 = vst [vmem:[%s2697_s1 + $0x5a0] sm:$0xff] %v1104_v41  ;;  %1109 = vst [vmem:[%s2697_s1 + $0x610] sm:$0xff] %v1108_v43  ;;  %v1110_v44 = vld [vmem:[%s2696_s0 + $0x2a0] sm:$0xff]  ;;  %v1114_v46 = vld [vmem:[%s2696_s0 + $0x310] sm:$0xff] }
  0x38   :  { %v1112_v45 = vld [vmem:[%s2696_s0 + $0x620] sm:$0xff]  ;;  %1111 = vst [vmem:[%s2697_s1 + $0x300] sm:$0xff] %v1110_v44  ;;  %1115 = vst [vmem:[%s2697_s1 + $0x370] sm:$0xff] %v1114_v46  ;;  %v1116_v47 = vld [vmem:[%s2696_s0 + $0x690] sm:$0xff] }
  0x39   :  { %1113 = vst [vmem:[%s2697_s1 + $0x680] sm:$0xff] %v1112_v45  ;;  %v1118_v48 = vld [vmem:[%s2696_s0 + $0x68] sm:$0xff]  ;;  %1117 = vst [vmem:[%s2697_s1 + $0x6f0] sm:$0xff] %v1116_v47  ;;  %v1122_v50 = vld [vmem:[%s2696_s0 + $0xd8] sm:$0xff] }
  0x3a   :  { %v1120_v49 = vld [vmem:[%s2696_s0 + $0x3e8] sm:$0xff]  ;;  %1119 = vst [vmem:[%s2697_s1 + $0x8] sm:$0xff] %v1118_v48  ;;  %v1124_v51 = vld [vmem:[%s2696_s0 + $0x458] sm:$0xff]  ;;  %1123 = vst [vmem:[%s2697_s1 + $0x78] sm:$0xff] %v1122_v50 }
  0x3b   :  { %1121 = vst [vmem:[%s2697_s1 + $0x388] sm:$0xff] %v1120_v49  ;;  %v1126_v52 = vld [vmem:[%s2696_s0 + $0x148] sm:$0xff]  ;;  %1125 = vst [vmem:[%s2697_s1 + $0x3f8] sm:$0xff] %v1124_v51  ;;  %v1130_v54 = vld [vmem:[%s2696_s0 + $0x1b8] sm:$0xff] }
  0x3c   :  { %1127 = vst [vmem:[%s2697_s1 + $0xe8] sm:$0xff] %v1126_v52  ;;  %v1128_v53 = vld [vmem:[%s2696_s0 + $0x4c8] sm:$0xff]  ;;  %v1132_v55 = vld [vmem:[%s2696_s0 + $0x538] sm:$0xff]  ;;  %1131 = vst [vmem:[%s2697_s1 + $0x158] sm:$0xff] %v1130_v54 }
  0x3d   :  { %1129 = vst [vmem:[%s2697_s1 + $0x468] sm:$0xff] %v1128_v53  ;;  %1133 = vst [vmem:[%s2697_s1 + $0x4d8] sm:$0xff] %v1132_v55  ;;  %v1134_v56 = vld [vmem:[%s2696_s0 + $0x228] sm:$0xff]  ;;  %v1138_v58 = vld [vmem:[%s2696_s0 + $0x298] sm:$0xff] }
  0x3e   :  { %v1136_v57 = vld [vmem:[%s2696_s0 + $0x5a8] sm:$0xff]  ;;  %1135 = vst [vmem:[%s2697_s1 + $0x1c8] sm:$0xff] %v1134_v56  ;;  %1139 = vst [vmem:[%s2697_s1 + $0x238] sm:$0xff] %v1138_v58  ;;  %v1140_v59 = vld [vmem:[%s2696_s0 + $0x618] sm:$0xff] }
  0x3f   :  { %1137 = vst [vmem:[%s2697_s1 + $0x548] sm:$0xff] %v1136_v57  ;;  %v1142_v60 = vld [vmem:[%s2696_s0 + $0x308] sm:$0xff]  ;;  %1141 = vst [vmem:[%s2697_s1 + $0x5b8] sm:$0xff] %v1140_v59  ;;  %v1146_v62 = vld [vmem:[%s2696_s0 + $0x378] sm:$0xff] }
  0x40   :  { %v1144_v61 = vld [vmem:[%s2696_s0 + $0x688] sm:$0xff]  ;;  %1143 = vst [vmem:[%s2697_s1 + $0x2a8] sm:$0xff] %v1142_v60  ;;  %v1148_v63 = vld [vmem:[%s2696_s0 + $0x6f8] sm:$0xff]  ;;  %1147 = vst [vmem:[%s2697_s1 + $0x318] sm:$0xff] %v1146_v62 }
  0x41   :  { %1145 = vst [vmem:[%s2697_s1 + $0x628] sm:$0xff] %v1144_v61  ;;  %v1150_v0 = vld [vmem:[%s2696_s0 + $0x58] sm:$0xff]  ;;  %1149 = vst [vmem:[%s2697_s1 + $0x698] sm:$0xff] %v1148_v63  ;;  %v1154_v2 = vld [vmem:[%s2696_s0 + $0xc8] sm:$0xff] }
  0x42   :  { %1151 = vst [vmem:[%s2697_s1 + $0x18] sm:$0xff] %v1150_v0  ;;  %v1152_v1 = vld [vmem:[%s2696_s0 + $0x3d8] sm:$0xff]  ;;  %v1156_v3 = vld [vmem:[%s2696_s0 + $0x448] sm:$0xff]  ;;  %1155 = vst [vmem:[%s2697_s1 + $0x88] sm:$0xff] %v1154_v2 }
  0x43   :  { %1153 = vst [vmem:[%s2697_s1 + $0x398] sm:$0xff] %v1152_v1  ;;  %1157 = vst [vmem:[%s2697_s1 + $0x408] sm:$0xff] %v1156_v3  ;;  %v1158_v4 = vld [vmem:[%s2696_s0 + $0x138] sm:$0xff]  ;;  %v1162_v6 = vld [vmem:[%s2696_s0 + $0x1a8] sm:$0xff] }
  0x44   :  { %v1160_v5 = vld [vmem:[%s2696_s0 + $0x4b8] sm:$0xff]  ;;  %1159 = vst [vmem:[%s2697_s1 + $0xf8] sm:$0xff] %v1158_v4  ;;  %1163 = vst [vmem:[%s2697_s1 + $0x168] sm:$0xff] %v1162_v6  ;;  %v1164_v7 = vld [vmem:[%s2696_s0 + $0x528] sm:$0xff] }
  0x45   :  { %1161 = vst [vmem:[%s2697_s1 + $0x478] sm:$0xff] %v1160_v5  ;;  %v1166_v8 = vld [vmem:[%s2696_s0 + $0x218] sm:$0xff]  ;;  %1165 = vst [vmem:[%s2697_s1 + $0x4e8] sm:$0xff] %v1164_v7  ;;  %v1170_v10 = vld [vmem:[%s2696_s0 + $0x288] sm:$0xff] }
  0x46   :  { %v1168_v9 = vld [vmem:[%s2696_s0 + $0x598] sm:$0xff]  ;;  %1167 = vst [vmem:[%s2697_s1 + $0x1d8] sm:$0xff] %v1166_v8  ;;  %v1172_v11 = vld [vmem:[%s2696_s0 + $0x608] sm:$0xff]  ;;  %1171 = vst [vmem:[%s2697_s1 + $0x248] sm:$0xff] %v1170_v10 }
  0x47   :  { %1169 = vst [vmem:[%s2697_s1 + $0x558] sm:$0xff] %v1168_v9  ;;  %v1174_v12 = vld [vmem:[%s2696_s0 + $0x2f8] sm:$0xff]  ;;  %1173 = vst [vmem:[%s2697_s1 + $0x5c8] sm:$0xff] %v1172_v11  ;;  %v1178_v14 = vld [vmem:[%s2696_s0 + $0x368] sm:$0xff] }
  0x48   :  { %1175 = vst [vmem:[%s2697_s1 + $0x2b8] sm:$0xff] %v1174_v12  ;;  %v1176_v13 = vld [vmem:[%s2696_s0 + $0x678] sm:$0xff]  ;;  %v1180_v15 = vld [vmem:[%s2696_s0 + $0x6e8] sm:$0xff]  ;;  %1179 = vst [vmem:[%s2697_s1 + $0x328] sm:$0xff] %v1178_v14 }
  0x49   :  { %1177 = vst [vmem:[%s2697_s1 + $0x638] sm:$0xff] %v1176_v13  ;;  %1181 = vst [vmem:[%s2697_s1 + $0x6a8] sm:$0xff] %v1180_v15  ;;  %v1182_v16 = vld [vmem:[%s2696_s0 + $0x48] sm:$0xff]  ;;  %v1186_v18 = vld [vmem:[%s2696_s0 + $0xb8] sm:$0xff] }
  0x4a   :  { %v1184_v17 = vld [vmem:[%s2696_s0 + $0x3c8] sm:$0xff]  ;;  %1183 = vst [vmem:[%s2697_s1 + $0x28] sm:$0xff] %v1182_v16  ;;  %1187 = vst [vmem:[%s2697_s1 + $0x98] sm:$0xff] %v1186_v18  ;;  %v1188_v19 = vld [vmem:[%s2696_s0 + $0x438] sm:$0xff] }
  0x4b   :  { %1185 = vst [vmem:[%s2697_s1 + $0x3a8] sm:$0xff] %v1184_v17  ;;  %v1190_v20 = vld [vmem:[%s2696_s0 + $0x128] sm:$0xff]  ;;  %1189 = vst [vmem:[%s2697_s1 + $0x418] sm:$0xff] %v1188_v19  ;;  %v1194_v22 = vld [vmem:[%s2696_s0 + $0x198] sm:$0xff] }
  0x4c   :  { %v1192_v21 = vld [vmem:[%s2696_s0 + $0x4a8] sm:$0xff]  ;;  %1191 = vst [vmem:[%s2697_s1 + $0x108] sm:$0xff] %v1190_v20  ;;  %v1196_v23 = vld [vmem:[%s2696_s0 + $0x518] sm:$0xff]  ;;  %1195 = vst [vmem:[%s2697_s1 + $0x178] sm:$0xff] %v1194_v22 }
  0x4d   :  { %1193 = vst [vmem:[%s2697_s1 + $0x488] sm:$0xff] %v1192_v21  ;;  %v1198_v24 = vld [vmem:[%s2696_s0 + $0x208] sm:$0xff]  ;;  %1197 = vst [vmem:[%s2697_s1 + $0x4f8] sm:$0xff] %v1196_v23  ;;  %v1202_v26 = vld [vmem:[%s2696_s0 + $0x278] sm:$0xff] }
  0x4e   :  { %1199 = vst [vmem:[%s2697_s1 + $0x1e8] sm:$0xff] %v1198_v24  ;;  %v1200_v25 = vld [vmem:[%s2696_s0 + $0x588] sm:$0xff]  ;;  %v1204_v27 = vld [vmem:[%s2696_s0 + $0x5f8] sm:$0xff]  ;;  %1203 = vst [vmem:[%s2697_s1 + $0x258] sm:$0xff] %v1202_v26 }
  0x4f   :  { %1201 = vst [vmem:[%s2697_s1 + $0x568] sm:$0xff] %v1200_v25  ;;  %1205 = vst [vmem:[%s2697_s1 + $0x5d8] sm:$0xff] %v1204_v27  ;;  %v1206_v28 = vld [vmem:[%s2696_s0 + $0x2e8] sm:$0xff]  ;;  %v1210_v30 = vld [vmem:[%s2696_s0 + $0x358] sm:$0xff] }
  0x50   :  { %v1208_v29 = vld [vmem:[%s2696_s0 + $0x668] sm:$0xff]  ;;  %1207 = vst [vmem:[%s2697_s1 + $0x2c8] sm:$0xff] %v1206_v28  ;;  %1211 = vst [vmem:[%s2697_s1 + $0x338] sm:$0xff] %v1210_v30  ;;  %v1212_v31 = vld [vmem:[%s2696_s0 + $0x6d8] sm:$0xff] }
  0x51   :  { %1209 = vst [vmem:[%s2697_s1 + $0x648] sm:$0xff] %v1208_v29  ;;  %v1214_v32 = vld [vmem:[%s2696_s0 + $0x38] sm:$0xff]  ;;  %1213 = vst [vmem:[%s2697_s1 + $0x6b8] sm:$0xff] %v1212_v31  ;;  %v1218_v34 = vld [vmem:[%s2696_s0 + $0xa8] sm:$0xff] }
  0x52   :  { %v1216_v33 = vld [vmem:[%s2696_s0 + $0x3b8] sm:$0xff]  ;;  %1215 = vst [vmem:[%s2697_s1 + $0x38] sm:$0xff] %v1214_v32  ;;  %v1220_v35 = vld [vmem:[%s2696_s0 + $0x428] sm:$0xff]  ;;  %1219 = vst [vmem:[%s2697_s1 + $0xa8] sm:$0xff] %v1218_v34 }
  0x53   :  { %1217 = vst [vmem:[%s2697_s1 + $0x3b8] sm:$0xff] %v1216_v33  ;;  %v1222_v36 = vld [vmem:[%s2696_s0 + $0x118] sm:$0xff]  ;;  %1221 = vst [vmem:[%s2697_s1 + $0x428] sm:$0xff] %v1220_v35  ;;  %v1226_v38 = vld [vmem:[%s2696_s0 + $0x188] sm:$0xff] }
  0x54   :  { %1223 = vst [vmem:[%s2697_s1 + $0x118] sm:$0xff] %v1222_v36  ;;  %v1224_v37 = vld [vmem:[%s2696_s0 + $0x498] sm:$0xff]  ;;  %v1228_v39 = vld [vmem:[%s2696_s0 + $0x508] sm:$0xff]  ;;  %1227 = vst [vmem:[%s2697_s1 + $0x188] sm:$0xff] %v1226_v38 }
  0x55   :  { %1225 = vst [vmem:[%s2697_s1 + $0x498] sm:$0xff] %v1224_v37  ;;  %1229 = vst [vmem:[%s2697_s1 + $0x508] sm:$0xff] %v1228_v39  ;;  %v1230_v40 = vld [vmem:[%s2696_s0 + $0x1f8] sm:$0xff]  ;;  %v1234_v42 = vld [vmem:[%s2696_s0 + $0x268] sm:$0xff] }
  0x56   :  { %v1232_v41 = vld [vmem:[%s2696_s0 + $0x578] sm:$0xff]  ;;  %1231 = vst [vmem:[%s2697_s1 + $0x1f8] sm:$0xff] %v1230_v40  ;;  %1235 = vst [vmem:[%s2697_s1 + $0x268] sm:$0xff] %v1234_v42  ;;  %v1236_v43 = vld [vmem:[%s2696_s0 + $0x5e8] sm:$0xff] }
  0x57   :  { %1233 = vst [vmem:[%s2697_s1 + $0x578] sm:$0xff] %v1232_v41  ;;  %v1238_v44 = vld [vmem:[%s2696_s0 + $0x2d8] sm:$0xff]  ;;  %1237 = vst [vmem:[%s2697_s1 + $0x5e8] sm:$0xff] %v1236_v43  ;;  %v1242_v46 = vld [vmem:[%s2696_s0 + $0x348] sm:$0xff] }
  0x58   :  { %v1240_v45 = vld [vmem:[%s2696_s0 + $0x658] sm:$0xff]  ;;  %1239 = vst [vmem:[%s2697_s1 + $0x2d8] sm:$0xff] %v1238_v44  ;;  %v1244_v47 = vld [vmem:[%s2696_s0 + $0x6c8] sm:$0xff]  ;;  %1243 = vst [vmem:[%s2697_s1 + $0x348] sm:$0xff] %v1242_v46 }
  0x59   :  { %1241 = vst [vmem:[%s2697_s1 + $0x658] sm:$0xff] %v1240_v45  ;;  %v1246_v48 = vld [vmem:[%s2696_s0 + $0x28] sm:$0xff]  ;;  %1245 = vst [vmem:[%s2697_s1 + $0x6c8] sm:$0xff] %v1244_v47  ;;  %v1250_v50 = vld [vmem:[%s2696_s0 + $0x98] sm:$0xff] }
  0x5a   :  { %1247 = vst [vmem:[%s2697_s1 + $0x48] sm:$0xff] %v1246_v48  ;;  %v1248_v49 = vld [vmem:[%s2696_s0 + $0x3a8] sm:$0xff]  ;;  %v1252_v51 = vld [vmem:[%s2696_s0 + $0x418] sm:$0xff]  ;;  %1251 = vst [vmem:[%s2697_s1 + $0xb8] sm:$0xff] %v1250_v50 }
  0x5b   :  { %1249 = vst [vmem:[%s2697_s1 + $0x3c8] sm:$0xff] %v1248_v49  ;;  %1253 = vst [vmem:[%s2697_s1 + $0x438] sm:$0xff] %v1252_v51  ;;  %v1254_v52 = vld [vmem:[%s2696_s0 + $0x108] sm:$0xff]  ;;  %v1258_v54 = vld [vmem:[%s2696_s0 + $0x178] sm:$0xff] }
  0x5c   :  { %v1256_v53 = vld [vmem:[%s2696_s0 + $0x488] sm:$0xff]  ;;  %1255 = vst [vmem:[%s2697_s1 + $0x128] sm:$0xff] %v1254_v52  ;;  %1259 = vst [vmem:[%s2697_s1 + $0x198] sm:$0xff] %v1258_v54  ;;  %v1260_v55 = vld [vmem:[%s2696_s0 + $0x4f8] sm:$0xff] }
  0x5d   :  { %1257 = vst [vmem:[%s2697_s1 + $0x4a8] sm:$0xff] %v1256_v53  ;;  %v1262_v56 = vld [vmem:[%s2696_s0 + $0x1e8] sm:$0xff]  ;;  %1261 = vst [vmem:[%s2697_s1 + $0x518] sm:$0xff] %v1260_v55  ;;  %v1266_v58 = vld [vmem:[%s2696_s0 + $0x258] sm:$0xff] }
  0x5e   :  { %v1264_v57 = vld [vmem:[%s2696_s0 + $0x568] sm:$0xff]  ;;  %1263 = vst [vmem:[%s2697_s1 + $0x208] sm:$0xff] %v1262_v56  ;;  %v1268_v59 = vld [vmem:[%s2696_s0 + $0x5d8] sm:$0xff]  ;;  %1267 = vst [vmem:[%s2697_s1 + $0x278] sm:$0xff] %v1266_v58 }
  0x5f   :  { %1265 = vst [vmem:[%s2697_s1 + $0x588] sm:$0xff] %v1264_v57  ;;  %v1270_v60 = vld [vmem:[%s2696_s0 + $0x2c8] sm:$0xff]  ;;  %1269 = vst [vmem:[%s2697_s1 + $0x5f8] sm:$0xff] %v1268_v59  ;;  %v1274_v62 = vld [vmem:[%s2696_s0 + $0x338] sm:$0xff] }
  0x60   :  { %1271 = vst [vmem:[%s2697_s1 + $0x2e8] sm:$0xff] %v1270_v60  ;;  %v1272_v61 = vld [vmem:[%s2696_s0 + $0x648] sm:$0xff]  ;;  %v1276_v63 = vld [vmem:[%s2696_s0 + $0x6b8] sm:$0xff]  ;;  %1275 = vst [vmem:[%s2697_s1 + $0x358] sm:$0xff] %v1274_v62 }
  0x61   :  { %1273 = vst [vmem:[%s2697_s1 + $0x668] sm:$0xff] %v1272_v61  ;;  %1277 = vst [vmem:[%s2697_s1 + $0x6d8] sm:$0xff] %v1276_v63  ;;  %v1278_v0 = vld [vmem:[%s2696_s0 + $0x18] sm:$0xff]  ;;  %v1282_v2 = vld [vmem:[%s2696_s0 + $0x88] sm:$0xff] }
  0x62   :  { %v1280_v1 = vld [vmem:[%s2696_s0 + $0x398] sm:$0xff]  ;;  %1279 = vst [vmem:[%s2697_s1 + $0x58] sm:$0xff] %v1278_v0  ;;  %1283 = vst [vmem:[%s2697_s1 + $0xc8] sm:$0xff] %v1282_v2  ;;  %v1284_v3 = vld [vmem:[%s2696_s0 + $0x408] sm:$0xff] }
  0x63   :  { %1281 = vst [vmem:[%s2697_s1 + $0x3d8] sm:$0xff] %v1280_v1  ;;  %v1286_v4 = vld [vmem:[%s2696_s0 + $0xf8] sm:$0xff]  ;;  %1285 = vst [vmem:[%s2697_s1 + $0x448] sm:$0xff] %v1284_v3  ;;  %v1290_v6 = vld [vmem:[%s2696_s0 + $0x168] sm:$0xff] }
  0x64   :  { %v1288_v5 = vld [vmem:[%s2696_s0 + $0x478] sm:$0xff]  ;;  %1287 = vst [vmem:[%s2697_s1 + $0x138] sm:$0xff] %v1286_v4  ;;  %v1292_v7 = vld [vmem:[%s2696_s0 + $0x4e8] sm:$0xff]  ;;  %1291 = vst [vmem:[%s2697_s1 + $0x1a8] sm:$0xff] %v1290_v6 }
  0x65   :  { %1289 = vst [vmem:[%s2697_s1 + $0x4b8] sm:$0xff] %v1288_v5  ;;  %v1294_v8 = vld [vmem:[%s2696_s0 + $0x1d8] sm:$0xff]  ;;  %1293 = vst [vmem:[%s2697_s1 + $0x528] sm:$0xff] %v1292_v7  ;;  %v1298_v10 = vld [vmem:[%s2696_s0 + $0x248] sm:$0xff] }
  0x66   :  { %1295 = vst [vmem:[%s2697_s1 + $0x218] sm:$0xff] %v1294_v8  ;;  %v1296_v9 = vld [vmem:[%s2696_s0 + $0x558] sm:$0xff]  ;;  %v1300_v11 = vld [vmem:[%s2696_s0 + $0x5c8] sm:$0xff]  ;;  %1299 = vst [vmem:[%s2697_s1 + $0x288] sm:$0xff] %v1298_v10 }
  0x67   :  { %1297 = vst [vmem:[%s2697_s1 + $0x598] sm:$0xff] %v1296_v9  ;;  %1301 = vst [vmem:[%s2697_s1 + $0x608] sm:$0xff] %v1300_v11  ;;  %v1302_v12 = vld [vmem:[%s2696_s0 + $0x2b8] sm:$0xff]  ;;  %v1306_v14 = vld [vmem:[%s2696_s0 + $0x328] sm:$0xff] }
  0x68   :  { %v1304_v13 = vld [vmem:[%s2696_s0 + $0x638] sm:$0xff]  ;;  %1303 = vst [vmem:[%s2697_s1 + $0x2f8] sm:$0xff] %v1302_v12  ;;  %1307 = vst [vmem:[%s2697_s1 + $0x368] sm:$0xff] %v1306_v14  ;;  %v1308_v15 = vld [vmem:[%s2696_s0 + $0x6a8] sm:$0xff] }
  0x69   :  { %1305 = vst [vmem:[%s2697_s1 + $0x678] sm:$0xff] %v1304_v13  ;;  %v1310_v16 = vld [vmem:[%s2696_s0 + $0x8] sm:$0xff]  ;;  %1309 = vst [vmem:[%s2697_s1 + $0x6e8] sm:$0xff] %v1308_v15  ;;  %v1314_v18 = vld [vmem:[%s2696_s0 + $0x78] sm:$0xff] }
  0x6a   :  { %v1312_v17 = vld [vmem:[%s2696_s0 + $0x388] sm:$0xff]  ;;  %1311 = vst [vmem:[%s2697_s1 + $0x68] sm:$0xff] %v1310_v16  ;;  %v1316_v19 = vld [vmem:[%s2696_s0 + $0x3f8] sm:$0xff]  ;;  %1315 = vst [vmem:[%s2697_s1 + $0xd8] sm:$0xff] %v1314_v18 }
  0x6b   :  { %1313 = vst [vmem:[%s2697_s1 + $0x3e8] sm:$0xff] %v1312_v17  ;;  %v1318_v20 = vld [vmem:[%s2696_s0 + $0xe8] sm:$0xff]  ;;  %1317 = vst [vmem:[%s2697_s1 + $0x458] sm:$0xff] %v1316_v19  ;;  %v1322_v22 = vld [vmem:[%s2696_s0 + $0x158] sm:$0xff] }
  0x6c   :  { %1319 = vst [vmem:[%s2697_s1 + $0x148] sm:$0xff] %v1318_v20  ;;  %v1320_v21 = vld [vmem:[%s2696_s0 + $0x468] sm:$0xff]  ;;  %v1324_v23 = vld [vmem:[%s2696_s0 + $0x4d8] sm:$0xff]  ;;  %1323 = vst [vmem:[%s2697_s1 + $0x1b8] sm:$0xff] %v1322_v22 }
  0x6d   :  { %1321 = vst [vmem:[%s2697_s1 + $0x4c8] sm:$0xff] %v1320_v21  ;;  %1325 = vst [vmem:[%s2697_s1 + $0x538] sm:$0xff] %v1324_v23  ;;  %v1326_v24 = vld [vmem:[%s2696_s0 + $0x1c8] sm:$0xff]  ;;  %v1330_v26 = vld [vmem:[%s2696_s0 + $0x238] sm:$0xff] }
  0x6e   :  { %v1328_v25 = vld [vmem:[%s2696_s0 + $0x548] sm:$0xff]  ;;  %1327 = vst [vmem:[%s2697_s1 + $0x228] sm:$0xff] %v1326_v24  ;;  %1331 = vst [vmem:[%s2697_s1 + $0x298] sm:$0xff] %v1330_v26  ;;  %v1332_v27 = vld [vmem:[%s2696_s0 + $0x5b8] sm:$0xff] }
  0x6f   :  { %1329 = vst [vmem:[%s2697_s1 + $0x5a8] sm:$0xff] %v1328_v25  ;;  %v1334_v28 = vld [vmem:[%s2696_s0 + $0x2a8] sm:$0xff]  ;;  %1333 = vst [vmem:[%s2697_s1 + $0x618] sm:$0xff] %v1332_v27  ;;  %v1338_v30 = vld [vmem:[%s2696_s0 + $0x318] sm:$0xff] }
  0x70   :  { %v1336_v29 = vld [vmem:[%s2696_s0 + $0x628] sm:$0xff]  ;;  %1335 = vst [vmem:[%s2697_s1 + $0x308] sm:$0xff] %v1334_v28  ;;  %v1340_v31 = vld [vmem:[%s2696_s0 + $0x698] sm:$0xff]  ;;  %1339 = vst [vmem:[%s2697_s1 + $0x378] sm:$0xff] %v1338_v30 }
  0x71   :  { %1337 = vst [vmem:[%s2697_s1 + $0x688] sm:$0xff] %v1336_v29  ;;  %1341 = vst [vmem:[%s2697_s1 + $0x6f8] sm:$0xff] %v1340_v31 }

// kernel: _lambda_.5
= control target key start
LH: loop header
LB: loop body
LE: loop exit
PB: predicated region body
PF: predicated region fallthrough
CT: control target
= control target key end

     0   :  { %s3185_s18 = smov 0   ;;  %s3187_s19 = smov 0   ;;  %s5778_s0 = inlined_call_operand.vmem [shape: f32[2,8,4096], index: 0, kind: input, shape index: {}]   ;;  %s5779_s1 = inlined_call_operand.vmem [shape: f32[2,8,4096], index: 1, kind: input, shape index: {}]   ;;  %s5780_s2 = inlined_call_operand.vmem [shape: f32[2,8,4096], index: 2, kind: input, shape index: {}]   ;;  %s5781_s3 = inlined_call_operand.vmem [shape: f32[8,8,1], index: 3, kind: input, shape index: {}]   ;;  %s5782_s4 = inlined_call_operand.vmem [shape: f32[8,1], index: 4, kind: input, shape index: {}]   ;;  %s5783_s5 = inlined_call_operand.vmem [shape: f32[2,8,4096], index: 5, kind: output, shape index: {}]  }
   0x1   :  { %s3189_s20 = smov 0  }
   0x2 LB: > { %s27_s21 = sadd.s32 1, %s3148_s19  ;;  %p2955_p0 = scmp.ge.s32.totalorder %s3152_s20, 1  ;;  %s3152_s20 = sphi %s3189_s20, %s15_s20   ;;  %s3148_s19 = sphi %s3187_s19, %s6478_s19   ;;  %s3144_s18 = sphi %s3185_s18, %s6477_s18  }
   0x3   : > { %p29_p1 = scmp.ge.s32.totalorder %s27_s21, 2  ;;  %p242_p2 = scmp.lt.s32.totalorder %s3152_s20, 3 }
   0x5   : > { %s6480_s21 = smov (%p29_p1, %s27_s21), 0  ;;  %p243_p3 = pnand %p2955_p0, %p242_p2 }
   0x7   : > { %246 = sbr.rel (%p243_p3) target bundleno = 432 (0x1b0), region = 40 }
   0xc   : > { %v2987_v0 = vld [vmem:[%s5781_s3 + $0x10] sm:$0xff]  ;;  %v351_v1 = vld [vmem:[%s5781_s3] sm:$0xff]  ;;  %v3154_v2 = vmov 0   ;;  %v2996_v3 = vld [vmem:[%s5781_s3 + $0x18] sm:$0xff]  ;;  %p297_p4 = scmp.lt.s32.totalorder %s3144_s18, 1  ;;  %v361_v10 = vlaneseq }
   0xd   : > { %3065 = vset.pattern.permute.xlu1 %v3154_v2  ;;  %3064 = vset.pattern.permute.xlu0 %v3154_v2  ;;  %v2978_v4 = vld [vmem:[%s5781_s3 + $0x8] sm:$0xff]  ;;  %v3005_v6 = vld [vmem:[%s5781_s3 + $0x20] sm:$0xff]  ;;  %v3032_v7 = vld [vmem:[%s5781_s3 + $0x38] sm:$0xff] }
   0xe   : > { %856 = vperm.xlu1 %3065, %v2987_v0   ;;  %354 = vperm.xlu0 %3064, %v351_v1   ;;  %v3014_v5 = vld [vmem:[%s5781_s3 + $0x28] sm:$0xff]  ;;  %v3023_v8 = vld [vmem:[%s5781_s3 + $0x30] sm:$0xff]  ;;  %v2342_v9 = vld [vmem:[%s5782_s4] sm:$0xff]  ;;  %s6482_s18 = smov (!%p297_p4, %s3144_s18), 1  ;;  %v362_v11 = vshrl.u32 %v361_v10, 7 }
   0xf   : > { %s3234_s15 = sshll.u32 %s6482_s18, 8 }
  0x10   : > { %s3240_s22 = scalar_lea.vmem %s5778_s0, %s3234_s15  ;;  %v3244_v14 = vsub.s32 0, %v362_v11  ;;  %v3246_v15 = vsub.s32 1, %v362_v11  ;;  %v3248_v16 = vsub.s32 2, %v362_v11  ;;  %v3250_v17 = vsub.s32 3, %v362_v11  ;;  %s5342_s24 = scalar_lea.vmem %s5779_s1, %s3234_s15 }
  0x11   : > { %v336_v12 = vld [vmem:[%s3240_s22] ss:$8 sm:$0xf]  ;;  %v3252_v18 = vsub.s32 4, %v362_v11  ;;  %v3254_v19 = vsub.s32 5, %v362_v11  ;;  %v3256_v20 = vsub.s32 6, %v362_v11  ;;  %s5416_s27 = scalar_lea.vmem %s5780_s2, %s3234_s15  ;;  %s5694_s30 = scalar_lea.vmem %s5783_s5, %s3234_s15 }
  0x12   : > { %1107 = vperm.xlu1 %3065, %v2996_v3   ;;  %605 = vperm.xlu0 %3064, %v2978_v4   ;;  %v337_v13 = vld [vmem:[%s3240_s22] ss:$8 sm:$0xf0]  ;;  %5904 = vst [vmem:[#allocation2_spill] sm:$0xff] %v3244_v14  ;;  %5905 = vst [vmem:[#allocation3_spill] sm:$0xff] %v3246_v15  ;;  %v3258_v21 = vsub.s32 7, %v362_v11 }
  0x13   : > { %5906 = vst [vmem:[#allocation4_spill] sm:$0xff] %v3248_v16  ;;  %5907 = vst [vmem:[#allocation5_spill] sm:$0xff] %v3254_v19  ;;  %v3260_v22 = vor.u32 %v337_v13, %v336_v12  ;;  %v2964_v23 = vld [vmem:[%s3240_s22 + $0x40] ss:$8 sm:$0xf] }
  0x14   : > { %v2965_v24 = vld [vmem:[%s3240_s22 + $0x40] ss:$8 sm:$0xf0]  ;;  %v2970_v44 = vld [vmem:[%s3240_s22 + $0x1] ss:$8 sm:$0xf] }
  0x15   : > { %v2966_v25 = vld [vmem:[%s3240_s22 + $0x80] ss:$8 sm:$0xf]  ;;  %v3268_v29 = vor.u32 %v2965_v24, %v2964_v23  ;;  %v364_v31 = vrot.slane %v3260_v22, %v3244_v14  ;;  %v368_v33 = vrot.slane %v3260_v22, %v3246_v15  ;;  %v372_v34 = vrot.slane %v3260_v22, %v3248_v16  ;;  %v2971_v45 = vld [vmem:[%s3240_s22 + $0x1] ss:$8 sm:$0xf0] }
  0x16   : > { %1609 = vperm.xlu1 %3065, %v3014_v5   ;;  %1358 = vperm.xlu0 %3064, %v3005_v6   ;;  %v2967_v26 = vld [vmem:[%s3240_s22 + $0x80] ss:$8 sm:$0xf0]  ;;  %v376_v35 = vrot.slane %v3260_v22, %v3250_v17  ;;  %v380_v36 = vrot.slane %v3260_v22, %v3252_v18  ;;  %v384_v37 = vrot.slane %v3260_v22, %v3254_v19  ;;  %v2972_v50 = vld [vmem:[%s3240_s22 + $0x41] ss:$8 sm:$0xf] }
  0x17   : > { %v2968_v27 = vld [vmem:[%s3240_s22 + $0xc0] ss:$8 sm:$0xf]  ;;  %v3270_v30 = vor.u32 %v2967_v26, %v2966_v25  ;;  %v388_v38 = vrot.slane %v3260_v22, %v3256_v20  ;;  %v392_v39 = vrot.slane %v3260_v22, %v3258_v21  ;;  %v396_v40 = vrot.slane %v3268_v29, %v3244_v14  ;;  %v2973_v51 = vld [vmem:[%s3240_s22 + $0x41] ss:$8 sm:$0xf0] }
  0x18   : > { %v2969_v28 = vld [vmem:[%s3240_s22 + $0xc0] ss:$8 sm:$0xf0]  ;;  %v400_v41 = vrot.slane %v3268_v29, %v3246_v15  ;;  %v404_v42 = vrot.slane %v3268_v29, %v3248_v16  ;;  %v408_v43 = vrot.slane %v3268_v29, %v3250_v17  ;;  %v412_v46 = vrot.slane %v3268_v29, %v3252_v18  ;;  %v2974_v52 = vld [vmem:[%s3240_s22 + $0x81] ss:$8 sm:$0xf] }
  0x19   : > { %v3274_v32 = vor.u32 %v2969_v28, %v2968_v27  ;;  %v2975_v53 = vld [vmem:[%s3240_s22 + $0x81] ss:$8 sm:$0xf0]  ;;  %v2979_v60 = vld [vmem:[%s3240_s22 + $0x2] ss:$8 sm:$0xf]  ;;  %v3356_v26 = vor.u32 %v2973_v51, %v2972_v50  ;;  %v5936_v47 = vrot.slane %v3270_v30, %v3246_v15 }
  0x1a   : > { %2111 = vperm.xlu1 %3065, %v3032_v7   ;;  %1860 = vperm.xlu0 %3064, %v3023_v8   ;;  %v2976_v54 = vld [vmem:[%s3240_s22 + $0xc1] ss:$8 sm:$0xf]  ;;  %v2980_v61 = vld [vmem:[%s3240_s22 + $0x2] ss:$8 sm:$0xf0]  ;;  %v3358_v27 = vor.u32 %v2975_v53, %v2974_v52 }
  0x1b   : > { %v2977_v55 = vld [vmem:[%s3240_s22 + $0xc1] ss:$8 sm:$0xf0]  ;;  %v2981_v62 = vld [vmem:[%s3240_s22 + $0x42] ss:$8 sm:$0xf] }
  0x1c   : > { %v2982_v63 = vld [vmem:[%s3240_s22 + $0x42] ss:$8 sm:$0xf0]  ;;  %v3360_v28 = vor.u32 %v2977_v55, %v2976_v54  ;;  %v2991_v55 = vld [vmem:[%s3240_s22 + $0x43] ss:$8 sm:$0xf0] }
  0x1d   : > { %v2983_v4 = vld [vmem:[%s3240_s22 + $0x82] ss:$8 sm:$0xf]  ;;  %v2992_v53 = vld [vmem:[%s3240_s22 + $0x83] ss:$8 sm:$0xf] }
  0x1e   : > { %2345 = vperm.xlu0 %3064, %v2342_v9   ;;  %v2984_v5 = vld [vmem:[%s3240_s22 + $0x82] ss:$8 sm:$0xf0]  ;;  %v3342_v9 = vor.u32 %v2971_v45, %v2970_v44  ;;  %v3362_v44 = vor.u32 %v2980_v61, %v2979_v60  ;;  %v3364_v45 = vor.u32 %v2982_v63, %v2981_v62  ;;  %v2988_v61 = vld [vmem:[%s3240_s22 + $0x3] ss:$8 sm:$0xf] }
  0x1f   : > { %v2985_v10 = vld [vmem:[%s3240_s22 + $0xc2] ss:$8 sm:$0xf]  ;;  %v3366_v13 = vor.u32 %v2984_v5, %v2983_v4  ;;  %v2989_v60 = vld [vmem:[%s3240_s22 + $0x3] ss:$8 sm:$0xf0] }
  0x20   : > { %v2986_v11 = vld [vmem:[%s3240_s22 + $0xc2] ss:$8 sm:$0xf0]  ;;  %5908 = vst [vmem:[#allocation6_spill] sm:$0xff] %v3362_v44  ;;  %5909 = vst [vmem:[#allocation7_spill] sm:$0xff] %v3364_v45  ;;  %v3486_v51 = vor.u32 %v2989_v60, %v2988_v61  ;;  %v5977_v45 = vrot.slane %v3356_v26, %v3254_v19  ;;  %v5978_v44 = vrot.slane %v3356_v26, %v3256_v20 }
  0x21   : > { %5910 = vst [vmem:[#allocation8_spill] sm:$0xff] %v3366_v13  ;;  %v3368_v12 = vor.u32 %v2986_v11, %v2985_v10  ;;  %v2990_v62 = vld [vmem:[%s3240_s22 + $0x43] ss:$8 sm:$0xf]  ;;  %v5975_v13 = vrot.slane %v3356_v26, %v3250_v17 }
  0x22   : > { %v2993_v52 = vld [vmem:[%s3240_s22 + $0x83] ss:$8 sm:$0xf0]  ;;  %5912 = vst [vmem:[#allocation10_spill] sm:$0xff] %v3486_v51  ;;  %v3504_v4 = vor.u32 %v2991_v55, %v2990_v62  ;;  %v5973_v51 = vrot.slane %v3356_v26, %v3246_v15 }
  0x23   : > { %5911 = vst [vmem:[#allocation9_spill] sm:$0xff] %v3368_v12  ;;  %v2994_v54 = vld [vmem:[%s3240_s22 + $0xc3] ss:$8 sm:$0xf]  ;;  %v3510_v11 = vor.u32 %v2993_v52, %v2992_v53  ;;  %v5974_v12 = vrot.slane %v3356_v26, %v3248_v16 }
  0x24   : > { %v2995_v50 = vld [vmem:[%s3240_s22 + $0xc3] ss:$8 sm:$0xf0]  ;;  %5913 = vst [vmem:[#allocation11_spill] sm:$0xff] %v3504_v4  ;;  %v5972_v4 = vrot.slane %v3356_v26, %v3244_v14 }
  0x25   : > { %5914 = vst [vmem:[#allocation12_spill] sm:$0xff] %v3510_v11  ;;  %v3512_v63 = vor.u32 %v2995_v50, %v2994_v54  ;;  %v2997_v54 = vld [vmem:[%s3240_s22 + $0x4] ss:$8 sm:$0xf]  ;;  %v5971_v11 = vrot.slane %v3342_v9, %v3258_v21 }
  0x26   : > { %v2998_v60 = vld [vmem:[%s3240_s22 + $0x4] ss:$8 sm:$0xf0]  ;;  %v3007_v50 = vld [vmem:[%s3240_s22 + $0x5] ss:$8 sm:$0xf0] }
  0x27   : > { %5915 = vst [vmem:[#allocation13_spill] sm:$0xff] %v3512_v63  ;;  %v3554_v5 = vor.u32 %v2998_v60, %v2997_v54  ;;  %v2999_v52 = vld [vmem:[%s3240_s22 + $0x44] ss:$8 sm:$0xf]  ;;  %v5970_v63 = vrot.slane %v3342_v9, %v3256_v20 }
  0x28   : > { %v3000_v25 = vld [vmem:[%s3240_s22 + $0x44] ss:$8 sm:$0xf0]  ;;  %v3009_v62 = vld [vmem:[%s3240_s22 + $0x45] ss:$8 sm:$0xf0] }
  0x29   : > { %5916 = vst [vmem:[#allocation14_spill] sm:$0xff] %v3554_v5  ;;  %v3001_v61 = vld [vmem:[%s3240_s22 + $0x84] ss:$8 sm:$0xf]  ;;  %v3584_v54 = vor.u32 %v3000_v25, %v2999_v52 }
  0x2a   : > { %v3002_v24 = vld [vmem:[%s3240_s22 + $0x84] ss:$8 sm:$0xf0]  ;;  %v3010_v60 = vld [vmem:[%s3240_s22 + $0x85] ss:$8 sm:$0xf] }
  0x2b   : > { %v3003_v53 = vld [vmem:[%s3240_s22 + $0xc4] ss:$8 sm:$0xf]  ;;  %5917 = vst [vmem:[#allocation15_spill] sm:$0xff] %v3584_v54  ;;  %v3590_v8 = vor.u32 %v3002_v24, %v3001_v61 }
  0x2c   : > { %v3004_v23 = vld [vmem:[%s3240_s22 + $0xc4] ss:$8 sm:$0xf0]  ;;  %v3008_v24 = vld [vmem:[%s3240_s22 + $0x45] ss:$8 sm:$0xf] }
  0x2d   : > { %5918 = vst [vmem:[#allocation16_spill] sm:$0xff] %v3590_v8  ;;  %v3594_v7 = vor.u32 %v3004_v23, %v3003_v53  ;;  %v3006_v53 = vld [vmem:[%s3240_s22 + $0x5] ss:$8 sm:$0xf] }
  0x2e   : > { %v3634_v10 = vor.u32 %v3007_v50, %v3006_v53  ;;  %v3011_v6 = vld [vmem:[%s3240_s22 + $0x85] ss:$8 sm:$0xf0]  ;;  %v3664_v53 = vor.u32 %v3009_v62, %v3008_v24  ;;  %v3016_v61 = vld [vmem:[%s3240_s22 + $0x6] ss:$8 sm:$0xf0] }
  0x2f   : > { %5919 = vst [vmem:[#allocation17_spill] sm:$0xff] %v3594_v7  ;;  %v3012_v23 = vld [vmem:[%s3240_s22 + $0xc5] ss:$8 sm:$0xf]  ;;  %v3670_v2 = vor.u32 %v3011_v6, %v3010_v60  ;;  %v5965_v7 = vrot.slane %v3342_v9, %v3246_v15 }
  0x30   : > { %5920 = vst [vmem:[#allocation18_spill] sm:$0xff] %v3634_v10  ;;  %v3013_v3 = vld [vmem:[%s3240_s22 + $0xc5] ss:$8 sm:$0xf0]  ;;  %5921 = vst [vmem:[#allocation19_spill] sm:$0xff] %v3664_v53  ;;  %v5962_v53 = vrot.slane %v3274_v32, %v3258_v21  ;;  %v5964_v10 = vrot.slane %v3342_v9, %v3244_v14 }
  0x31   : > { %5922 = vst [vmem:[#allocation20_spill] sm:$0xff] %v3670_v2  ;;  %v3674_v1 = vor.u32 %v3013_v3, %v3012_v23  ;;  %v3015_v23 = vld [vmem:[%s3240_s22 + $0x6] ss:$8 sm:$0xf]  ;;  %v5960_v2 = vrot.slane %v3274_v32, %v3256_v20 }
  0x32   : > { %v3714_v55 = vor.u32 %v3016_v61, %v3015_v23  ;;  %v3017_v6 = vld [vmem:[%s3240_s22 + $0x46] ss:$8 sm:$0xf]  ;;  %v3025_v60 = vld [vmem:[%s3240_s22 + $0x7] ss:$8 sm:$0xf0] }
  0x33   : > { %5923 = vst [vmem:[#allocation21_spill] sm:$0xff] %v3674_v1  ;;  %v3018_v52 = vld [vmem:[%s3240_s22 + $0x46] ss:$8 sm:$0xf0]  ;;  %v5958_v1 = vrot.slane %v3274_v32, %v3254_v19 }
  0x34   : > { %5924 = vst [vmem:[#allocation22_spill] sm:$0xff] %v3714_v55  ;;  %v3019_v50 = vld [vmem:[%s3240_s22 + $0x86] ss:$8 sm:$0xf]  ;;  %v3744_v23 = vor.u32 %v3018_v52, %v3017_v6  ;;  %v5937_v52 = vrot.slane %v3270_v30, %v3248_v16  ;;  %v5956_v55 = vrot.slane %v3274_v32, %v3252_v18 }
  0x35   : > { %v3020_v0 = vld [vmem:[%s3240_s22 + $0x86] ss:$8 sm:$0xf0]  ;;  %v3027_v24 = vld [vmem:[%s3240_s22 + $0x47] ss:$8 sm:$0xf0] }
  0x36   : > { %v3021_v3 = vld [vmem:[%s3240_s22 + $0xc6] ss:$8 sm:$0xf]  ;;  %5925 = vst [vmem:[#allocation23_spill] sm:$0xff] %v3744_v23  ;;  %v3750_v58 = vor.u32 %v3020_v0, %v3019_v50  ;;  %v5952_v23 = vrot.slane %v3274_v32, %v3248_v16 }
  0x37   : > { %v3022_v59 = vld [vmem:[%s3240_s22 + $0xc6] ss:$8 sm:$0xf0]  ;;  %v3026_v0 = vld [vmem:[%s3240_s22 + $0x47] ss:$8 sm:$0xf] }
  0x38   : > { %5926 = vst [vmem:[#allocation24_spill] sm:$0xff] %v3750_v58  ;;  %v3754_v57 = vor.u32 %v3022_v59, %v3021_v3  ;;  %v3024_v3 = vld [vmem:[%s3240_s22 + $0x7] ss:$8 sm:$0xf]  ;;  %v3824_v48 = vor.u32 %v3027_v24, %v3026_v0  ;;  %v5933_v0 = vrot.slane %v3268_v29, %v3256_v20  ;;  %v5950_v58 = vrot.slane %v3274_v32, %v3246_v15 }
  0x39   : > { %v3794_v25 = vor.u32 %v3025_v60, %v3024_v3  ;;  %v3028_v61 = vld [vmem:[%s3240_s22 + $0x87] ss:$8 sm:$0xf] }
  0x3a   : > { %5927 = vst [vmem:[#allocation25_spill] sm:$0xff] %v3754_v57  ;;  %v3029_v56 = vld [vmem:[%s3240_s22 + $0x87] ss:$8 sm:$0xf0]  ;;  %5929 = vst [vmem:[#allocation27_spill] sm:$0xff] %v3824_v48  ;;  %v5948_v57 = vrot.slane %v3274_v32, %v3244_v14 }
  0x3b   : > { %5928 = vst [vmem:[#allocation26_spill] sm:$0xff] %v3794_v25  ;;  %v3030_v59 = vld [vmem:[%s3240_s22 + $0xc7] ss:$8 sm:$0xf]  ;;  %v3830_v6 = vor.u32 %v3029_v56, %v3028_v61  ;;  %v5935_v56 = vrot.slane %v3270_v30, %v3244_v14 }
  0x3c   : > { %v3031_v49 = vld [vmem:[%s3240_s22 + $0xc7] ss:$8 sm:$0xf0] }
  0x3d   : > { %5930 = vst [vmem:[#allocation28_spill] sm:$0xff] %v3830_v6  ;;  %v3834_v62 = vor.u32 %v3031_v49, %v3030_v59  ;;  %v5934_v49 = vrot.slane %v3268_v29, %v3258_v21 }
  0x3f   : > { %5931 = vst [vmem:[#allocation29_spill] sm:$0xff] %v3834_v62 }
  0x89   : > { %v355_v50 = vpop.permute.xlu0 %354 }
  0x8a   : > { %v3901_v3 = vmul.f32 %v364_v31, %v355_v50  ;;  %v3906_v61 = vmul.f32 %v368_v33, %v355_v50  ;;  %v3911_v59 = vmul.f32 %v372_v34, %v355_v50  ;;  %v3916_v24 = vmul.f32 %v376_v35, %v355_v50 }
  0x8b   : > { %v3921_v31 = vmul.f32 %v380_v36, %v355_v50  ;;  %v3926_v33 = vmul.f32 %v384_v37, %v355_v50  ;;  %v3931_v34 = vmul.f32 %v388_v38, %v355_v50  ;;  %v3936_v35 = vmul.f32 %v392_v39, %v355_v50 }
  0x8c   : > { %v3941_v36 = vmul.f32 %v396_v40, %v355_v50  ;;  %v3946_v37 = vmul.f32 %v400_v41, %v355_v50  ;;  %v3951_v38 = vmul.f32 %v404_v42, %v355_v50  ;;  %v3956_v22 = vmul.f32 %v408_v43, %v355_v50 }
  0x8d   : > { %v3961_v39 = vmul.f32 %v412_v46, %v355_v50  ;;  %v5932_v40 = vrot.slane %v3268_v29, %v3254_v19  ;;  %v3971_v42 = vmul.f32 %v5933_v0, %v355_v50  ;;  %v3976_v43 = vmul.f32 %v5934_v49, %v355_v50  ;;  %v606_v60 = vpop.permute.xlu0 %605 }
  0x8e   : > { %v3981_v46 = vmul.f32 %v5935_v56, %v355_v50  ;;  %v3991_v0 = vmul.f32 %v5937_v52, %v355_v50  ;;  %v5938_v29 = vrot.slane %v3270_v30, %v3250_v17  ;;  %v5940_v56 = vrot.slane %v3270_v30, %v3252_v18 }
  0x8f   : > { %v3966_v41 = vmul.f32 %v5932_v40, %v355_v50  ;;  %v3986_v40 = vmul.f32 %v5936_v47, %v355_v50  ;;  %v5942_v47 = vrot.slane %v3270_v30, %v3254_v19  ;;  %v5944_v52 = vrot.slane %v3270_v30, %v3256_v20 }
  0x90   : > { %v3996_v49 = vmul.f32 %v5938_v29, %v355_v50  ;;  %v4001_v62 = vmul.f32 %v5940_v56, %v355_v50  ;;  %v5946_v29 = vrot.slane %v3270_v30, %v3258_v21  ;;  %v4021_v56 = vmul.f32 %v5948_v57, %v355_v50 }
  0x91   : > { %v4006_v6 = vmul.f32 %v5942_v47, %v355_v50  ;;  %v4011_v48 = vmul.f32 %v5944_v52, %v355_v50  ;;  %v4026_v47 = vmul.f32 %v5950_v58, %v355_v50  ;;  %v4031_v52 = vmul.f32 %v5952_v23, %v355_v50 }
  0x92   : > { %5939 = vst [vmem:[#allocation30_spill] sm:$0xff] %v3996_v49  ;;  %5941 = vst [vmem:[#allocation31_spill] sm:$0xff] %v4001_v62  ;;  %v4016_v25 = vmul.f32 %v5946_v29, %v355_v50  ;;  %v5954_v30 = vrot.slane %v3274_v32, %v3250_v17  ;;  %v4041_v57 = vmul.f32 %v5956_v55, %v355_v50 }
  0x93   : > { %5943 = vst [vmem:[#allocation32_spill] sm:$0xff] %v4006_v6  ;;  %5945 = vst [vmem:[#allocation33_spill] sm:$0xff] %v4011_v48  ;;  %v4046_v58 = vmul.f32 %v5958_v1, %v355_v50  ;;  %v4051_v23 = vmul.f32 %v5960_v2, %v355_v50  ;;  %v772_v55 = vmul.f32 %v5964_v10, %v606_v60 }
  0x94   : > { %5947 = vst [vmem:[#allocation34_spill] sm:$0xff] %v4016_v25  ;;  %5949 = vst [vmem:[#allocation35_spill] sm:$0xff] %v4021_v56  ;;  %v4036_v29 = vmul.f32 %v5954_v30, %v355_v50  ;;  %v4056_v30 = vmul.f32 %v5962_v53, %v355_v50  ;;  %v773_v8 = vmul.f32 %v5965_v7, %v606_v60 }
  0x95   : > { %5951 = vst [vmem:[#allocation36_spill] sm:$0xff] %v4026_v47  ;;  %5953 = vst [vmem:[#allocation37_spill] sm:$0xff] %v4031_v52  ;;  %v5966_v1 = vrot.slane %v3342_v9, %v3248_v16  ;;  %v5967_v2 = vrot.slane %v3342_v9, %v3250_v17  ;;  %v5968_v32 = vrot.slane %v3342_v9, %v3252_v18 }
  0x96   : > { %5955 = vst [vmem:[#allocation38_spill] sm:$0xff] %v4036_v29  ;;  %5957 = vst [vmem:[#allocation39_spill] sm:$0xff] %v4041_v57  ;;  %v5969_v50 = vrot.slane %v3342_v9, %v3254_v19  ;;  %v778_v7 = vmul.f32 %v5970_v63, %v606_v60  ;;  %v783_v63 = vmul.f32 %v5975_v13, %v606_v60 }
  0x97   : > { %5959 = vst [vmem:[#allocation40_spill] sm:$0xff] %v4046_v58  ;;  %5961 = vst [vmem:[#allocation41_spill] sm:$0xff] %v4051_v23  ;;  %v774_v54 = vmul.f32 %v5966_v1, %v606_v60  ;;  %v775_v5 = vmul.f32 %v5967_v2, %v606_v60  ;;  %v776_v53 = vmul.f32 %v5968_v32, %v606_v60 }
  0x98   : > { %5963 = vst [vmem:[#allocation42_spill] sm:$0xff] %v4056_v30  ;;  %v777_v10 = vmul.f32 %v5969_v50, %v606_v60  ;;  %v779_v1 = vmul.f32 %v5971_v11, %v606_v60  ;;  %v780_v2 = vmul.f32 %v5972_v4, %v606_v60  ;;  %v781_v32 = vmul.f32 %v5973_v51, %v606_v60 }
  0x99   : > { %v782_v50 = vmul.f32 %v5974_v12, %v606_v60  ;;  %v5976_v9 = vrot.slane %v3356_v26, %v3252_v18  ;;  %v785_v4 = vmul.f32 %v5977_v45, %v606_v60  ;;  %v786_v51 = vmul.f32 %v5978_v44, %v606_v60 }
  0x9a   : > { %v5979_v30 = vrot.slane %v3356_v26, %v3258_v21  ;;  %v5980_v23 = vrot.slane %v3358_v27, %v3244_v14  ;;  %v5981_v58 = vrot.slane %v3358_v27, %v3246_v15  ;;  %v5982_v57 = vrot.slane %v3358_v27, %v3248_v16 }
  0x9b   : > { %v784_v11 = vmul.f32 %v5976_v9, %v606_v60  ;;  %v5983_v29 = vrot.slane %v3358_v27, %v3250_v17  ;;  %v5984_v26 = vrot.slane %v3358_v27, %v3252_v18  ;;  %v5985_v52 = vrot.slane %v3358_v27, %v3254_v19 }
  0x9c   : > { %v787_v12 = vmul.f32 %v5979_v30, %v606_v60  ;;  %v788_v13 = vmul.f32 %v5980_v23, %v606_v60  ;;  %v789_v9 = vmul.f32 %v5981_v58, %v606_v60  ;;  %v790_v45 = vmul.f32 %v5982_v57, %v606_v60 }
  0x9d   : > { %v791_v44 = vmul.f32 %v5983_v29, %v606_v60  ;;  %v792_v30 = vmul.f32 %v5984_v26, %v606_v60  ;;  %v793_v23 = vmul.f32 %v5985_v52, %v606_v60  ;;  %v5986_v47 = vrot.slane %v3358_v27, %v3256_v20 }
  0x9e   : > { %v5987_v56 = vrot.slane %v3358_v27, %v3258_v21  ;;  %v5988_v25 = vrot.slane %v3360_v28, %v3244_v14  ;;  %v5989_v48 = vrot.slane %v3360_v28, %v3246_v15  ;;  %v5990_v6 = vrot.slane %v3360_v28, %v3248_v16 }
  0x9f   : > { %v794_v58 = vmul.f32 %v5986_v47, %v606_v60  ;;  %v5991_v62 = vrot.slane %v3360_v28, %v3250_v17  ;;  %v5992_v27 = vrot.slane %v3360_v28, %v3252_v18  ;;  %v5993_v14 = vrot.slane %v3360_v28, %v3254_v19 }
  0xa0   : > { %v795_v57 = vmul.f32 %v5987_v56, %v606_v60  ;;  %v796_v29 = vmul.f32 %v5988_v25, %v606_v60  ;;  %v797_v26 = vmul.f32 %v5989_v48, %v606_v60  ;;  %v798_v52 = vmul.f32 %v5990_v6, %v606_v60 }
  0xa1   : > { %v799_v47 = vmul.f32 %v5991_v62, %v606_v60  ;;  %v800_v56 = vmul.f32 %v5992_v27, %v606_v60  ;;  %v801_v25 = vmul.f32 %v5993_v14, %v606_v60  ;;  %v5994_v15 = vrot.slane %v3360_v28, %v3256_v20 }
  0xa2   : > { %v5995_v16 = vrot.slane %v3360_v28, %v3258_v21  ;;  %v4155_v49 = vadd.f32 %v772_v55, %v3901_v3  ;;  %v4158_v62 = vadd.f32 %v773_v8, %v3906_v61  ;;  %v4161_v27 = vadd.f32 %v774_v54, %v3911_v59 }
  0xa3   : > { %v802_v48 = vmul.f32 %v5994_v15, %v606_v60  ;;  %v4164_v19 = vadd.f32 %v775_v5, %v3916_v24  ;;  %v4167_v14 = vadd.f32 %v776_v53, %v3921_v31  ;;  %v4170_v15 = vadd.f32 %v777_v10, %v3926_v33  ;;  %v6010_v10 = vld [vmem:[#allocation37_spill] sm:$0xff] }
  0xa4   : > { %v803_v6 = vmul.f32 %v5995_v16, %v606_v60  ;;  %v4173_v16 = vadd.f32 %v778_v7, %v3931_v34  ;;  %v4176_v28 = vadd.f32 %v779_v1, %v3936_v35  ;;  %v4179_v8 = vadd.f32 %v780_v2, %v3941_v36  ;;  %v5996_v35 = vld [vmem:[#allocation30_spill] sm:$0xff] }
  0xa5   : > { %v4182_v54 = vadd.f32 %v781_v32, %v3946_v37  ;;  %v4185_v5 = vadd.f32 %v782_v50, %v3951_v38  ;;  %v4188_v60 = vadd.f32 %v783_v63, %v3956_v22  ;;  %v4191_v3 = vadd.f32 %v784_v11, %v3961_v39  ;;  %v5998_v37 = vld [vmem:[#allocation31_spill] sm:$0xff]  ;;  %v6000_v22 = vld [vmem:[#allocation32_spill] sm:$0xff]  ;;  %v6012_v1 = vld [vmem:[#allocation38_spill] sm:$0xff]  ;;  %v857_v32 = vpop.permute.xlu1 %856 }
  0xa6   : > { %v4194_v24 = vadd.f32 %v785_v4, %v3966_v41  ;;  %v4197_v61 = vadd.f32 %v786_v51, %v3971_v42  ;;  %v4200_v59 = vadd.f32 %v787_v12, %v3976_v43  ;;  %v4203_v31 = vadd.f32 %v788_v13, %v3981_v46  ;;  %v6002_v41 = vld [vmem:[#allocation33_spill] sm:$0xff]  ;;  %v6004_v43 = vld [vmem:[#allocation34_spill] sm:$0xff]  ;;  %v6014_v50 = vld [vmem:[#allocation39_spill] sm:$0xff] }
  0xa7   : > { %v4206_v33 = vadd.f32 %v789_v9, %v3986_v40  ;;  %v4209_v34 = vadd.f32 %v790_v45, %v3991_v0  ;;  %v4212_v36 = vadd.f32 %v791_v44, %v5996_v35  ;;  %v4215_v38 = vadd.f32 %v792_v30, %v5998_v37  ;;  %v6006_v40 = vld [vmem:[#allocation35_spill] sm:$0xff]  ;;  %v6008_v0 = vld [vmem:[#allocation36_spill] sm:$0xff]  ;;  %v6018_v51 = vld [vmem:[#allocation41_spill] sm:$0xff] }
  0xa8   : > { %v4218_v39 = vadd.f32 %v793_v23, %v6000_v22  ;;  %v4221_v42 = vadd.f32 %v794_v58, %v6002_v41  ;;  %v4224_v46 = vadd.f32 %v795_v57, %v6004_v43  ;;  %v4227_v55 = vadd.f32 %v796_v29, %v6006_v40  ;;  %v6016_v11 = vld [vmem:[#allocation40_spill] sm:$0xff]  ;;  %v6020_v13 = vld [vmem:[#allocation42_spill] sm:$0xff]  ;;  %v6025_v58 = vld [vmem:[#allocation3_spill] sm:$0xff] }
  0xa9   : > { %5997 = vst [vmem:[#allocation30_spill] sm:$0xff] %v4212_v36  ;;  %5999 = vst [vmem:[#allocation31_spill] sm:$0xff] %v4215_v38  ;;  %v4230_v53 = vadd.f32 %v797_v26, %v6008_v0  ;;  %v4233_v7 = vadd.f32 %v798_v52, %v6010_v10  ;;  %v4236_v2 = vadd.f32 %v799_v47, %v6012_v1  ;;  %v6022_v45 = vld [vmem:[#allocation6_spill] sm:$0xff]  ;;  %v6027_v26 = vld [vmem:[#allocation4_spill] sm:$0xff] }
  0xaa   : > { %6001 = vst [vmem:[#allocation32_spill] sm:$0xff] %v4218_v39  ;;  %6003 = vst [vmem:[#allocation33_spill] sm:$0xff] %v4221_v42  ;;  %v4239_v63 = vadd.f32 %v800_v56, %v6014_v50  ;;  %v4242_v4 = vadd.f32 %v801_v25, %v6016_v11  ;;  %v4245_v12 = vadd.f32 %v802_v48, %v6018_v51  ;;  %v6023_v44 = vld [vmem:[#allocation2_spill] sm:$0xff]  ;;  %v6031_v35 = vld [vmem:[#allocation5_spill] sm:$0xff] }
  0xab   : > { %6005 = vst [vmem:[#allocation34_spill] sm:$0xff] %v4224_v46  ;;  %6007 = vst [vmem:[#allocation35_spill] sm:$0xff] %v4227_v55  ;;  %v4248_v9 = vadd.f32 %v803_v6, %v6020_v13  ;;  %v6024_v30 = vrot.slane %v6022_v45, %v6023_v44  ;;  %v6026_v57 = vrot.slane %v6022_v45, %v6025_v58  ;;  %v6035_v10 = vld [vmem:[#allocation7_spill] sm:$0xff]  ;;  %v6053_v55 = vld [vmem:[#allocation9_spill] sm:$0xff] }
  0xac   : > { %6009 = vst [vmem:[#allocation36_spill] sm:$0xff] %v4230_v53  ;;  %6011 = vst [vmem:[#allocation37_spill] sm:$0xff] %v4233_v7  ;;  %v6028_v52 = vrot.slane %v6022_v45, %v6027_v26  ;;  %v6029_v56 = vrot.slane %v6022_v45, %v3250_v17  ;;  %v6030_v48 = vrot.slane %v6022_v45, %v3252_v18 }
  0xad   : > { %6013 = vst [vmem:[#allocation38_spill] sm:$0xff] %v4236_v2  ;;  %6015 = vst [vmem:[#allocation39_spill] sm:$0xff] %v4239_v63  ;;  %v1023_v23 = vmul.f32 %v6024_v30, %v857_v32  ;;  %v1024_v29 = vmul.f32 %v6026_v57, %v857_v32  ;;  %v6032_v37 = vrot.slane %v6022_v45, %v6031_v35 }
  0xae   : > { %6017 = vst [vmem:[#allocation40_spill] sm:$0xff] %v4242_v4  ;;  %6019 = vst [vmem:[#allocation41_spill] sm:$0xff] %v4245_v12  ;;  %v1025_v47 = vmul.f32 %v6028_v52, %v857_v32  ;;  %v1026_v25 = vmul.f32 %v6029_v56, %v857_v32  ;;  %v1027_v6 = vmul.f32 %v6030_v48, %v857_v32 }
  0xaf   : > { %6021 = vst [vmem:[#allocation42_spill] sm:$0xff] %v4248_v9  ;;  %v1028_v22 = vmul.f32 %v6032_v37, %v857_v32  ;;  %v6033_v41 = vrot.slane %v6022_v45, %v3256_v20  ;;  %v6034_v40 = vrot.slane %v6022_v45, %v3258_v21  ;;  %v6036_v1 = vrot.slane %v6035_v10, %v6023_v44 }
  0xb0   : > { %v6037_v11 = vrot.slane %v6035_v10, %v6025_v58  ;;  %v6038_v13 = vrot.slane %v6035_v10, %v6027_v26  ;;  %v6039_v57 = vrot.slane %v6035_v10, %v3250_v17  ;;  %v6040_v45 = vrot.slane %v6035_v10, %v3252_v18 }
  0xb1   : > { %v1029_v43 = vmul.f32 %v6033_v41, %v857_v32  ;;  %v1030_v0 = vmul.f32 %v6034_v40, %v857_v32  ;;  %v1031_v50 = vmul.f32 %v6036_v1, %v857_v32  ;;  %v6041_v48 = vrot.slane %v6035_v10, %v6031_v35 }
  0xb2   : > { %v1032_v51 = vmul.f32 %v6037_v11, %v857_v32  ;;  %v1033_v30 = vmul.f32 %v6038_v13, %v857_v32  ;;  %v1034_v52 = vmul.f32 %v6039_v57, %v857_v32  ;;  %v1035_v56 = vmul.f32 %v6040_v45, %v857_v32  ;;  %v6044_v13 = vld [vmem:[#allocation8_spill] sm:$0xff] }
  0xb3   : > { %v1036_v37 = vmul.f32 %v6041_v48, %v857_v32  ;;  %v6042_v41 = vrot.slane %v6035_v10, %v3256_v20  ;;  %v6043_v1 = vrot.slane %v6035_v10, %v3258_v21  ;;  %v6045_v9 = vrot.slane %v6044_v13, %v6023_v44 }
  0xb4   : > { %v6046_v12 = vrot.slane %v6044_v13, %v6025_v58  ;;  %v6047_v4 = vrot.slane %v6044_v13, %v6027_v26  ;;  %v6048_v63 = vrot.slane %v6044_v13, %v3250_v17  ;;  %v6049_v10 = vrot.slane %v6044_v13, %v3252_v18 }
  0xb5   : > { %v1037_v40 = vmul.f32 %v6042_v41, %v857_v32  ;;  %v1038_v11 = vmul.f32 %v6043_v1, %v857_v32  ;;  %v1039_v57 = vmul.f32 %v6045_v9, %v857_v32  ;;  %v6050_v2 = vrot.slane %v6044_v13, %v6031_v35 }
  0xb6   : > { %v1040_v45 = vmul.f32 %v6046_v12, %v857_v32  ;;  %v1041_v48 = vmul.f32 %v6047_v4, %v857_v32  ;;  %v1042_v41 = vmul.f32 %v6048_v63, %v857_v32  ;;  %v1043_v1 = vmul.f32 %v6049_v10, %v857_v32 }
  0xb7   : > { %v1044_v9 = vmul.f32 %v6050_v2, %v857_v32  ;;  %v6051_v7 = vrot.slane %v6044_v13, %v3256_v20  ;;  %v6052_v53 = vrot.slane %v6044_v13, %v3258_v21  ;;  %v6054_v46 = vrot.slane %v6053_v55, %v6023_v44 }
  0xb8   : > { %v6055_v42 = vrot.slane %v6053_v55, %v6025_v58  ;;  %v6056_v39 = vrot.slane %v6053_v55, %v6027_v26  ;;  %v6057_v38 = vrot.slane %v6053_v55, %v3250_v17  ;;  %v6058_v13 = vrot.slane %v6053_v55, %v3252_v18 }
  0xb9   : > { %v1045_v12 = vmul.f32 %v6051_v7, %v857_v32  ;;  %v1046_v4 = vmul.f32 %v6052_v53, %v857_v32  ;;  %v1047_v63 = vmul.f32 %v6054_v46, %v857_v32  ;;  %v6059_v44 = vrot.slane %v6053_v55, %v6031_v35 }
  0xba   : > { %v1048_v10 = vmul.f32 %v6055_v42, %v857_v32  ;;  %v1049_v2 = vmul.f32 %v6056_v39, %v857_v32  ;;  %v1050_v7 = vmul.f32 %v6057_v38, %v857_v32  ;;  %v1051_v53 = vmul.f32 %v6058_v13, %v857_v32 }
  0xbb   : > { %v1052_v46 = vmul.f32 %v6059_v44, %v857_v32  ;;  %v6060_v58 = vrot.slane %v6053_v55, %v3256_v20  ;;  %v6061_v26 = vrot.slane %v6053_v55, %v3258_v21  ;;  %v4347_v36 = vadd.f32 %v1023_v23, %v4155_v49  ;;  %v6064_v23 = vld [vmem:[#allocation31_spill] sm:$0xff] }
  0xbc   : > { %v4350_v38 = vadd.f32 %v1024_v29, %v4158_v62  ;;  %v4353_v13 = vadd.f32 %v1025_v47, %v4161_v27  ;;  %v4356_v35 = vadd.f32 %v1026_v25, %v4164_v19  ;;  %v4359_v44 = vadd.f32 %v1027_v6, %v4167_v14 }
  0xbd   : > { %v1053_v42 = vmul.f32 %v6060_v58, %v857_v32  ;;  %v1054_v39 = vmul.f32 %v6061_v26, %v857_v32  ;;  %v4362_v58 = vadd.f32 %v1028_v22, %v4170_v15  ;;  %v4365_v55 = vadd.f32 %v1029_v43, %v4173_v16  ;;  %v6076_v43 = vld [vmem:[#allocation37_spill] sm:$0xff] }
  0xbe   : > { %v4368_v49 = vadd.f32 %v1030_v0, %v4176_v28  ;;  %v4371_v62 = vadd.f32 %v1031_v50, %v4179_v8  ;;  %v4374_v27 = vadd.f32 %v1032_v51, %v4182_v54  ;;  %v4377_v19 = vadd.f32 %v1033_v30, %v4185_v5  ;;  %v6078_v50 = vld [vmem:[#allocation38_spill] sm:$0xff]  ;;  %v6080_v30 = vld [vmem:[#allocation39_spill] sm:$0xff] }
  0xbf   : > { %v4380_v14 = vadd.f32 %v1034_v52, %v4188_v60  ;;  %v4383_v15 = vadd.f32 %v1035_v56, %v4191_v3  ;;  %v4386_v16 = vadd.f32 %v1036_v37, %v4194_v24  ;;  %v4389_v28 = vadd.f32 %v1037_v40, %v4197_v61  ;;  %v6062_v3 = vld [vmem:[#allocation30_spill] sm:$0xff]  ;;  %v1108_v24 = vpop.permute.xlu1 %1107  ;;  %v6066_v61 = vld [vmem:[#allocation32_spill] sm:$0xff]  ;;  %v6084_v40 = vld [vmem:[#allocation41_spill] sm:$0xff] }
  0xc0   : > { %v4392_v8 = vadd.f32 %v1038_v11, %v4200_v59  ;;  %v4395_v54 = vadd.f32 %v1039_v57, %v4203_v31  ;;  %v4398_v5 = vadd.f32 %v1040_v45, %v4206_v33  ;;  %v4401_v60 = vadd.f32 %v1041_v48, %v4209_v34  ;;  %v6068_v59 = vld [vmem:[#allocation33_spill] sm:$0xff]  ;;  %v6070_v31 = vld [vmem:[#allocation34_spill] sm:$0xff]  ;;  %v6072_v33 = vld [vmem:[#allocation35_spill] sm:$0xff] }
  0xc1   : > { %v4404_v32 = vadd.f32 %v1042_v41, %v6062_v3  ;;  %v4407_v29 = vadd.f32 %v1043_v1, %v6064_v23  ;;  %v4410_v26 = vadd.f32 %v1044_v9, %v6066_v61  ;;  %v4413_v47 = vadd.f32 %v1045_v12, %v6068_v59  ;;  %v6074_v34 = vld [vmem:[#allocation36_spill] sm:$0xff]  ;;  %v6086_v57 = vld [vmem:[#allocation42_spill] sm:$0xff]  ;;  %v6091_v12 = vld [vmem:[#allocation3_spill] sm:$0xff] }
  0xc2   : > { %v4416_v25 = vadd.f32 %v1046_v4, %v6070_v31  ;;  %v4419_v6 = vadd.f32 %v1047_v63, %v6072_v33  ;;  %v4422_v22 = vadd.f32 %v1048_v10, %v6074_v34  ;;  %v4425_v0 = vadd.f32 %v1049_v2, %v6076_v43  ;;  %v6082_v56 = vld [vmem:[#allocation40_spill] sm:$0xff]  ;;  %v6088_v48 = vld [vmem:[#allocation10_spill] sm:$0xff]  ;;  %v6097_v3 = vld [vmem:[#allocation5_spill] sm:$0xff] }
  0xc3   : > { %6063 = vst [vmem:[#allocation6_spill] sm:$0xff] %v4404_v32  ;;  %6065 = vst [vmem:[#allocation7_spill] sm:$0xff] %v4407_v29  ;;  %v4428_v51 = vadd.f32 %v1050_v7, %v6078_v50  ;;  %v4431_v52 = vadd.f32 %v1051_v53, %v6080_v30  ;;  %v4434_v37 = vadd.f32 %v1052_v46, %v6082_v56  ;;  %v6089_v41 = vld [vmem:[#allocation2_spill] sm:$0xff]  ;;  %v6093_v10 = vld [vmem:[#allocation4_spill] sm:$0xff] }
  0xc4   : > { %6067 = vst [vmem:[#allocation8_spill] sm:$0xff] %v4410_v26  ;;  %6069 = vst [vmem:[#allocation9_spill] sm:$0xff] %v4413_v47  ;;  %v4437_v11 = vadd.f32 %v1053_v42, %v6084_v40  ;;  %v4440_v45 = vadd.f32 %v1054_v39, %v6086_v57  ;;  %v6090_v1 = vrot.slane %v6088_v48, %v6089_v41  ;;  %v6101_v43 = vld [vmem:[#allocation11_spill] sm:$0xff] }
  0xc5   : > { %6071 = vst [vmem:[#allocation30_spill] sm:$0xff] %v4416_v25  ;;  %6073 = vst [vmem:[#allocation31_spill] sm:$0xff] %v4419_v6  ;;  %v6092_v4 = vrot.slane %v6088_v48, %v6091_v12  ;;  %v6094_v2 = vrot.slane %v6088_v48, %v6093_v10  ;;  %v6095_v53 = vrot.slane %v6088_v48, %v3250_v17  ;;  %v6119_v6 = vld [vmem:[#allocation13_spill] sm:$0xff] }
  0xc6   : > { %6075 = vst [vmem:[#allocation32_spill] sm:$0xff] %v4422_v22  ;;  %6077 = vst [vmem:[#allocation33_spill] sm:$0xff] %v4425_v0  ;;  %v1274_v9 = vmul.f32 %v6090_v1, %v1108_v24  ;;  %v6096_v42 = vrot.slane %v6088_v48, %v3252_v18  ;;  %v6098_v23 = vrot.slane %v6088_v48, %v6097_v3 }
  0xc7   : > { %6079 = vst [vmem:[#allocation34_spill] sm:$0xff] %v4428_v51  ;;  %6081 = vst [vmem:[#allocation35_spill] sm:$0xff] %v4431_v52  ;;  %v1275_v63 = vmul.f32 %v6092_v4, %v1108_v24  ;;  %v1276_v7 = vmul.f32 %v6094_v2, %v1108_v24  ;;  %v1277_v46 = vmul.f32 %v6095_v53, %v1108_v24 }
  0xc8   : > { %6083 = vst [vmem:[#allocation36_spill] sm:$0xff] %v4434_v37  ;;  %6085 = vst [vmem:[#allocation37_spill] sm:$0xff] %v4437_v11  ;;  %v1278_v39 = vmul.f32 %v6096_v42, %v1108_v24  ;;  %v1279_v61 = vmul.f32 %v6098_v23, %v1108_v24  ;;  %v6099_v59 = vrot.slane %v6088_v48, %v3256_v20 }
  0xc9   : > { %6087 = vst [vmem:[#allocation38_spill] sm:$0xff] %v4440_v45  ;;  %v6100_v33 = vrot.slane %v6088_v48, %v3258_v21  ;;  %v6102_v50 = vrot.slane %v6101_v43, %v6089_v41  ;;  %v6103_v56 = vrot.slane %v6101_v43, %v6091_v12  ;;  %v6104_v57 = vrot.slane %v6101_v43, %v6093_v10 }
  0xca   : > { %v1280_v31 = vmul.f32 %v6099_v59, %v1108_v24  ;;  %v6105_v4 = vrot.slane %v6101_v43, %v3250_v17  ;;  %v6106_v48 = vrot.slane %v6101_v43, %v3252_v18  ;;  %v6107_v42 = vrot.slane %v6101_v43, %v6097_v3 }
  0xcb   : > { %v1281_v34 = vmul.f32 %v6100_v33, %v1108_v24  ;;  %v1282_v30 = vmul.f32 %v6102_v50, %v1108_v24  ;;  %v1283_v40 = vmul.f32 %v6103_v56, %v1108_v24  ;;  %v1284_v1 = vmul.f32 %v6104_v57, %v1108_v24  ;;  %v6110_v57 = vld [vmem:[#allocation12_spill] sm:$0xff] }
  0xcc   : > { %v1285_v2 = vmul.f32 %v6105_v4, %v1108_v24  ;;  %v1286_v53 = vmul.f32 %v6106_v48, %v1108_v24  ;;  %v1287_v23 = vmul.f32 %v6107_v42, %v1108_v24  ;;  %v6108_v59 = vrot.slane %v6101_v43, %v3256_v20 }
  0xcd   : > { %v6109_v50 = vrot.slane %v6101_v43, %v3258_v21  ;;  %v6111_v45 = vrot.slane %v6110_v57, %v6089_v41  ;;  %v6112_v11 = vrot.slane %v6110_v57, %v6091_v12  ;;  %v6113_v37 = vrot.slane %v6110_v57, %v6093_v10 }
  0xce   : > { %v1288_v33 = vmul.f32 %v6108_v59, %v1108_v24  ;;  %v6114_v52 = vrot.slane %v6110_v57, %v3250_v17  ;;  %v6115_v43 = vrot.slane %v6110_v57, %v3252_v18  ;;  %v6116_v51 = vrot.slane %v6110_v57, %v6097_v3 }
  0xcf   : > { %v1289_v56 = vmul.f32 %v6109_v50, %v1108_v24  ;;  %v1290_v4 = vmul.f32 %v6111_v45, %v1108_v24  ;;  %v1291_v48 = vmul.f32 %v6112_v11, %v1108_v24  ;;  %v1292_v42 = vmul.f32 %v6113_v37, %v1108_v24 }
  0xd0   : > { %v1293_v59 = vmul.f32 %v6114_v52, %v1108_v24  ;;  %v1294_v50 = vmul.f32 %v6115_v43, %v1108_v24  ;;  %v1295_v45 = vmul.f32 %v6116_v51, %v1108_v24  ;;  %v6117_v0 = vrot.slane %v6110_v57, %v3256_v20 }
  0xd1   : > { %v6118_v22 = vrot.slane %v6110_v57, %v3258_v21  ;;  %v6120_v25 = vrot.slane %v6119_v6, %v6089_v41  ;;  %v6121_v47 = vrot.slane %v6119_v6, %v6091_v12  ;;  %v6122_v26 = vrot.slane %v6119_v6, %v6093_v10 }
  0xd2   : > { %v1296_v11 = vmul.f32 %v6117_v0, %v1108_v24  ;;  %v6123_v29 = vrot.slane %v6119_v6, %v3250_v17  ;;  %v6124_v57 = vrot.slane %v6119_v6, %v3252_v18  ;;  %v6125_v41 = vrot.slane %v6119_v6, %v6097_v3 }
  0xd3   : > { %v1297_v37 = vmul.f32 %v6118_v22, %v1108_v24  ;;  %v1298_v52 = vmul.f32 %v6120_v25, %v1108_v24  ;;  %v1299_v43 = vmul.f32 %v6121_v47, %v1108_v24  ;;  %v1300_v51 = vmul.f32 %v6122_v26, %v1108_v24 }
  0xd4   : > { %v1301_v0 = vmul.f32 %v6123_v29, %v1108_v24  ;;  %v1302_v22 = vmul.f32 %v6124_v57, %v1108_v24  ;;  %v1303_v25 = vmul.f32 %v6125_v41, %v1108_v24  ;;  %v6126_v12 = vrot.slane %v6119_v6, %v3256_v20 }
  0xd5   : > { %v6127_v10 = vrot.slane %v6119_v6, %v3258_v21  ;;  %v4539_v32 = vadd.f32 %v1274_v9, %v4347_v36  ;;  %v4542_v29 = vadd.f32 %v1275_v63, %v4350_v38  ;;  %v4545_v57 = vadd.f32 %v1276_v7, %v4353_v13  ;;  %v6130_v9 = vld [vmem:[#allocation7_spill] sm:$0xff] }
  0xd6   : > { %v1304_v47 = vmul.f32 %v6126_v12, %v1108_v24  ;;  %v4548_v3 = vadd.f32 %v1277_v46, %v4356_v35  ;;  %v4551_v41 = vadd.f32 %v1278_v39, %v4359_v44  ;;  %v4554_v12 = vadd.f32 %v1279_v61, %v4362_v58 }
  0xd7   : > { %v1305_v26 = vmul.f32 %v6127_v10, %v1108_v24  ;;  %v4557_v24 = vadd.f32 %v1280_v31, %v4365_v55  ;;  %v4560_v36 = vadd.f32 %v1281_v34, %v4368_v49  ;;  %v4563_v38 = vadd.f32 %v1282_v30, %v4371_v62  ;;  %v6142_v31 = vld [vmem:[#allocation33_spill] sm:$0xff]  ;;  %v6144_v30 = vld [vmem:[#allocation34_spill] sm:$0xff] }
  0xd8   : > { %v4566_v13 = vadd.f32 %v1283_v40, %v4374_v27  ;;  %v4569_v35 = vadd.f32 %v1284_v1, %v4377_v19  ;;  %v4572_v44 = vadd.f32 %v1285_v2, %v4380_v14  ;;  %v4575_v58 = vadd.f32 %v1286_v53, %v4383_v15  ;;  %v6128_v15 = vld [vmem:[#allocation6_spill] sm:$0xff]  ;;  %v6146_v1 = vld [vmem:[#allocation35_spill] sm:$0xff]  ;;  %v6148_v53 = vld [vmem:[#allocation36_spill] sm:$0xff] }
  0xd9   : > { %v4578_v55 = vadd.f32 %v1287_v23, %v4386_v16  ;;  %v4581_v49 = vadd.f32 %v1288_v33, %v4389_v28  ;;  %v4584_v62 = vadd.f32 %v1289_v56, %v4392_v8  ;;  %v4587_v27 = vadd.f32 %v1290_v4, %v4395_v54  ;;  %v1359_v16 = vpop.permute.xlu0 %1358  ;;  %v6132_v28 = vld [vmem:[#allocation8_spill] sm:$0xff]  ;;  %v6134_v8 = vld [vmem:[#allocation9_spill] sm:$0xff]  ;;  %v6136_v54 = vld [vmem:[#allocation30_spill] sm:$0xff] }
  0xda   : > { %v4590_v19 = vadd.f32 %v1291_v48, %v4398_v5  ;;  %v4593_v14 = vadd.f32 %v1292_v42, %v4401_v60  ;;  %v4596_v6 = vadd.f32 %v1293_v59, %v6128_v15  ;;  %v4599_v63 = vadd.f32 %v1294_v50, %v6130_v9  ;;  %v6138_v5 = vld [vmem:[#allocation31_spill] sm:$0xff]  ;;  %v6140_v60 = vld [vmem:[#allocation32_spill] sm:$0xff]  ;;  %v6150_v33 = vld [vmem:[#allocation37_spill] sm:$0xff] }
  0xdb   : > { %v4602_v10 = vadd.f32 %v1295_v45, %v6132_v28  ;;  %v4605_v7 = vadd.f32 %v1296_v11, %v6134_v8  ;;  %v4608_v46 = vadd.f32 %v1297_v37, %v6136_v54  ;;  %v4611_v39 = vadd.f32 %v1298_v52, %v6138_v5  ;;  %v6152_v4 = vld [vmem:[#allocation38_spill] sm:$0xff]  ;;  %v6157_v11 = vld [vmem:[#allocation3_spill] sm:$0xff]  ;;  %v6163_v15 = vld [vmem:[#allocation5_spill] sm:$0xff] }
  0xdc   : > { %6129 = vst [vmem:[#allocation39_spill] sm:$0xff] %v4596_v6  ;;  %6131 = vst [vmem:[#allocation40_spill] sm:$0xff] %v4599_v63  ;;  %v4614_v61 = vadd.f32 %v1299_v43, %v6140_v60  ;;  %v4617_v34 = vadd.f32 %v1300_v51, %v6142_v31  ;;  %v4620_v40 = vadd.f32 %v1301_v0, %v6144_v30  ;;  %v6154_v42 = vld [vmem:[#allocation14_spill] sm:$0xff]  ;;  %v6159_v43 = vld [vmem:[#allocation4_spill] sm:$0xff] }
  0xdd   : > { %6133 = vst [vmem:[#allocation41_spill] sm:$0xff] %v4602_v10  ;;  %6135 = vst [vmem:[#allocation42_spill] sm:$0xff] %v4605_v7  ;;  %v4623_v2 = vadd.f32 %v1302_v22, %v6146_v1  ;;  %v4626_v23 = vadd.f32 %v1303_v25, %v6148_v53  ;;  %v4629_v56 = vadd.f32 %v1304_v47, %v6150_v33  ;;  %v6155_v59 = vld [vmem:[#allocation2_spill] sm:$0xff]  ;;  %v6167_v31 = vld [vmem:[#allocation15_spill] sm:$0xff] }
  0xde   : > { %6137 = vst [vmem:[#allocation10_spill] sm:$0xff] %v4608_v46  ;;  %6139 = vst [vmem:[#allocation11_spill] sm:$0xff] %v4611_v39  ;;  %v4632_v48 = vadd.f32 %v1305_v26, %v6152_v4  ;;  %v6156_v50 = vrot.slane %v6154_v42, %v6155_v59  ;;  %v6158_v37 = vrot.slane %v6154_v42, %v6157_v11  ;;  %v6185_v39 = vld [vmem:[#allocation17_spill] sm:$0xff] }
  0xdf   : > { %6141 = vst [vmem:[#allocation12_spill] sm:$0xff] %v4614_v61  ;;  %6143 = vst [vmem:[#allocation13_spill] sm:$0xff] %v4617_v34  ;;  %v6160_v51 = vrot.slane %v6154_v42, %v6159_v43  ;;  %v6161_v22 = vrot.slane %v6154_v42, %v3250_v17  ;;  %v6162_v47 = vrot.slane %v6154_v42, %v3252_v18 }
  0xe0   : > { %6145 = vst [vmem:[#allocation6_spill] sm:$0xff] %v4620_v40  ;;  %6147 = vst [vmem:[#allocation7_spill] sm:$0xff] %v4623_v2  ;;  %v1525_v45 = vmul.f32 %v6156_v50, %v1359_v16  ;;  %v1526_v52 = vmul.f32 %v6158_v37, %v1359_v16  ;;  %v6164_v9 = vrot.slane %v6154_v42, %v6163_v15 }
  0xe1   : > { %6149 = vst [vmem:[#allocation8_spill] sm:$0xff] %v4626_v23  ;;  %6151 = vst [vmem:[#allocation9_spill] sm:$0xff] %v4629_v56  ;;  %v1527_v0 = vmul.f32 %v6160_v51, %v1359_v16  ;;  %v1528_v25 = vmul.f32 %v6161_v22, %v1359_v16  ;;  %v1529_v26 = vmul.f32 %v6162_v47, %v1359_v16 }
  0xe2   : > { %6153 = vst [vmem:[#allocation30_spill] sm:$0xff] %v4632_v48  ;;  %v1530_v28 = vmul.f32 %v6164_v9, %v1359_v16  ;;  %v6165_v8 = vrot.slane %v6154_v42, %v3256_v20  ;;  %v6166_v5 = vrot.slane %v6154_v42, %v3258_v21  ;;  %v6168_v30 = vrot.slane %v6167_v31, %v6155_v59 }
  0xe3   : > { %v6169_v53 = vrot.slane %v6167_v31, %v6157_v11  ;;  %v6170_v4 = vrot.slane %v6167_v31, %v6159_v43  ;;  %v6171_v37 = vrot.slane %v6167_v31, %v3250_v17  ;;  %v6172_v42 = vrot.slane %v6167_v31, %v3252_v18 }
  0xe4   : > { %v1531_v54 = vmul.f32 %v6165_v8, %v1359_v16  ;;  %v1532_v60 = vmul.f32 %v6166_v5, %v1359_v16  ;;  %v1533_v1 = vmul.f32 %v6168_v30, %v1359_v16  ;;  %v6173_v47 = vrot.slane %v6167_v31, %v6163_v15 }
  0xe5   : > { %v1534_v33 = vmul.f32 %v6169_v53, %v1359_v16  ;;  %v1535_v50 = vmul.f32 %v6170_v4, %v1359_v16  ;;  %v1536_v51 = vmul.f32 %v6171_v37, %v1359_v16  ;;  %v1537_v22 = vmul.f32 %v6172_v42, %v1359_v16  ;;  %v6176_v4 = vld [vmem:[#allocation16_spill] sm:$0xff] }
  0xe6   : > { %v1538_v9 = vmul.f32 %v6173_v47, %v1359_v16  ;;  %v6174_v8 = vrot.slane %v6167_v31, %v3256_v20  ;;  %v6175_v30 = vrot.slane %v6167_v31, %v3258_v21  ;;  %v6177_v48 = vrot.slane %v6176_v4, %v6155_v59 }
  0xe7   : > { %v6178_v56 = vrot.slane %v6176_v4, %v6157_v11  ;;  %v6179_v23 = vrot.slane %v6176_v4, %v6159_v43  ;;  %v6180_v2 = vrot.slane %v6176_v4, %v3250_v17  ;;  %v6181_v31 = vrot.slane %v6176_v4, %v3252_v18 }
  0xe8   : > { %v1539_v5 = vmul.f32 %v6174_v8, %v1359_v16  ;;  %v1540_v53 = vmul.f32 %v6175_v30, %v1359_v16  ;;  %v1541_v37 = vmul.f32 %v6177_v48, %v1359_v16  ;;  %v6182_v40 = vrot.slane %v6176_v4, %v6163_v15 }
  0xe9   : > { %v1542_v42 = vmul.f32 %v6178_v56, %v1359_v16  ;;  %v1543_v47 = vmul.f32 %v6179_v23, %v1359_v16  ;;  %v1544_v8 = vmul.f32 %v6180_v2, %v1359_v16  ;;  %v1545_v30 = vmul.f32 %v6181_v31, %v1359_v16 }
  0xea   : > { %v1546_v48 = vmul.f32 %v6182_v40, %v1359_v16  ;;  %v6183_v34 = vrot.slane %v6176_v4, %v3256_v20  ;;  %v6184_v61 = vrot.slane %v6176_v4, %v3258_v21  ;;  %v6186_v46 = vrot.slane %v6185_v39, %v6155_v59 }
  0xeb   : > { %v6187_v7 = vrot.slane %v6185_v39, %v6157_v11  ;;  %v6188_v10 = vrot.slane %v6185_v39, %v6159_v43  ;;  %v6189_v63 = vrot.slane %v6185_v39, %v3250_v17  ;;  %v6190_v4 = vrot.slane %v6185_v39, %v3252_v18 }
  0xec   : > { %v1547_v56 = vmul.f32 %v6183_v34, %v1359_v16  ;;  %v1548_v23 = vmul.f32 %v6184_v61, %v1359_v16  ;;  %v1549_v2 = vmul.f32 %v6186_v46, %v1359_v16  ;;  %v6191_v59 = vrot.slane %v6185_v39, %v6163_v15 }
  0xed   : > { %v1550_v31 = vmul.f32 %v6187_v7, %v1359_v16  ;;  %v1551_v40 = vmul.f32 %v6188_v10, %v1359_v16  ;;  %v1552_v34 = vmul.f32 %v6189_v63, %v1359_v16  ;;  %v1553_v61 = vmul.f32 %v6190_v4, %v1359_v16 }
  0xee   : > { %v1554_v46 = vmul.f32 %v6191_v59, %v1359_v16  ;;  %v6192_v11 = vrot.slane %v6185_v39, %v3256_v20  ;;  %v6193_v43 = vrot.slane %v6185_v39, %v3258_v21  ;;  %v4731_v6 = vadd.f32 %v1525_v45, %v4539_v32  ;;  %v6196_v45 = vld [vmem:[#allocation40_spill] sm:$0xff] }
  0xef   : > { %v4734_v63 = vadd.f32 %v1526_v52, %v4542_v29  ;;  %v4737_v4 = vadd.f32 %v1527_v0, %v4545_v57  ;;  %v4740_v15 = vadd.f32 %v1528_v25, %v4548_v3  ;;  %v4743_v59 = vadd.f32 %v1529_v26, %v4551_v41 }
  0xf0   : > { %v1555_v7 = vmul.f32 %v6192_v11, %v1359_v16  ;;  %v1556_v10 = vmul.f32 %v6193_v43, %v1359_v16  ;;  %v4746_v11 = vadd.f32 %v1530_v28, %v4554_v12  ;;  %v4749_v16 = vadd.f32 %v1531_v54, %v4557_v24  ;;  %v6208_v54 = vld [vmem:[#allocation13_spill] sm:$0xff] }
  0xf1   : > { %v4752_v32 = vadd.f32 %v1532_v60, %v4560_v36  ;;  %v4755_v29 = vadd.f32 %v1533_v1, %v4563_v38  ;;  %v4758_v57 = vadd.f32 %v1534_v33, %v4566_v13  ;;  %v4761_v3 = vadd.f32 %v1535_v50, %v4569_v35  ;;  %v6210_v1 = vld [vmem:[#allocation6_spill] sm:$0xff]  ;;  %v6212_v50 = vld [vmem:[#allocation7_spill] sm:$0xff] }
  0xf2   : > { %v4764_v41 = vadd.f32 %v1536_v51, %v4572_v44  ;;  %v4767_v12 = vadd.f32 %v1537_v22, %v4575_v58  ;;  %v4770_v24 = vadd.f32 %v1538_v9, %v4578_v55  ;;  %v4773_v36 = vadd.f32 %v1539_v5, %v4581_v49  ;;  %v6194_v58 = vld [vmem:[#allocation39_spill] sm:$0xff]  ;;  %v1610_v55 = vpop.permute.xlu1 %1609  ;;  %v6198_v49 = vld [vmem:[#allocation41_spill] sm:$0xff]  ;;  %v6214_v22 = vld [vmem:[#allocation8_spill] sm:$0xff] }
  0xf3   : > { %v4776_v38 = vadd.f32 %v1540_v53, %v4584_v62  ;;  %v4779_v13 = vadd.f32 %v1541_v37, %v4587_v27  ;;  %v4782_v35 = vadd.f32 %v1542_v42, %v4590_v19  ;;  %v4785_v44 = vadd.f32 %v1543_v47, %v4593_v14  ;;  %v6200_v62 = vld [vmem:[#allocation42_spill] sm:$0xff]  ;;  %v6204_v19 = vld [vmem:[#allocation11_spill] sm:$0xff]  ;;  %v6206_v14 = vld [vmem:[#allocation12_spill] sm:$0xff] }
  0xf4   : > { %v4788_v39 = vadd.f32 %v1544_v8, %v6194_v58  ;;  %v4791_v52 = vadd.f32 %v1545_v30, %v6196_v45  ;;  %v4794_v43 = vadd.f32 %v1546_v48, %v6198_v49  ;;  %v4797_v0 = vadd.f32 %v1547_v56, %v6200_v62  ;;  %v6202_v27 = vld [vmem:[#allocation10_spill] sm:$0xff]  ;;  %v6216_v5 = vld [vmem:[#allocation9_spill] sm:$0xff]  ;;  %v6223_v56 = vld [vmem:[#allocation3_spill] sm:$0xff] }
  0xf5   : > { %v4800_v25 = vadd.f32 %v1548_v23, %v6202_v27  ;;  %v4803_v26 = vadd.f32 %v1549_v2, %v6204_v19  ;;  %v4806_v28 = vadd.f32 %v1550_v31, %v6206_v14  ;;  %v4809_v60 = vadd.f32 %v1551_v40, %v6208_v54  ;;  %v6218_v37 = vld [vmem:[#allocation30_spill] sm:$0xff]  ;;  %v6225_v31 = vld [vmem:[#allocation4_spill] sm:$0xff]  ;;  %v6229_v58 = vld [vmem:[#allocation5_spill] sm:$0xff] }
  0xf6   : > { %6195 = vst [vmem:[#allocation31_spill] sm:$0xff] %v4788_v39  ;;  %6197 = vst [vmem:[#allocation32_spill] sm:$0xff] %v4791_v52  ;;  %v4812_v33 = vadd.f32 %v1552_v34, %v6210_v1  ;;  %v4815_v51 = vadd.f32 %v1553_v61, %v6212_v50  ;;  %v4818_v9 = vadd.f32 %v1554_v46, %v6214_v22  ;;  %v6220_v47 = vld [vmem:[#allocation18_spill] sm:$0xff]  ;;  %v6233_v54 = vld [vmem:[#allocation19_spill] sm:$0xff] }
  0xf7   : > { %6199 = vst [vmem:[#allocation33_spill] sm:$0xff] %v4794_v43  ;;  %6201 = vst [vmem:[#allocation34_spill] sm:$0xff] %v4797_v0  ;;  %v4821_v53 = vadd.f32 %v1555_v7, %v6216_v5  ;;  %v4824_v42 = vadd.f32 %v1556_v10, %v6218_v37  ;;  %v6221_v8 = vld [vmem:[#allocation2_spill] sm:$0xff]  ;;  %v6224_v23 = vrot.slane %v6220_v47, %v6223_v56 }
  0xf8   : > { %6203 = vst [vmem:[#allocation35_spill] sm:$0xff] %v4800_v25  ;;  %6205 = vst [vmem:[#allocation36_spill] sm:$0xff] %v4803_v26  ;;  %v6222_v30 = vrot.slane %v6220_v47, %v6221_v8  ;;  %v6226_v40 = vrot.slane %v6220_v47, %v6225_v31  ;;  %v6227_v61 = vrot.slane %v6220_v47, %v3250_v17  ;;  %v6251_v26 = vld [vmem:[#allocation21_spill] sm:$0xff] }
  0xf9   : > { %6207 = vst [vmem:[#allocation37_spill] sm:$0xff] %v4806_v28  ;;  %6209 = vst [vmem:[#allocation38_spill] sm:$0xff] %v4809_v60  ;;  %v1777_v2 = vmul.f32 %v6224_v23, %v1610_v55  ;;  %v6228_v7 = vrot.slane %v6220_v47, %v3252_v18  ;;  %v6230_v45 = vrot.slane %v6220_v47, %v6229_v58 }
  0xfa   : > { %6211 = vst [vmem:[#allocation14_spill] sm:$0xff] %v4812_v33  ;;  %6213 = vst [vmem:[#allocation15_spill] sm:$0xff] %v4815_v51  ;;  %v1776_v48 = vmul.f32 %v6222_v30, %v1610_v55  ;;  %v1778_v34 = vmul.f32 %v6226_v40, %v1610_v55  ;;  %v1779_v46 = vmul.f32 %v6227_v61, %v1610_v55 }
  0xfb   : > { %6215 = vst [vmem:[#allocation16_spill] sm:$0xff] %v4818_v9  ;;  %6217 = vst [vmem:[#allocation17_spill] sm:$0xff] %v4821_v53  ;;  %v1780_v10 = vmul.f32 %v6228_v7, %v1610_v55  ;;  %v1781_v49 = vmul.f32 %v6230_v45, %v1610_v55  ;;  %v6231_v62 = vrot.slane %v6220_v47, %v3256_v20 }
  0xfc   : > { %6219 = vst [vmem:[#allocation39_spill] sm:$0xff] %v4824_v42  ;;  %v6232_v19 = vrot.slane %v6220_v47, %v3258_v21  ;;  %v6234_v1 = vrot.slane %v6233_v54, %v6221_v8  ;;  %v6235_v22 = vrot.slane %v6233_v54, %v6223_v56  ;;  %v6236_v37 = vrot.slane %v6233_v54, %v6225_v31 }
  0xfd   : > { %v1782_v27 = vmul.f32 %v6231_v62, %v1610_v55  ;;  %v6237_v23 = vrot.slane %v6233_v54, %v3250_v17  ;;  %v6238_v47 = vrot.slane %v6233_v54, %v3252_v18  ;;  %v6239_v7 = vrot.slane %v6233_v54, %v6229_v58 }
  0xfe   : > { %v1783_v14 = vmul.f32 %v6232_v19, %v1610_v55  ;;  %v1784_v50 = vmul.f32 %v6234_v1, %v1610_v55  ;;  %v1785_v5 = vmul.f32 %v6235_v22, %v1610_v55  ;;  %v1786_v30 = vmul.f32 %v6236_v37, %v1610_v55  ;;  %v6242_v37 = vld [vmem:[#allocation20_spill] sm:$0xff] }
  0xff   : > { %v1787_v40 = vmul.f32 %v6237_v23, %v1610_v55  ;;  %v1788_v61 = vmul.f32 %v6238_v47, %v1610_v55  ;;  %v1789_v45 = vmul.f32 %v6239_v7, %v1610_v55  ;;  %v6240_v62 = vrot.slane %v6233_v54, %v3256_v20 }
 0x100   : > { %v6241_v1 = vrot.slane %v6233_v54, %v3258_v21  ;;  %v6243_v42 = vrot.slane %v6242_v37, %v6221_v8  ;;  %v6244_v53 = vrot.slane %v6242_v37, %v6223_v56  ;;  %v6245_v9 = vrot.slane %v6242_v37, %v6225_v31 }
 0x101   : > { %v1790_v19 = vmul.f32 %v6240_v62, %v1610_v55  ;;  %v6246_v51 = vrot.slane %v6242_v37, %v3250_v17  ;;  %v6247_v54 = vrot.slane %v6242_v37, %v3252_v18  ;;  %v6248_v33 = vrot.slane %v6242_v37, %v6229_v58 }
 0x102   : > { %v1791_v22 = vmul.f32 %v6241_v1, %v1610_v55  ;;  %v1792_v23 = vmul.f32 %v6243_v42, %v1610_v55  ;;  %v1793_v47 = vmul.f32 %v6244_v53, %v1610_v55  ;;  %v1794_v7 = vmul.f32 %v6245_v9, %v1610_v55 }
 0x103   : > { %v1795_v62 = vmul.f32 %v6246_v51, %v1610_v55  ;;  %v1796_v1 = vmul.f32 %v6247_v54, %v1610_v55  ;;  %v1797_v42 = vmul.f32 %v6248_v33, %v1610_v55  ;;  %v6249_v60 = vrot.slane %v6242_v37, %v3256_v20 }
 0x104   : > { %v6250_v28 = vrot.slane %v6242_v37, %v3258_v21  ;;  %v6252_v25 = vrot.slane %v6251_v26, %v6221_v8  ;;  %v6253_v0 = vrot.slane %v6251_v26, %v6223_v56  ;;  %v6254_v43 = vrot.slane %v6251_v26, %v6225_v31 }
 0x105   : > { %v1798_v53 = vmul.f32 %v6249_v60, %v1610_v55  ;;  %v6255_v52 = vrot.slane %v6251_v26, %v3250_v17  ;;  %v6256_v37 = vrot.slane %v6251_v26, %v3252_v18  ;;  %v6257_v8 = vrot.slane %v6251_v26, %v6229_v58 }
 0x106   : > { %v1799_v9 = vmul.f32 %v6250_v28, %v1610_v55  ;;  %v1800_v51 = vmul.f32 %v6252_v25, %v1610_v55  ;;  %v1801_v54 = vmul.f32 %v6253_v0, %v1610_v55  ;;  %v1802_v33 = vmul.f32 %v6254_v43, %v1610_v55 }
 0x107   : > { %v1803_v60 = vmul.f32 %v6255_v52, %v1610_v55  ;;  %v1804_v28 = vmul.f32 %v6256_v37, %v1610_v55  ;;  %v1805_v25 = vmul.f32 %v6257_v8, %v1610_v55  ;;  %v6258_v56 = vrot.slane %v6251_v26, %v3256_v20 }
 0x108   : > { %v6259_v31 = vrot.slane %v6251_v26, %v3258_v21  ;;  %v4923_v39 = vadd.f32 %v1776_v48, %v4731_v6  ;;  %v4926_v52 = vadd.f32 %v1777_v2, %v4734_v63  ;;  %v4929_v37 = vadd.f32 %v1778_v34, %v4737_v4  ;;  %v6262_v48 = vld [vmem:[#allocation32_spill] sm:$0xff] }
 0x109   : > { %v1806_v0 = vmul.f32 %v6258_v56, %v1610_v55  ;;  %v4932_v58 = vadd.f32 %v1779_v46, %v4740_v15  ;;  %v4935_v8 = vadd.f32 %v1780_v10, %v4743_v59  ;;  %v4938_v56 = vadd.f32 %v1781_v49, %v4746_v11 }
 0x10a   : > { %v1807_v43 = vmul.f32 %v6259_v31, %v1610_v55  ;;  %v4941_v55 = vadd.f32 %v1782_v27, %v4749_v16  ;;  %v4944_v6 = vadd.f32 %v1783_v14, %v4752_v32  ;;  %v4947_v63 = vadd.f32 %v1784_v50, %v4755_v29  ;;  %v6274_v27 = vld [vmem:[#allocation38_spill] sm:$0xff] }
 0x10b   : > { %v4950_v4 = vadd.f32 %v1785_v5, %v4758_v57  ;;  %v4953_v15 = vadd.f32 %v1786_v30, %v4761_v3  ;;  %v4956_v59 = vadd.f32 %v1787_v40, %v4764_v41  ;;  %v4959_v11 = vadd.f32 %v1788_v61, %v4767_v12  ;;  %v6260_v12 = vld [vmem:[#allocation31_spill] sm:$0xff]  ;;  %v6276_v50 = vld [vmem:[#allocation14_spill] sm:$0xff]  ;;  %v6280_v61 = vld [vmem:[#allocation16_spill] sm:$0xff] }
 0x10c   : > { %v4962_v16 = vadd.f32 %v1789_v45, %v4770_v24  ;;  %v4965_v32 = vadd.f32 %v1790_v19, %v4773_v36  ;;  %v4968_v29 = vadd.f32 %v1791_v22, %v4776_v38  ;;  %v4971_v57 = vadd.f32 %v1792_v23, %v4779_v13  ;;  %v1861_v24 = vpop.permute.xlu0 %1860  ;;  %v6264_v36 = vld [vmem:[#allocation33_spill] sm:$0xff]  ;;  %v6266_v38 = vld [vmem:[#allocation34_spill] sm:$0xff]  ;;  %v6268_v13 = vld [vmem:[#allocation35_spill] sm:$0xff] }
 0x10d   : > { %v4974_v3 = vadd.f32 %v1793_v47, %v4782_v35  ;;  %v4977_v41 = vadd.f32 %v1794_v7, %v4785_v44  ;;  %v4980_v26 = vadd.f32 %v1795_v62, %v6260_v12  ;;  %v4983_v2 = vadd.f32 %v1796_v1, %v6262_v48  ;;  %v6270_v35 = vld [vmem:[#allocation36_spill] sm:$0xff]  ;;  %v6272_v44 = vld [vmem:[#allocation37_spill] sm:$0xff]  ;;  %v6278_v30 = vld [vmem:[#allocation15_spill] sm:$0xff] }
 0x10e   : > { %v4986_v31 = vadd.f32 %v1797_v42, %v6264_v36  ;;  %v4989_v34 = vadd.f32 %v1798_v53, %v6266_v38  ;;  %v4992_v46 = vadd.f32 %v1799_v9, %v6268_v13  ;;  %v4995_v10 = vadd.f32 %v1800_v51, %v6270_v35  ;;  %v6282_v19 = vld [vmem:[#allocation17_spill] sm:$0xff]  ;;  %v6284_v23 = vld [vmem:[#allocation39_spill] sm:$0xff]  ;;  %v6286_v7 = vld [vmem:[#allocation22_spill] sm:$0xff] }
 0x10f   : > { %6261 = vst [vmem:[#allocation40_spill] sm:$0xff] %v4980_v26  ;;  %6263 = vst [vmem:[#allocation41_spill] sm:$0xff] %v4983_v2  ;;  %v4998_v49 = vadd.f32 %v1801_v54, %v6272_v44  ;;  %v5001_v14 = vadd.f32 %v1802_v33, %v6274_v27  ;;  %v5004_v5 = vadd.f32 %v1803_v60, %v6276_v50  ;;  %v6287_v62 = vld [vmem:[#allocation2_spill] sm:$0xff]  ;;  %v6289_v53 = vld [vmem:[#allocation3_spill] sm:$0xff] }
 0x110   : > { %6265 = vst [vmem:[#allocation42_spill] sm:$0xff] %v4986_v31  ;;  %6267 = vst [vmem:[#allocation10_spill] sm:$0xff] %v4989_v34  ;;  %v5007_v40 = vadd.f32 %v1804_v28, %v6278_v30  ;;  %v5010_v45 = vadd.f32 %v1805_v25, %v6280_v61  ;;  %v5013_v22 = vadd.f32 %v1806_v0, %v6282_v19  ;;  %v6291_v54 = vld [vmem:[#allocation4_spill] sm:$0xff]  ;;  %v6295_v12 = vld [vmem:[#allocation5_spill] sm:$0xff] }
 0x111   : > { %6269 = vst [vmem:[#allocation11_spill] sm:$0xff] %v4992_v46  ;;  %6271 = vst [vmem:[#allocation12_spill] sm:$0xff] %v4995_v10  ;;  %v5016_v47 = vadd.f32 %v1807_v43, %v6284_v23  ;;  %v6288_v1 = vrot.slane %v6286_v7, %v6287_v62  ;;  %v6290_v9 = vrot.slane %v6286_v7, %v6289_v53  ;;  %v6299_v27 = vld [vmem:[#allocation23_spill] sm:$0xff]  ;;  %v6317_v10 = vld [vmem:[#allocation25_spill] sm:$0xff] }
 0x112   : > { %6273 = vst [vmem:[#allocation13_spill] sm:$0xff] %v4998_v49  ;;  %6275 = vst [vmem:[#allocation6_spill] sm:$0xff] %v5001_v14  ;;  %v6292_v33 = vrot.slane %v6286_v7, %v6291_v54  ;;  %v6293_v28 = vrot.slane %v6286_v7, %v3250_v17  ;;  %v6294_v0 = vrot.slane %v6286_v7, %v3252_v18 }
 0x113   : > { %6277 = vst [vmem:[#allocation7_spill] sm:$0xff] %v5004_v5  ;;  %6279 = vst [vmem:[#allocation8_spill] sm:$0xff] %v5007_v40  ;;  %v2027_v42 = vmul.f32 %v6288_v1, %v1861_v24  ;;  %v2028_v51 = vmul.f32 %v6290_v9, %v1861_v24  ;;  %v6296_v48 = vrot.slane %v6286_v7, %v6295_v12 }
 0x114   : > { %6281 = vst [vmem:[#allocation9_spill] sm:$0xff] %v5010_v45  ;;  %6283 = vst [vmem:[#allocation30_spill] sm:$0xff] %v5013_v22  ;;  %v2029_v60 = vmul.f32 %v6292_v33, %v1861_v24  ;;  %v2030_v25 = vmul.f32 %v6293_v28, %v1861_v24  ;;  %v2031_v43 = vmul.f32 %v6294_v0, %v1861_v24 }
 0x115   : > { %6285 = vst [vmem:[#allocation18_spill] sm:$0xff] %v5016_v47  ;;  %v2032_v36 = vmul.f32 %v6296_v48, %v1861_v24  ;;  %v6297_v38 = vrot.slane %v6286_v7, %v3256_v20  ;;  %v6298_v35 = vrot.slane %v6286_v7, %v3258_v21  ;;  %v6300_v50 = vrot.slane %v6299_v27, %v6287_v62 }
 0x116   : > { %v6301_v61 = vrot.slane %v6299_v27, %v6289_v53  ;;  %v6302_v23 = vrot.slane %v6299_v27, %v6291_v54  ;;  %v6303_v9 = vrot.slane %v6299_v27, %v3250_v17  ;;  %v6304_v7 = vrot.slane %v6299_v27, %v3252_v18 }
 0x117   : > { %v2033_v13 = vmul.f32 %v6297_v38, %v1861_v24  ;;  %v2034_v44 = vmul.f32 %v6298_v35, %v1861_v24  ;;  %v2035_v30 = vmul.f32 %v6300_v50, %v1861_v24  ;;  %v6305_v0 = vrot.slane %v6299_v27, %v6295_v12 }
 0x118   : > { %v2036_v19 = vmul.f32 %v6301_v61, %v1861_v24  ;;  %v2037_v1 = vmul.f32 %v6302_v23, %v1861_v24  ;;  %v2038_v33 = vmul.f32 %v6303_v9, %v1861_v24  ;;  %v2039_v28 = vmul.f32 %v6304_v7, %v1861_v24  ;;  %v6308_v23 = vld [vmem:[#allocation24_spill] sm:$0xff] }
 0x119   : > { %v2040_v48 = vmul.f32 %v6305_v0, %v1861_v24  ;;  %v6306_v38 = vrot.slane %v6299_v27, %v3256_v20  ;;  %v6307_v50 = vrot.slane %v6299_v27, %v3258_v21  ;;  %v6309_v47 = vrot.slane %v6308_v23, %v6287_v62 }
 0x11a   : > { %v6310_v22 = vrot.slane %v6308_v23, %v6289_v53  ;;  %v6311_v45 = vrot.slane %v6308_v23, %v6291_v54  ;;  %v6312_v40 = vrot.slane %v6308_v23, %v3250_v17  ;;  %v6313_v27 = vrot.slane %v6308_v23, %v3252_v18 }
 0x11b   : > { %v2041_v35 = vmul.f32 %v6306_v38, %v1861_v24  ;;  %v2042_v61 = vmul.f32 %v6307_v50, %v1861_v24  ;;  %v2043_v9 = vmul.f32 %v6309_v47, %v1861_v24  ;;  %v6314_v5 = vrot.slane %v6308_v23, %v6295_v12 }
 0x11c   : > { %v2044_v7 = vmul.f32 %v6310_v22, %v1861_v24  ;;  %v2045_v0 = vmul.f32 %v6311_v45, %v1861_v24  ;;  %v2046_v38 = vmul.f32 %v6312_v40, %v1861_v24  ;;  %v2047_v50 = vmul.f32 %v6313_v27, %v1861_v24 }
 0x11d   : > { %v2048_v47 = vmul.f32 %v6314_v5, %v1861_v24  ;;  %v6315_v14 = vrot.slane %v6308_v23, %v3256_v20  ;;  %v6316_v49 = vrot.slane %v6308_v23, %v3258_v21  ;;  %v6318_v46 = vrot.slane %v6317_v10, %v6287_v62 }
 0x11e   : > { %v6319_v34 = vrot.slane %v6317_v10, %v6289_v53  ;;  %v6320_v31 = vrot.slane %v6317_v10, %v6291_v54  ;;  %v6321_v2 = vrot.slane %v6317_v10, %v3250_v17  ;;  %v6322_v23 = vrot.slane %v6317_v10, %v3252_v18 }
 0x11f   : > { %v2049_v22 = vmul.f32 %v6315_v14, %v1861_v24  ;;  %v2050_v45 = vmul.f32 %v6316_v49, %v1861_v24  ;;  %v2051_v40 = vmul.f32 %v6318_v46, %v1861_v24  ;;  %v6323_v62 = vrot.slane %v6317_v10, %v6295_v12 }
 0x120   : > { %v2052_v27 = vmul.f32 %v6319_v34, %v1861_v24  ;;  %v2053_v5 = vmul.f32 %v6320_v31, %v1861_v24  ;;  %v2054_v14 = vmul.f32 %v6321_v2, %v1861_v24  ;;  %v2055_v49 = vmul.f32 %v6322_v23, %v1861_v24 }
 0x121   : > { %v2056_v46 = vmul.f32 %v6323_v62, %v1861_v24  ;;  %v6324_v53 = vrot.slane %v6317_v10, %v3256_v20  ;;  %v6325_v54 = vrot.slane %v6317_v10, %v3258_v21  ;;  %v5115_v26 = vadd.f32 %v2027_v42, %v4923_v39  ;;  %v6328_v42 = vld [vmem:[#allocation41_spill] sm:$0xff] }
 0x122   : > { %v5118_v2 = vadd.f32 %v2028_v51, %v4926_v52  ;;  %v5121_v23 = vadd.f32 %v2029_v60, %v4929_v37  ;;  %v5124_v12 = vadd.f32 %v2030_v25, %v4932_v58  ;;  %v5127_v62 = vadd.f32 %v2031_v43, %v4935_v8 }
 0x123   : > { %v2057_v34 = vmul.f32 %v6324_v53, %v1861_v24  ;;  %v2058_v31 = vmul.f32 %v6325_v54, %v1861_v24  ;;  %v5130_v53 = vadd.f32 %v2032_v36, %v4938_v56  ;;  %v5133_v24 = vadd.f32 %v2033_v13, %v4941_v55  ;;  %v6340_v13 = vld [vmem:[#allocation6_spill] sm:$0xff] }
 0x124   : > { %v5136_v39 = vadd.f32 %v2034_v44, %v4944_v6  ;;  %v5139_v52 = vadd.f32 %v2035_v30, %v4947_v63  ;;  %v5142_v37 = vadd.f32 %v2036_v19, %v4950_v4  ;;  %v5145_v58 = vadd.f32 %v2037_v1, %v4953_v15  ;;  %v6342_v30 = vld [vmem:[#allocation7_spill] sm:$0xff]  ;;  %v6344_v1 = vld [vmem:[#allocation8_spill] sm:$0xff] }
 0x125   : > { %v5148_v8 = vadd.f32 %v2038_v33, %v4956_v59  ;;  %v5151_v56 = vadd.f32 %v2039_v28, %v4959_v11  ;;  %v5154_v55 = vadd.f32 %v2040_v48, %v4962_v16  ;;  %v5157_v6 = vadd.f32 %v2041_v35, %v4965_v32  ;;  %v6326_v11 = vld [vmem:[#allocation40_spill] sm:$0xff]  ;;  %v2112_v16 = vpop.permute.xlu1 %2111  ;;  %v6330_v32 = vld [vmem:[#allocation42_spill] sm:$0xff]  ;;  %v6346_v28 = vld [vmem:[#allocation9_spill] sm:$0xff] }
 0x126   : > { %v5160_v63 = vadd.f32 %v2042_v61, %v4968_v29  ;;  %v5163_v4 = vadd.f32 %v2043_v9, %v4971_v57  ;;  %v5166_v15 = vadd.f32 %v2044_v7, %v4974_v3  ;;  %v5169_v59 = vadd.f32 %v2045_v0, %v4977_v41  ;;  %v6332_v29 = vld [vmem:[#allocation10_spill] sm:$0xff]  ;;  %v6334_v57 = vld [vmem:[#allocation11_spill] sm:$0xff]  ;;  %v6336_v3 = vld [vmem:[#allocation12_spill] sm:$0xff] }
 0x127   : > { %v5172_v10 = vadd.f32 %v2046_v38, %v6326_v11  ;;  %v5175_v51 = vadd.f32 %v2047_v50, %v6328_v42  ;;  %v5178_v54 = vadd.f32 %v2048_v47, %v6330_v32  ;;  %v5181_v60 = vadd.f32 %v2049_v22, %v6332_v29  ;;  %v6338_v41 = vld [vmem:[#allocation13_spill] sm:$0xff]  ;;  %v6348_v35 = vld [vmem:[#allocation30_spill] sm:$0xff]  ;;  %v6355_v22 = vld [vmem:[#allocation3_spill] sm:$0xff] }
 0x128   : > { %v5184_v25 = vadd.f32 %v2050_v45, %v6334_v57  ;;  %v5187_v43 = vadd.f32 %v2051_v40, %v6336_v3  ;;  %v5190_v36 = vadd.f32 %v2052_v27, %v6338_v41  ;;  %v5193_v44 = vadd.f32 %v2053_v5, %v6340_v13  ;;  %v6350_v9 = vld [vmem:[#allocation18_spill] sm:$0xff]  ;;  %v6357_v27 = vld [vmem:[#allocation4_spill] sm:$0xff]  ;;  %v6361_v11 = vld [vmem:[#allocation5_spill] sm:$0xff] }
 0x129   : > { %6327 = vst [vmem:[#allocation19_spill] sm:$0xff] %v5172_v10  ;;  %6329 = vst [vmem:[#allocation20_spill] sm:$0xff] %v5175_v51  ;;  %v5196_v19 = vadd.f32 %v2054_v14, %v6342_v30  ;;  %v5199_v33 = vadd.f32 %v2055_v49, %v6344_v1  ;;  %v5202_v48 = vadd.f32 %v2056_v46, %v6346_v28  ;;  %v6352_v0 = vld [vmem:[#allocation26_spill] sm:$0xff]  ;;  %v6365_v13 = vld [vmem:[#allocation27_spill] sm:$0xff] }
 0x12a   : > { %6331 = vst [vmem:[#allocation21_spill] sm:$0xff] %v5178_v54  ;;  %6333 = vst [vmem:[#allocation31_spill] sm:$0xff] %v5181_v60  ;;  %v5205_v61 = vadd.f32 %v2057_v34, %v6348_v35  ;;  %v5208_v7 = vadd.f32 %v2058_v31, %v6350_v9  ;;  %v6353_v38 = vld [vmem:[#allocation2_spill] sm:$0xff]  ;;  %v6356_v45 = vrot.slane %v6352_v0, %v6355_v22 }
 0x12b   : > { %6335 = vst [vmem:[#allocation32_spill] sm:$0xff] %v5184_v25  ;;  %6337 = vst [vmem:[#allocation33_spill] sm:$0xff] %v5187_v43  ;;  %v6354_v50 = vrot.slane %v6352_v0, %v6353_v38  ;;  %v6358_v5 = vrot.slane %v6352_v0, %v6357_v27  ;;  %v6359_v49 = vrot.slane %v6352_v0, %v3250_v17  ;;  %v6383_v43 = vld [vmem:[#allocation29_spill] sm:$0xff] }
 0x12c   : > { %6339 = vst [vmem:[#allocation34_spill] sm:$0xff] %v5190_v36  ;;  %6341 = vst [vmem:[#allocation35_spill] sm:$0xff] %v5193_v44  ;;  %v2279_v40 = vmul.f32 %v6356_v45, %v2112_v16  ;;  %v6360_v34 = vrot.slane %v6352_v0, %v3252_v18  ;;  %v6362_v42 = vrot.slane %v6352_v0, %v6361_v11 }
 0x12d   : > { %6343 = vst [vmem:[#allocation36_spill] sm:$0xff] %v5196_v19  ;;  %6345 = vst [vmem:[#allocation37_spill] sm:$0xff] %v5199_v33  ;;  %v2278_v47 = vmul.f32 %v6354_v50, %v2112_v16  ;;  %v2280_v14 = vmul.f32 %v6358_v5, %v2112_v16  ;;  %v2281_v46 = vmul.f32 %v6359_v49, %v2112_v16 }
 0x12e   : > { %6347 = vst [vmem:[#allocation38_spill] sm:$0xff] %v5202_v48  ;;  %6349 = vst [vmem:[#allocation14_spill] sm:$0xff] %v5205_v61  ;;  %v2282_v31 = vmul.f32 %v6360_v34, %v2112_v16  ;;  %v2283_v32 = vmul.f32 %v6362_v42, %v2112_v16  ;;  %v6363_v29 = vrot.slane %v6352_v0, %v3256_v20 }
 0x12f   : > { %6351 = vst [vmem:[#allocation15_spill] sm:$0xff] %v5208_v7  ;;  %v6364_v3 = vrot.slane %v6352_v0, %v3258_v21  ;;  %v6366_v30 = vrot.slane %v6365_v13, %v6353_v38  ;;  %v6367_v28 = vrot.slane %v6365_v13, %v6355_v22  ;;  %v6368_v9 = vrot.slane %v6365_v13, %v6357_v27 }
 0x130   : > { %v2284_v57 = vmul.f32 %v6363_v29, %v2112_v16  ;;  %v6369_v45 = vrot.slane %v6365_v13, %v3250_v17  ;;  %v6370_v0 = vrot.slane %v6365_v13, %v3252_v18  ;;  %v6371_v34 = vrot.slane %v6365_v13, %v6361_v11 }
 0x131   : > { %v2285_v41 = vmul.f32 %v6364_v3, %v2112_v16  ;;  %v2286_v1 = vmul.f32 %v6366_v30, %v2112_v16  ;;  %v2287_v35 = vmul.f32 %v6367_v28, %v2112_v16  ;;  %v2288_v50 = vmul.f32 %v6368_v9, %v2112_v16  ;;  %v6374_v9 = vld [vmem:[#allocation28_spill] sm:$0xff] }
 0x132   : > { %v2289_v5 = vmul.f32 %v6369_v45, %v2112_v16  ;;  %v2290_v49 = vmul.f32 %v6370_v0, %v2112_v16  ;;  %v2291_v42 = vmul.f32 %v6371_v34, %v2112_v16  ;;  %v6372_v29 = vrot.slane %v6365_v13, %v3256_v20 }
 0x133   : > { %v6373_v30 = vrot.slane %v6365_v13, %v3258_v21  ;;  %v6375_v7 = vrot.slane %v6374_v9, %v6353_v38  ;;  %v6376_v61 = vrot.slane %v6374_v9, %v6355_v22  ;;  %v6377_v48 = vrot.slane %v6374_v9, %v6357_v27 }
 0x134   : > { %v2292_v3 = vmul.f32 %v6372_v29, %v2112_v16  ;;  %v6378_v33 = vrot.slane %v6374_v9, %v3250_v17  ;;  %v6379_v13 = vrot.slane %v6374_v9, %v3252_v18  ;;  %v6380_v19 = vrot.slane %v6374_v9, %v6361_v11 }
 0x135   : > { %v2293_v28 = vmul.f32 %v6373_v30, %v2112_v16  ;;  %v2294_v45 = vmul.f32 %v6375_v7, %v2112_v16  ;;  %v2295_v0 = vmul.f32 %v6376_v61, %v2112_v16  ;;  %v2296_v34 = vmul.f32 %v6377_v48, %v2112_v16 }
 0x136   : > { %v2297_v29 = vmul.f32 %v6378_v33, %v2112_v16  ;;  %v2298_v30 = vmul.f32 %v6379_v13, %v2112_v16  ;;  %v2299_v7 = vmul.f32 %v6380_v19, %v2112_v16  ;;  %v6381_v44 = vrot.slane %v6374_v9, %v3256_v20 }
 0x137   : > { %v6382_v36 = vrot.slane %v6374_v9, %v3258_v21  ;;  %v6384_v25 = vrot.slane %v6383_v43, %v6353_v38  ;;  %v6385_v60 = vrot.slane %v6383_v43, %v6355_v22  ;;  %v6386_v54 = vrot.slane %v6383_v43, %v6357_v27 }
 0x138   : > { %v2300_v61 = vmul.f32 %v6381_v44, %v2112_v16  ;;  %v6387_v51 = vrot.slane %v6383_v43, %v3250_v17  ;;  %v6388_v9 = vrot.slane %v6383_v43, %v3252_v18  ;;  %v6389_v38 = vrot.slane %v6383_v43, %v6361_v11 }
 0x139   : > { %v2301_v48 = vmul.f32 %v6382_v36, %v2112_v16  ;;  %v2302_v33 = vmul.f32 %v6384_v25, %v2112_v16  ;;  %v2303_v13 = vmul.f32 %v6385_v60, %v2112_v16  ;;  %v2304_v19 = vmul.f32 %v6386_v54, %v2112_v16 }
 0x13a   : > { %v2305_v44 = vmul.f32 %v6387_v51, %v2112_v16  ;;  %v2306_v36 = vmul.f32 %v6388_v9, %v2112_v16  ;;  %v2307_v25 = vmul.f32 %v6389_v38, %v2112_v16  ;;  %v6390_v22 = vrot.slane %v6383_v43, %v3256_v20 }
 0x13b   : > { %v6391_v27 = vrot.slane %v6383_v43, %v3258_v21  ;;  %v2310_v10 = vadd.f32 %v2278_v47, %v5115_v26  ;;  %v2311_v17 = vadd.f32 %v2279_v40, %v5118_v2  ;;  %v2312_v51 = vadd.f32 %v2280_v14, %v5121_v23 }
 0x13c   : > { %v2308_v60 = vmul.f32 %v6390_v22, %v2112_v16  ;;  %v2313_v18 = vadd.f32 %v2281_v46, %v5124_v12  ;;  %v2314_v9 = vadd.f32 %v2282_v31, %v5127_v62  ;;  %v2315_v11 = vadd.f32 %v2283_v32, %v5130_v53 }
 0x13d   : > { %v2309_v54 = vmul.f32 %v6391_v27, %v2112_v16  ;;  %v2316_v38 = vadd.f32 %v2284_v57, %v5133_v24  ;;  %v2317_v20 = vadd.f32 %v2285_v41, %v5136_v39  ;;  %v2318_v22 = vadd.f32 %v2286_v1, %v5139_v52  ;;  %v2346_v41 = vpop.permute.xlu0 %2345  ;;  %v2381_v27 = vld [vmem:[%s5342_s24 + $0x8] sm:$0xff] }
 0x13e   : > { %v2319_v21 = vadd.f32 %v2287_v35, %v5142_v37  ;;  %v2320_v26 = vadd.f32 %v2288_v50, %v5145_v58  ;;  %v2321_v2 = vadd.f32 %v2289_v5, %v5148_v8  ;;  %v2322_v23 = vadd.f32 %v2290_v49, %v5151_v56  ;;  %v6392_v37 = vld [vmem:[#allocation19_spill] sm:$0xff]  ;;  %v6393_v58 = vld [vmem:[#allocation20_spill] sm:$0xff]  ;;  %v6394_v8 = vld [vmem:[#allocation21_spill] sm:$0xff] }
 0x13f   : > { %v2323_v12 = vadd.f32 %v2291_v42, %v5154_v55  ;;  %v2324_v62 = vadd.f32 %v2292_v3, %v5157_v6  ;;  %v2325_v53 = vadd.f32 %v2293_v28, %v5160_v63  ;;  %v2326_v24 = vadd.f32 %v2294_v45, %v5163_v4  ;;  %v6395_v56 = vld [vmem:[#allocation31_spill] sm:$0xff]  ;;  %v6396_v55 = vld [vmem:[#allocation32_spill] sm:$0xff]  ;;  %v6397_v6 = vld [vmem:[#allocation33_spill] sm:$0xff] }
 0x140   : > { %v2327_v39 = vadd.f32 %v2295_v0, %v5166_v15  ;;  %v2328_v52 = vadd.f32 %v2296_v34, %v5169_v59  ;;  %v2329_v16 = vadd.f32 %v2297_v29, %v6392_v37  ;;  %v2330_v43 = vadd.f32 %v2298_v30, %v6393_v58  ;;  %v6398_v63 = vld [vmem:[#allocation34_spill] sm:$0xff]  ;;  %v6399_v4 = vld [vmem:[#allocation35_spill] sm:$0xff]  ;;  %v6400_v15 = vld [vmem:[#allocation36_spill] sm:$0xff] }
 0x141   : > { %v2331_v47 = vadd.f32 %v2299_v7, %v6394_v8  ;;  %v2332_v40 = vadd.f32 %v2300_v61, %v6395_v56  ;;  %v2333_v14 = vadd.f32 %v2301_v48, %v6396_v55  ;;  %v2334_v46 = vadd.f32 %v2302_v33, %v6397_v6  ;;  %v6401_v59 = vld [vmem:[#allocation37_spill] sm:$0xff]  ;;  %v6402_v35 = vld [vmem:[#allocation38_spill] sm:$0xff]  ;;  %v6404_v42 = vld [vmem:[#allocation15_spill] sm:$0xff] }
 0x142   : > { %v2335_v31 = vadd.f32 %v2303_v13, %v6398_v63  ;;  %v2336_v32 = vadd.f32 %v2304_v19, %v6399_v4  ;;  %v2337_v57 = vadd.f32 %v2305_v44, %v6400_v15  ;;  %v2338_v1 = vadd.f32 %v2306_v36, %v6401_v59  ;;  %v6403_v5 = vld [vmem:[#allocation14_spill] sm:$0xff]  ;;  %v2393_v8 = vld [vmem:[%s5342_s24 + $0x68] sm:$0xff]  ;;  %v2395_v56 = vld [vmem:[%s5342_s24 + $0x78] sm:$0xff] }
 0x143   : > { %v2339_v50 = vadd.f32 %v2307_v25, %v6402_v35  ;;  %v2340_v49 = vadd.f32 %v2308_v60, %v6403_v5  ;;  %v2341_v3 = vadd.f32 %v2309_v54, %v6404_v42  ;;  %v2348_v28 = vadd.f32 %v2346_v41, %v2310_v10  ;;  %v2380_v60 = vld [vmem:[%s5342_s24] sm:$0xff]  ;;  %v2382_v54 = vld [vmem:[%s5342_s24 + $0x10] sm:$0xff]  ;;  %v2397_v63 = vld [vmem:[%s5342_s24 + $0x88] sm:$0xff] }
 0x144   : > { %v2349_v45 = vadd.f32 %v2346_v41, %v2311_v17  ;;  %v2350_v0 = vadd.f32 %v2346_v41, %v2312_v51  ;;  %v2351_v34 = vadd.f32 %v2346_v41, %v2313_v18  ;;  %v2352_v29 = vadd.f32 %v2346_v41, %v2314_v9  ;;  %v2383_v17 = vld [vmem:[%s5342_s24 + $0x18] sm:$0xff]  ;;  %v2401_v15 = vld [vmem:[%s5342_s24 + $0xa8] sm:$0xff]  ;;  %v2404_v5 = vld [vmem:[%s5342_s24 + $0xc0] sm:$0xff] }
 0x145   : > { %v2353_v30 = vadd.f32 %v2346_v41, %v2315_v11  ;;  %v2354_v7 = vadd.f32 %v2346_v41, %v2316_v38  ;;  %v2355_v61 = vadd.f32 %v2346_v41, %v2317_v20  ;;  %v5344_v48 = vadd.f32 %v2346_v41, %v2318_v22  ;;  %v2384_v38 = vld [vmem:[%s5342_s24 + $0x20] sm:$0xff]  ;;  %v2385_v20 = vld [vmem:[%s5342_s24 + $0x28] sm:$0xff]  ;;  %v2386_v22 = vld [vmem:[%s5342_s24 + $0x30] sm:$0xff] }
 0x146   : > { %v5346_v33 = vadd.f32 %v2346_v41, %v2319_v21  ;;  %v5348_v13 = vadd.f32 %v2346_v41, %v2320_v26  ;;  %v5350_v10 = vadd.f32 %v2346_v41, %v2321_v2  ;;  %v5352_v19 = vadd.f32 %v2346_v41, %v2322_v23  ;;  %v2387_v21 = vld [vmem:[%s5342_s24 + $0x38] sm:$0xff]  ;;  %v2406_v42 = vld [vmem:[%s5342_s24 + $0xd0] sm:$0xff] }
 0x147   : > { %v5354_v44 = vadd.f32 %v2346_v41, %v2323_v12  ;;  %v5356_v36 = vadd.f32 %v2346_v41, %v2324_v62  ;;  %v5358_v25 = vadd.f32 %v2346_v41, %v2325_v53  ;;  %v5364_v51 = vadd.f32 %v2346_v41, %v2326_v24  ;;  %v2388_v62 = vld [vmem:[%s5342_s24 + $0x40] sm:$0xff]  ;;  %v2389_v53 = vld [vmem:[%s5342_s24 + $0x48] sm:$0xff]  ;;  %v2390_v24 = vld [vmem:[%s5342_s24 + $0x50] sm:$0xff] }
 0x148   : > { %v5366_v18 = vadd.f32 %v2346_v41, %v2327_v39  ;;  %v5368_v9 = vadd.f32 %v2346_v41, %v2328_v52  ;;  %v5370_v11 = vadd.f32 %v2346_v41, %v2329_v16  ;;  %v5376_v26 = vadd.f32 %v2346_v41, %v2330_v43  ;;  %v2391_v39 = vld [vmem:[%s5342_s24 + $0x58] sm:$0xff]  ;;  %v2392_v43 = vld [vmem:[%s5342_s24 + $0x60] sm:$0xff] }
 0x149   : > { %v5378_v2 = vadd.f32 %v2346_v41, %v2331_v47  ;;  %v5380_v23 = vadd.f32 %v2346_v41, %v2332_v40  ;;  %v5382_v12 = vadd.f32 %v2346_v41, %v2333_v14  ;;  %v5388_v52 = vadd.f32 %v2346_v41, %v2334_v46  ;;  %v2394_v47 = vld [vmem:[%s5342_s24 + $0x70] sm:$0xff]  ;;  %v2396_v46 = vld [vmem:[%s5342_s24 + $0x80] sm:$0xff]  ;;  %v2399_v4 = vld [vmem:[%s5342_s24 + $0x98] sm:$0xff] }
 0x14a   : > { %v5390_v37 = vadd.f32 %v2346_v41, %v2335_v31  ;;  %v5392_v16 = vadd.f32 %v2346_v41, %v2336_v32  ;;  %v5394_v58 = vadd.f32 %v2346_v41, %v2337_v57  ;;  %v5400_v40 = vadd.f32 %v2346_v41, %v2338_v1  ;;  %v2398_v31 = vld [vmem:[%s5342_s24 + $0x90] sm:$0xff]  ;;  %v2400_v32 = vld [vmem:[%s5342_s24 + $0xa0] sm:$0xff]  ;;  %v2403_v59 = vld [vmem:[%s5342_s24 + $0xb8] sm:$0xff] }
 0x14b   : > { %6405 = vst [vmem:[#allocation16_spill] sm:$0xff] %v5388_v52  ;;  %v5402_v55 = vadd.f32 %v2346_v41, %v2339_v50  ;;  %v5404_v14 = vadd.f32 %v2346_v41, %v2340_v49  ;;  %v5406_v6 = vadd.f32 %v2346_v41, %v2341_v3  ;;  %v2402_v57 = vld [vmem:[%s5342_s24 + $0xb0] sm:$0xff]  ;;  %v2412_v41 = vadd.f32 %v2380_v60, %v2348_v28  ;;  %v2405_v49 = vld [vmem:[%s5342_s24 + $0xc8] sm:$0xff]  ;;  %v2407_v3 = vld [vmem:[%s5342_s24 + $0xd8] sm:$0xff] }
 0x14c   : > { %6406 = vst [vmem:[#allocation17_spill] sm:$0xff] %v5390_v37  ;;  %6407 = vst [vmem:[#allocation39_spill] sm:$0xff] %v5392_v16  ;;  %v2413_v1 = vadd.f32 %v2381_v27, %v2349_v45  ;;  %v2414_v35 = vadd.f32 %v2382_v54, %v2350_v0  ;;  %v2415_v50 = vadd.f32 %v2383_v17, %v2351_v34  ;;  %v2409_v16 = vld [vmem:[%s5342_s24 + $0xe8] sm:$0xff]  ;;  %v2410_v37 = vld [vmem:[%s5342_s24 + $0xf0] sm:$0xff] }
 0x14d   : > { %6408 = vst [vmem:[#allocation22_spill] sm:$0xff] %v5394_v58  ;;  %6409 = vst [vmem:[#allocation23_spill] sm:$0xff] %v5400_v40  ;;  %v2419_v40 = vadd.f32 %v2387_v21, %v2355_v61  ;;  %v2408_v58 = vld [vmem:[%s5342_s24 + $0xe0] sm:$0xff]  ;;  %v2411_v52 = vld [vmem:[%s5342_s24 + $0xf8] sm:$0xff]  ;;  %v2420_v28 = vadd.f32 %v2388_v62, %v5344_v48  ;;  %v2421_v45 = vadd.f32 %v2389_v53, %v5346_v33 }
 0x14e   : > { %6410 = vst [vmem:[#allocation24_spill] sm:$0xff] %v5402_v55  ;;  %6411 = vst [vmem:[#allocation25_spill] sm:$0xff] %v5404_v14  ;;  %v2417_v14 = vadd.f32 %v2385_v20, %v2353_v30  ;;  %v2418_v55 = vadd.f32 %v2386_v22, %v2354_v7  ;;  %v2422_v0 = vadd.f32 %v2390_v24, %v5348_v13  ;;  %v2444_v60 = vld [vmem:[%s5416_s27] sm:$0xff]  ;;  %v2445_v48 = vld [vmem:[%s5416_s27 + $0x8] sm:$0xff] }
 0x14f   : > { %6412 = vst [vmem:[#allocation40_spill] sm:$0xff] %v5406_v6  ;;  %v2416_v6 = vadd.f32 %v2384_v38, %v2352_v29  ;;  %v2423_v34 = vadd.f32 %v2391_v39, %v5350_v10  ;;  %v2424_v29 = vadd.f32 %v2392_v43, %v5352_v19  ;;  %v2425_v30 = vadd.f32 %v2393_v8, %v5354_v44  ;;  %v2446_v33 = vld [vmem:[%s5416_s27 + $0x10] sm:$0xff]  ;;  %v2447_v27 = vld [vmem:[%s5416_s27 + $0x18] sm:$0xff]  ;;  %v2448_v44 = vld [vmem:[%s5416_s27 + $0x20] sm:$0xff] }
 0x150   : > { %v2426_v7 = vadd.f32 %v2394_v47, %v5356_v36  ;;  %v2427_v61 = vadd.f32 %v2395_v56, %v5358_v25  ;;  %v2428_v13 = vadd.f32 %v2396_v46, %v5364_v51  ;;  %v2429_v10 = vadd.f32 %v2397_v63, %v5366_v18  ;;  %v2449_v36 = vld [vmem:[%s5416_s27 + $0x28] sm:$0xff]  ;;  %v2450_v25 = vld [vmem:[%s5416_s27 + $0x30] sm:$0xff]  ;;  %v2451_v17 = vld [vmem:[%s5416_s27 + $0x38] sm:$0xff] }
 0x151   : > { %v2430_v54 = vadd.f32 %v2398_v31, %v5368_v9  ;;  %v2431_v19 = vadd.f32 %v2399_v4, %v5370_v11  ;;  %v2432_v38 = vadd.f32 %v2400_v32, %v5376_v26  ;;  %v2433_v20 = vadd.f32 %v2401_v15, %v5378_v2  ;;  %v2452_v18 = vld [vmem:[%s5416_s27 + $0x40] sm:$0xff]  ;;  %v2453_v9 = vld [vmem:[%s5416_s27 + $0x48] sm:$0xff]  ;;  %v2454_v11 = vld [vmem:[%s5416_s27 + $0x50] sm:$0xff] }
 0x152   : > { %v2434_v22 = vadd.f32 %v2402_v57, %v5380_v23  ;;  %v2435_v51 = vadd.f32 %v2403_v59, %v5382_v12  ;;  %v6413_v21 = vld [vmem:[#allocation16_spill] sm:$0xff]  ;;  %v2455_v23 = vld [vmem:[%s5416_s27 + $0x58] sm:$0xff]  ;;  %v2456_v8 = vld [vmem:[%s5416_s27 + $0x60] sm:$0xff] }
 0x153   : > { %v2436_v62 = vadd.f32 %v2404_v5, %v6413_v21  ;;  %v6414_v53 = vld [vmem:[#allocation17_spill] sm:$0xff]  ;;  %v6415_v26 = vld [vmem:[#allocation39_spill] sm:$0xff]  ;;  %v2458_v57 = vld [vmem:[%s5416_s27 + $0x70] sm:$0xff]  ;;  %v5474_v21 = vadd.f32 %v2444_v60, %v2412_v41  ;;  %v5491_v41 = vadd.f32 %v2451_v17, %v2419_v40  ;;  %v5496_v60 = vadd.f32 %v2452_v18, %v2420_v28 }
 0x154   : > { %v2437_v24 = vadd.f32 %v2405_v49, %v6414_v53  ;;  %v2438_v39 = vadd.f32 %v2406_v42, %v6415_v26  ;;  %v6416_v2 = vld [vmem:[#allocation22_spill] sm:$0xff]  ;;  %v2457_v12 = vld [vmem:[%s5416_s27 + $0x68] sm:$0xff]  ;;  %v2459_v59 = vld [vmem:[%s5416_s27 + $0x78] sm:$0xff]  ;;  %v5476_v53 = vadd.f32 %v2445_v48, %v2413_v1  ;;  %v5498_v48 = vadd.f32 %v2453_v9, %v2421_v45 }
 0x155   : > { %v2439_v43 = vadd.f32 %v2407_v3, %v6416_v2  ;;  %v6417_v47 = vld [vmem:[#allocation23_spill] sm:$0xff]  ;;  %v6418_v46 = vld [vmem:[#allocation24_spill] sm:$0xff]  ;;  %v6419_v31 = vld [vmem:[#allocation25_spill] sm:$0xff]  ;;  %v5485_v2 = vadd.f32 %v2448_v44, %v2416_v6  ;;  %6421 = vst [vmem:[#allocation41_spill] sm:$0xff] %v5496_v60  ;;  %v5502_v6 = vadd.f32 %v2455_v23, %v2423_v34  ;;  %v5507_v44 = vadd.f32 %v2456_v8, %v2424_v29 }
 0x156   : > { %v2440_v56 = vadd.f32 %v2408_v58, %v6417_v47  ;;  %v2441_v63 = vadd.f32 %v2409_v16, %v6418_v46  ;;  %v2442_v4 = vadd.f32 %v2410_v37, %v6419_v31  ;;  %v6420_v32 = vld [vmem:[#allocation40_spill] sm:$0xff]  ;;  %v2460_v5 = vld [vmem:[%s5416_s27 + $0x80] sm:$0xff]  ;;  %v2461_v49 = vld [vmem:[%s5416_s27 + $0x88] sm:$0xff]  ;;  %v5478_v58 = vadd.f32 %v2446_v33, %v2414_v35 }
 0x157   : > { %v2443_v15 = vadd.f32 %v2411_v52, %v6420_v32  ;;  %v2462_v42 = vld [vmem:[%s5416_s27 + $0x90] sm:$0xff]  ;;  %v2463_v3 = vld [vmem:[%s5416_s27 + $0x98] sm:$0xff]  ;;  %v5480_v16 = vadd.f32 %v2447_v27, %v2415_v50  ;;  %v2464_v52 = vld [vmem:[%s5416_s27 + $0xa0] sm:$0xff]  ;;  %v5487_v47 = vadd.f32 %v2449_v36, %v2417_v14  ;;  %v5489_v46 = vadd.f32 %v2450_v25, %v2418_v55  ;;  %6423 = vst [vmem:[#allocation10_spill] sm:$0xff] %v5502_v6 }
 0x158   : > { %v2465_v37 = vld [vmem:[%s5416_s27 + $0xa8] sm:$0xff]  ;;  %v2466_v26 = vld [vmem:[%s5416_s27 + $0xb0] sm:$0xff]  ;;  %v2467_v1 = vld [vmem:[%s5416_s27 + $0xb8] sm:$0xff]  ;;  %v5500_v33 = vadd.f32 %v2454_v11, %v2422_v0  ;;  %6424 = vst [vmem:[#allocation11_spill] sm:$0xff] %v5507_v44  ;;  %v5509_v40 = vadd.f32 %v2457_v12, %v2425_v30  ;;  %v5511_v36 = vadd.f32 %v2458_v57, %v2426_v7  ;;  %v5513_v25 = vadd.f32 %v2459_v59, %v2427_v61 }
 0x159   : > { %v2468_v35 = vld [vmem:[%s5416_s27 + $0xc0] sm:$0xff]  ;;  %v2469_v50 = vld [vmem:[%s5416_s27 + $0xc8] sm:$0xff]  ;;  %v2470_v14 = vld [vmem:[%s5416_s27 + $0xd0] sm:$0xff]  ;;  %v5518_v45 = vadd.f32 %v2460_v5, %v2428_v13  ;;  %v5520_v0 = vadd.f32 %v2461_v49, %v2429_v10  ;;  %v5522_v34 = vadd.f32 %v2462_v42, %v2430_v54  ;;  %v5524_v9 = vadd.f32 %v2463_v3, %v2431_v19 }
 0x15a   : > { %6422 = vst [vmem:[#allocation42_spill] sm:$0xff] %v5500_v33  ;;  %v2471_v27 = vld [vmem:[%s5416_s27 + $0xd8] sm:$0xff]  ;;  %v2472_v55 = vld [vmem:[%s5416_s27 + $0xe0] sm:$0xff]  ;;  %6425 = vst [vmem:[#allocation12_spill] sm:$0xff] %v5509_v40  ;;  %v5526_v11 = vadd.f32 %v2464_v52, %v2432_v38  ;;  %v5528_v29 = vadd.f32 %v2465_v37, %v2433_v20  ;;  %v5530_v30 = vadd.f32 %v2466_v26, %v2434_v22 }
 0x15b   : > { %6426 = vst [vmem:[#allocation13_spill] sm:$0xff] %v5511_v36  ;;  %6427 = vst [vmem:[#allocation6_spill] sm:$0xff] %v5513_v25  ;;  %v2473_v17 = vld [vmem:[%s5416_s27 + $0xe8] sm:$0xff]  ;;  %v2474_v28 = vld [vmem:[%s5416_s27 + $0xf0] sm:$0xff]  ;;  %v5532_v7 = vadd.f32 %v2467_v1, %v2435_v51  ;;  %v5534_v61 = vadd.f32 %v2468_v35, %v2436_v62  ;;  %v5536_v23 = vadd.f32 %v2469_v50, %v2437_v24 }
 0x15c   : > { %v2475_v18 = vld [vmem:[%s5416_s27 + $0xf8] sm:$0xff]  ;;  %6428 = vst [vmem:[#allocation7_spill] sm:$0xff] %v5518_v45  ;;  %6429 = vst [vmem:[#allocation8_spill] sm:$0xff] %v5520_v0  ;;  %v5538_v13 = vadd.f32 %v2470_v14, %v2438_v39  ;;  %v5540_v10 = vadd.f32 %v2471_v27, %v2439_v43  ;;  %v5542_v54 = vadd.f32 %v2472_v55, %v2440_v56 }
 0x15d   : > { %6430 = vst [vmem:[#allocation9_spill] sm:$0xff] %v5522_v34  ;;  %6431 = vst [vmem:[#allocation30_spill] sm:$0xff] %v5524_v9  ;;  %v5544_v19 = vadd.f32 %v2473_v17, %v2441_v63  ;;  %v5546_v38 = vadd.f32 %v2474_v28, %v2442_v4  ;;  %v5548_v20 = vadd.f32 %v2475_v18, %v2443_v15 }
 0x15e   : > { %6432 = vst [vmem:[#allocation18_spill] sm:$0xff] %v5526_v11  ;;  %6433 = vst [vmem:[#allocation26_spill] sm:$0xff] %v5528_v29  ;;  %v2508_v22 = vmul.f32 %v5474_v21, %v5474_v21  ;;  %v2509_v51 = vmul.f32 %v5476_v53, %v5476_v53  ;;  %v2510_v62 = vmul.f32 %v5478_v58, %v5478_v58 }
 0x15f   : > { %6434 = vst [vmem:[#allocation2_spill] sm:$0xff] %v5530_v30  ;;  %6435 = vst [vmem:[#allocation3_spill] sm:$0xff] %v5532_v7  ;;  %v2511_v24 = vmul.f32 %v5480_v16, %v5480_v16  ;;  %v2512_v39 = vmul.f32 %v5485_v2, %v5485_v2  ;;  %v2513_v43 = vmul.f32 %v5487_v47, %v5487_v47 }
 0x160   : > { %6436 = vst [vmem:[#allocation4_spill] sm:$0xff] %v5534_v61  ;;  %6437 = vst [vmem:[#allocation5_spill] sm:$0xff] %v5536_v23  ;;  %v2514_v8 = vmul.f32 %v5489_v46, %v5489_v46  ;;  %v2515_v12 = vmul.f32 %v5491_v41, %v5491_v41  ;;  %v2516_v56 = vmul.f32 %v5496_v60, %v5496_v60 }
 0x161   : > { %6438 = vst [vmem:[#allocation27_spill] sm:$0xff] %v5538_v13  ;;  %6439 = vst [vmem:[#allocation28_spill] sm:$0xff] %v5540_v10  ;;  %v2517_v63 = vmul.f32 %v5498_v48, %v5498_v48  ;;  %v2518_v31 = vmul.f32 %v5500_v33, %v5500_v33  ;;  %v2519_v4 = vmul.f32 %v5502_v6, %v5502_v6 }
 0x162   : > { %6440 = vst [vmem:[#allocation29_spill] sm:$0xff] %v5542_v54  ;;  %6441 = vst [vmem:[#allocation19_spill] sm:$0xff] %v5544_v19  ;;  %v2520_v32 = vmul.f32 %v5507_v44, %v5507_v44  ;;  %v2521_v15 = vmul.f32 %v5509_v40, %v5509_v40  ;;  %v2522_v57 = vmul.f32 %v5511_v36, %v5511_v36 }
 0x163   : > { %6442 = vst [vmem:[#allocation20_spill] sm:$0xff] %v5546_v38  ;;  %6443 = vst [vmem:[#allocation21_spill] sm:$0xff] %v5548_v20  ;;  %v2523_v59 = vmul.f32 %v5513_v25, %v5513_v25  ;;  %v2524_v5 = vmul.f32 %v5518_v45, %v5518_v45  ;;  %v2525_v49 = vmul.f32 %v5520_v0, %v5520_v0 }
 0x164   : > { %v2526_v42 = vmul.f32 %v5522_v34, %v5522_v34  ;;  %v2527_v3 = vmul.f32 %v5524_v9, %v5524_v9  ;;  %v2528_v52 = vmul.f32 %v5526_v11, %v5526_v11  ;;  %v2529_v37 = vmul.f32 %v5528_v29, %v5528_v29 }
 0x165   : > { %v2530_v26 = vmul.f32 %v5530_v30, %v5530_v30  ;;  %v2531_v1 = vmul.f32 %v5532_v7, %v5532_v7  ;;  %v2532_v35 = vmul.f32 %v5534_v61, %v5534_v61  ;;  %v2533_v50 = vmul.f32 %v5536_v23, %v5536_v23 }
 0x166   : > { %v2534_v14 = vmul.f32 %v5538_v13, %v5538_v13  ;;  %v2535_v27 = vmul.f32 %v5540_v10, %v5540_v10  ;;  %v2536_v55 = vmul.f32 %v5542_v54, %v5542_v54  ;;  %v2537_v17 = vmul.f32 %v5544_v19, %v5544_v19 }
 0x167   : > { %v2538_v28 = vmul.f32 %v5546_v38, %v5546_v38  ;;  %v2539_v18 = vmul.f32 %v5548_v20, %v5548_v20  ;;  %v2540_v23 = vmul.f32 %v2508_v22, %v5474_v21  ;;  %v2541_v61 = vmul.f32 %v2509_v51, %v5476_v53 }
 0x168   : > { %v2542_v13 = vmul.f32 %v2510_v62, %v5478_v58  ;;  %v2543_v10 = vmul.f32 %v2511_v24, %v5480_v16  ;;  %v2544_v7 = vmul.f32 %v2512_v39, %v5485_v2  ;;  %v2545_v54 = vmul.f32 %v2513_v43, %v5487_v47 }
 0x169   : > { %v2546_v19 = vmul.f32 %v2514_v8, %v5489_v46  ;;  %v2547_v30 = vmul.f32 %v2515_v12, %v5491_v41  ;;  %v2548_v38 = vmul.f32 %v2516_v56, %v5496_v60  ;;  %v2549_v20 = vmul.f32 %v2517_v63, %v5498_v48 }
 0x16a   : > { %v2550_v22 = vmul.f32 %v2518_v31, %v5500_v33  ;;  %v2551_v51 = vmul.f32 %v2519_v4, %v5502_v6  ;;  %v2552_v62 = vmul.f32 %v2520_v32, %v5507_v44  ;;  %v2553_v24 = vmul.f32 %v2521_v15, %v5509_v40  ;;  %v6444_v6 = vld [vmem:[#allocation2_spill] sm:$0xff]  ;;  %v6445_v44 = vld [vmem:[#allocation3_spill] sm:$0xff]  ;;  %v6446_v40 = vld [vmem:[#allocation4_spill] sm:$0xff] }
 0x16b   : > { %v2554_v39 = vmul.f32 %v2522_v57, %v5511_v36  ;;  %v2555_v43 = vmul.f32 %v2523_v59, %v5513_v25  ;;  %v2556_v8 = vmul.f32 %v2524_v5, %v5518_v45  ;;  %v2557_v12 = vmul.f32 %v2525_v49, %v5520_v0  ;;  %v6447_v36 = vld [vmem:[#allocation5_spill] sm:$0xff]  ;;  %v6448_v25 = vld [vmem:[#allocation27_spill] sm:$0xff]  ;;  %v6449_v49 = vld [vmem:[#allocation28_spill] sm:$0xff] }
 0x16c   : > { %v2558_v56 = vmul.f32 %v2526_v42, %v5522_v34  ;;  %v2559_v63 = vmul.f32 %v2527_v3, %v5524_v9  ;;  %v2560_v31 = vmul.f32 %v2528_v52, %v5526_v11  ;;  %v2561_v4 = vmul.f32 %v2529_v37, %v5528_v29  ;;  %v6450_v42 = vld [vmem:[#allocation29_spill] sm:$0xff]  ;;  %v6451_v3 = vld [vmem:[#allocation19_spill] sm:$0xff]  ;;  %v6452_v11 = vld [vmem:[#allocation20_spill] sm:$0xff] }
 0x16d   : > { %v2562_v32 = vmul.f32 %v2530_v26, %v6444_v6  ;;  %v2563_v15 = vmul.f32 %v2531_v1, %v6445_v44  ;;  %v2564_v57 = vmul.f32 %v2532_v35, %v6446_v40  ;;  %v2565_v59 = vmul.f32 %v2533_v50, %v6447_v36  ;;  %v6453_v1 = vld [vmem:[#allocation21_spill] sm:$0xff] }
 0x16e   : > { %v2566_v5 = vmul.f32 %v2534_v14, %v6448_v25  ;;  %v2572_v45 = vmul.f32 0.044715, %v2540_v23  ;;  %v2567_v0 = vmul.f32 %v2535_v27, %v6449_v49  ;;  %v2568_v34 = vmul.f32 %v2536_v55, %v6450_v42 }
 0x16f   : > { %v2569_v9 = vmul.f32 %v2537_v17, %v6451_v3  ;;  %v2573_v52 = vmul.f32 0.044715, %v2541_v61  ;;  %v2570_v37 = vmul.f32 %v2538_v28, %v6452_v11  ;;  %v2574_v29 = vmul.f32 0.044715, %v2542_v13 }
 0x170   : > { %v2575_v26 = vmul.f32 0.044715, %v2543_v10  ;;  %v2576_v6 = vmul.f32 0.044715, %v2544_v7  ;;  %v2571_v44 = vmul.f32 %v2539_v18, %v6453_v1  ;;  %v2577_v35 = vmul.f32 0.044715, %v2545_v54 }
 0x171   : > { %v2578_v40 = vmul.f32 0.044715, %v2546_v19  ;;  %v2579_v50 = vmul.f32 0.044715, %v2547_v30  ;;  %v2580_v36 = vmul.f32 0.044715, %v2548_v38  ;;  %v2604_v27 = vadd.f32 %v2572_v45, %v5474_v21 }
 0x172   : > { %v2581_v14 = vmul.f32 0.044715, %v2549_v20  ;;  %v2582_v23 = vmul.f32 0.044715, %v2550_v22  ;;  %v2583_v49 = vmul.f32 0.044715, %v2551_v51  ;;  %v2605_v61 = vadd.f32 %v2573_v52, %v5476_v53 }
 0x173   : > { %v2584_v55 = vmul.f32 0.044715, %v2552_v62  ;;  %v2585_v42 = vmul.f32 0.044715, %v2553_v24  ;;  %v2586_v17 = vmul.f32 0.044715, %v2554_v39  ;;  %v2606_v7 = vadd.f32 %v2574_v29, %v5478_v58 }
 0x174   : > { %v2587_v28 = vmul.f32 0.044715, %v2555_v43  ;;  %v2588_v13 = vmul.f32 0.044715, %v2556_v8  ;;  %v2589_v10 = vmul.f32 0.044715, %v2557_v12  ;;  %v2607_v30 = vadd.f32 %v2575_v26, %v5480_v16 }
 0x175   : > { %v2590_v18 = vmul.f32 0.044715, %v2558_v56  ;;  %v2591_v54 = vmul.f32 0.044715, %v2559_v63  ;;  %v2592_v19 = vmul.f32 0.044715, %v2560_v31  ;;  %v2608_v45 = vadd.f32 %v2576_v6, %v5485_v2 }
 0x176   : > { %v2593_v38 = vmul.f32 0.044715, %v2561_v4  ;;  %v2594_v20 = vmul.f32 0.044715, %v2562_v32  ;;  %v2595_v22 = vmul.f32 0.044715, %v2563_v15  ;;  %v2609_v24 = vadd.f32 %v2577_v35, %v5487_v47 }
 0x177   : > { %v2596_v51 = vmul.f32 0.044715, %v2564_v57  ;;  %v2597_v62 = vmul.f32 0.044715, %v2565_v59  ;;  %v2598_v39 = vmul.f32 0.044715, %v2566_v5  ;;  %v2610_v29 = vadd.f32 %v2578_v40, %v5489_v46 }
 0x178   : > { %v2599_v43 = vmul.f32 0.044715, %v2567_v0  ;;  %v2600_v8 = vmul.f32 0.044715, %v2568_v34  ;;  %v2601_v12 = vmul.f32 0.044715, %v2569_v9  ;;  %v2611_v52 = vadd.f32 %v2579_v50, %v5491_v41 }
 0x179   : > { %v2602_v56 = vmul.f32 0.044715, %v2570_v37  ;;  %v2603_v63 = vmul.f32 0.044715, %v2571_v44  ;;  %v2612_v31 = vadd.f32 %v2580_v36, %v5496_v60  ;;  %v2613_v4 = vadd.f32 %v2581_v14, %v5498_v48  ;;  %v6454_v57 = vld [vmem:[#allocation10_spill] sm:$0xff]  ;;  %v6455_v34 = vld [vmem:[#allocation11_spill] sm:$0xff] }
 0x17a   : > { %v2636_v6 = vmul.f32 0.7978846, %v2604_v27  ;;  %v2637_v32 = vmul.f32 0.7978846, %v2605_v61  ;;  %v2614_v15 = vadd.f32 %v2582_v23, %v5500_v33  ;;  %v2615_v59 = vadd.f32 %v2583_v49, %v6454_v57  ;;  %v6456_v40 = vld [vmem:[#allocation12_spill] sm:$0xff]  ;;  %v6457_v44 = vld [vmem:[#allocation13_spill] sm:$0xff] }
 0x17b   : > { %v2638_v5 = vmul.f32 0.7978846, %v2606_v7  ;;  %v2639_v0 = vmul.f32 0.7978846, %v2607_v30  ;;  %v2616_v26 = vadd.f32 %v2584_v55, %v6455_v34  ;;  %v2617_v9 = vadd.f32 %v2585_v42, %v6456_v40  ;;  %v6458_v50 = vld [vmem:[#allocation6_spill] sm:$0xff]  ;;  %v6459_v14 = vld [vmem:[#allocation7_spill] sm:$0xff] }
 0x17c   : > { %v2640_v37 = vmul.f32 0.7978846, %v2608_v45  ;;  %3066 = vtanh.f32 %v2636_v6  ;;  %v2618_v35 = vadd.f32 %v2586_v17, %v6457_v44  ;;  %v2619_v36 = vadd.f32 %v2587_v28, %v6458_v50  ;;  %v6460_v61 = vld [vmem:[#allocation8_spill] sm:$0xff]  ;;  %v6461_v49 = vld [vmem:[#allocation9_spill] sm:$0xff]  ;;  %v6462_v30 = vld [vmem:[#allocation30_spill] sm:$0xff] }
 0x17d   : > { %v2641_v60 = vmul.f32 0.7978846, %v2609_v24  ;;  %3068 = vtanh.f32 %v2637_v32  ;;  %v2620_v27 = vadd.f32 %v2588_v13, %v6459_v14  ;;  %v2621_v23 = vadd.f32 %v2589_v10, %v6460_v61  ;;  %v6463_v42 = vld [vmem:[#allocation18_spill] sm:$0xff]  ;;  %v6466_v32 = vld [vmem:[#allocation3_spill] sm:$0xff]  ;;  %v6467_v10 = vld [vmem:[#allocation4_spill] sm:$0xff] }
 0x17e   : > { %v2642_v33 = vmul.f32 0.7978846, %v2610_v29  ;;  %3070 = vtanh.f32 %v2638_v5  ;;  %v2622_v7 = vadd.f32 %v2590_v18, %v6461_v49  ;;  %v2623_v55 = vadd.f32 %v2591_v54, %v6462_v30  ;;  %v6464_v6 = vld [vmem:[#allocation26_spill] sm:$0xff]  ;;  %v6468_v5 = vld [vmem:[#allocation5_spill] sm:$0xff] }
 0x17f   : > { %v2643_v34 = vmul.f32 0.7978846, %v2611_v52  ;;  %3072 = vtanh.f32 %v2639_v0  ;;  %v2624_v45 = vadd.f32 %v2592_v19, %v6463_v42  ;;  %v2625_v17 = vadd.f32 %v2593_v38, %v6464_v6  ;;  %v6465_v28 = vld [vmem:[#allocation2_spill] sm:$0xff]  ;;  %v6469_v52 = vld [vmem:[#allocation28_spill] sm:$0xff]  ;;  %v6470_v38 = vld [vmem:[#allocation29_spill] sm:$0xff] }
 0x180   : > { %v2644_v44 = vmul.f32 0.7978846, %v2612_v31  ;;  %3074 = vtanh.f32 %v2640_v37  ;;  %v2626_v24 = vadd.f32 %v2594_v20, %v6465_v28  ;;  %v2627_v13 = vadd.f32 %v2595_v22, %v6466_v32 }
 0x181   : > { %v2645_v14 = vmul.f32 0.7978846, %v2613_v4  ;;  %3076 = vtanh.f32 %v2641_v60  ;;  %v2628_v29 = vadd.f32 %v2596_v51, %v6467_v10  ;;  %v2629_v18 = vadd.f32 %v2597_v62, %v6468_v5 }
 0x182   : > { %v2646_v49 = vmul.f32 0.7978846, %v2614_v15  ;;  %3078 = vtanh.f32 %v2642_v33  ;;  %v2630_v54 = vadd.f32 %v2598_v39, %v6448_v25  ;;  %v2631_v19 = vadd.f32 %v2599_v43, %v6469_v52 }
 0x183   : > { %v2647_v0 = vmul.f32 0.7978846, %v2615_v59  ;;  %3080 = vtanh.f32 %v2643_v34  ;;  %v2632_v31 = vadd.f32 %v2600_v8, %v6470_v38  ;;  %v2633_v20 = vadd.f32 %v2601_v12, %v6451_v3 }
 0x184   : > { %v2648_v37 = vmul.f32 0.7978846, %v2616_v26  ;;  %3082 = vtanh.f32 %v2644_v44  ;;  %v2634_v60 = vadd.f32 %v2602_v56, %v6452_v11  ;;  %v2635_v22 = vadd.f32 %v2603_v63, %v6453_v1 }
 0x185   : > { %v2649_v51 = vmul.f32 0.7978846, %v2617_v9  ;;  %3084 = vtanh.f32 %v2645_v14  ;;  %v2650_v62 = vmul.f32 0.7978846, %v2618_v35  ;;  %v2651_v33 = vmul.f32 0.7978846, %v2619_v36 }
 0x186   : > { %v2652_v4 = vmul.f32 0.7978846, %v2620_v27  ;;  %3086 = vtanh.f32 %v2646_v49  ;;  %v2653_v39 = vmul.f32 0.7978846, %v2621_v23  ;;  %v2654_v43 = vmul.f32 0.7978846, %v2622_v7 }
 0x187   : > { %v2655_v15 = vmul.f32 0.7978846, %v2623_v55  ;;  %3088 = vtanh.f32 %v2647_v0  ;;  %v2656_v59 = vmul.f32 0.7978846, %v2624_v45  ;;  %v2657_v8 = vmul.f32 0.7978846, %v2625_v17 }
 0x188   : > { %v2658_v34 = vmul.f32 0.7978846, %v2626_v24  ;;  %3090 = vtanh.f32 %v2648_v37  ;;  %v2659_v26 = vmul.f32 0.7978846, %v2627_v13  ;;  %v2660_v44 = vmul.f32 0.7978846, %v2628_v29 }
 0x189   : > { %v3067_v12 = vpop.eup %3066  ;;  %v5678_v56 = vmul.f32 0.7978846, %v2629_v18  ;;  %3092 = vtanh.f32 %v2649_v51  ;;  %v5680_v9 = vmul.f32 0.7978846, %v2630_v54  ;;  %v5682_v35 = vmul.f32 0.7978846, %v2631_v19 }
 0x18a   : > { %v3069_v63 = vpop.eup %3068  ;;  %3094 = vtanh.f32 %v2650_v62  ;;  %v2700_v36 = vadd.f32 1.0, %v3067_v12  ;;  %v5684_v27 = vmul.f32 0.7978846, %v2632_v31  ;;  %v5686_v23 = vmul.f32 0.7978846, %v2633_v20 }
 0x18b   : > { %v3071_v14 = vpop.eup %3070  ;;  %3096 = vtanh.f32 %v2651_v33  ;;  %v2701_v49 = vadd.f32 1.0, %v3069_v63  ;;  %v5688_v55 = vmul.f32 0.7978846, %v2634_v60  ;;  %v5696_v13 = vmul.f32 0.7978846, %v2635_v22 }
 0x18c   : > { %v3073_v7 = vpop.eup %3072  ;;  %3098 = vtanh.f32 %v2652_v4  ;;  %v2702_v45 = vadd.f32 1.0, %v3071_v14  ;;  %v2732_v17 = vmul.f32 0.5, %v2700_v36 }
 0x18d   : > { %v3075_v24 = vpop.eup %3074  ;;  %3100 = vtanh.f32 %v2653_v39  ;;  %v2703_v29 = vadd.f32 1.0, %v3073_v7  ;;  %v2733_v18 = vmul.f32 0.5, %v2701_v49 }
 0x18e   : > { %v3077_v54 = vpop.eup %3076  ;;  %3102 = vtanh.f32 %v2654_v43  ;;  %v2704_v19 = vadd.f32 1.0, %v3075_v24  ;;  %v2734_v0 = vmul.f32 0.5, %v2702_v45  ;;  %v2764_v31 = vmul.f32 %v2732_v17, %v5474_v21 }
 0x18f   : > { %v3079_v20 = vpop.eup %3078  ;;  %3104 = vtanh.f32 %v2655_v15  ;;  %v2705_v37 = vadd.f32 1.0, %v3077_v54  ;;  %v2735_v60 = vmul.f32 0.5, %v2703_v29  ;;  %v2765_v51 = vmul.f32 %v2733_v18, %v5476_v53  ;;  %v6471_v29 = vld [vmem:[#allocation41_spill] sm:$0xff] }
 0x190   : > { %v3081_v62 = vpop.eup %3080  ;;  %3106 = vtanh.f32 %v2656_v59  ;;  %v2706_v22 = vadd.f32 1.0, %v3079_v20  ;;  %v2736_v33 = vmul.f32 0.5, %v2704_v19  ;;  %v2766_v4 = vmul.f32 %v2734_v0, %v5478_v58  ;;  %2796 = vst [vmem:[%s5694_s30] sm:$0xff] %v2764_v31  ;;  %v6472_v31 = vld [vmem:[#allocation42_spill] sm:$0xff] }
 0x191   : > { %v3083_v39 = vpop.eup %3082  ;;  %3108 = vtanh.f32 %v2657_v8  ;;  %v2707_v43 = vadd.f32 1.0, %v3081_v62  ;;  %v2737_v21 = vmul.f32 0.5, %v2705_v37  ;;  %v2767_v12 = vmul.f32 %v2735_v60, %v5480_v16  ;;  %2797 = vst [vmem:[%s5694_s30 + $0x8] sm:$0xff] %v2765_v51 }
 0x192   : > { %v3085_v15 = vpop.eup %3084  ;;  %3110 = vtanh.f32 %v2658_v34  ;;  %v2708_v53 = vadd.f32 1.0, %v3083_v39  ;;  %v2738_v63 = vmul.f32 0.5, %v2706_v22  ;;  %v2768_v59 = vmul.f32 %v2736_v33, %v5485_v2  ;;  %2798 = vst [vmem:[%s5694_s30 + $0x10] sm:$0xff] %v2766_v4  ;;  %v6473_v22 = vld [vmem:[#allocation11_spill] sm:$0xff] }
 0x193   : > { %v3087_v36 = vpop.eup %3086  ;;  %3112 = vtanh.f32 %v2659_v26  ;;  %v2709_v58 = vadd.f32 1.0, %v3085_v15  ;;  %v2739_v14 = vmul.f32 0.5, %v2707_v43  ;;  %v2769_v8 = vmul.f32 %v2737_v21, %v5487_v47  ;;  %2799 = vst [vmem:[%s5694_s30 + $0x18] sm:$0xff] %v2767_v12  ;;  %v6474_v15 = vld [vmem:[#allocation13_spill] sm:$0xff] }
 0x194   : > { %v3089_v49 = vpop.eup %3088  ;;  %3114 = vtanh.f32 %v2660_v44  ;;  %v2710_v16 = vadd.f32 1.0, %v3087_v36  ;;  %v2740_v7 = vmul.f32 0.5, %v2708_v53  ;;  %v2770_v34 = vmul.f32 %v2738_v63, %v5489_v46  ;;  %2800 = vst [vmem:[%s5694_s30 + $0x20] sm:$0xff] %v2768_v59 }
 0x195   : > { %v3091_v45 = vpop.eup %3090  ;;  %3116 = vtanh.f32 %v5678_v56  ;;  %v2711_v2 = vadd.f32 1.0, %v3089_v49  ;;  %v2741_v26 = vmul.f32 0.5, %v2709_v58  ;;  %v2771_v17 = vmul.f32 %v2739_v14, %v5491_v41  ;;  %2801 = vst [vmem:[%s5694_s30 + $0x28] sm:$0xff] %v2769_v8 }
 0x196   : > { %v3093_v24 = vpop.eup %3092  ;;  %3118 = vtanh.f32 %v5680_v9  ;;  %v2712_v47 = vadd.f32 1.0, %v3091_v45  ;;  %v2742_v44 = vmul.f32 0.5, %v2710_v16  ;;  %v2772_v18 = vmul.f32 %v2740_v7, %v6471_v29  ;;  %2802 = vst [vmem:[%s5694_s30 + $0x30] sm:$0xff] %v2770_v34 }
 0x197   : > { %v3095_v46 = vpop.eup %3094  ;;  %3120 = vtanh.f32 %v5682_v35  ;;  %v2713_v56 = vadd.f32 1.0, %v3093_v24  ;;  %v2743_v54 = vmul.f32 0.5, %v2711_v2  ;;  %v2773_v19 = vmul.f32 %v2741_v26, %v5498_v48  ;;  %2803 = vst [vmem:[%s5694_s30 + $0x38] sm:$0xff] %v2771_v17 }
 0x198   : > { %v3097_v41 = vpop.eup %3096  ;;  %3122 = vtanh.f32 %v5684_v27  ;;  %v2714_v9 = vadd.f32 1.0, %v3095_v46  ;;  %v2744_v0 = vmul.f32 0.5, %v2712_v47  ;;  %v2774_v20 = vmul.f32 %v2742_v44, %v6472_v31  ;;  %2804 = vst [vmem:[%s5694_s30 + $0x40] sm:$0xff] %v2772_v18 }
 0x199   : > { %v3099_v37 = vpop.eup %3098  ;;  %3124 = vtanh.f32 %v5686_v23  ;;  %v2715_v35 = vadd.f32 1.0, %v3097_v41  ;;  %v2745_v60 = vmul.f32 0.5, %v2713_v56  ;;  %v2775_v51 = vmul.f32 %v2743_v54, %v6454_v57  ;;  %2805 = vst [vmem:[%s5694_s30 + $0x48] sm:$0xff] %v2773_v19 }
 0x19a   : > { %v3101_v48 = vpop.eup %3100  ;;  %3126 = vtanh.f32 %v5688_v55  ;;  %v2716_v27 = vadd.f32 1.0, %v3099_v37  ;;  %v2746_v62 = vmul.f32 0.5, %v2714_v9  ;;  %v2776_v33 = vmul.f32 %v2744_v0, %v6473_v22  ;;  %2806 = vst [vmem:[%s5694_s30 + $0x50] sm:$0xff] %v2774_v20 }
 0x19b   : > { %v3103_v4 = vpop.eup %3102  ;;  %3128 = vtanh.f32 %v5696_v13  ;;  %v2717_v23 = vadd.f32 1.0, %v3101_v48  ;;  %v2747_v39 = vmul.f32 0.5, %v2715_v35  ;;  %v2777_v43 = vmul.f32 %v2745_v60, %v6456_v40  ;;  %2807 = vst [vmem:[%s5694_s30 + $0x58] sm:$0xff] %v2775_v51  ;;  %v6475_v40 = vld [vmem:[#allocation7_spill] sm:$0xff] }
 0x19c   : > { %v3105_v57 = vpop.eup %3104  ;;  %v2718_v21 = vadd.f32 1.0, %v3103_v4  ;;  %v2748_v12 = vmul.f32 0.5, %v2716_v27  ;;  %v2778_v55 = vmul.f32 %v2746_v62, %v6474_v15  ;;  %2808 = vst [vmem:[%s5694_s30 + $0x60] sm:$0xff] %v2776_v33 }
 0x19d   : > { %v3107_v53 = vpop.eup %3106  ;;  %v2719_v63 = vadd.f32 1.0, %v3105_v57  ;;  %v2749_v59 = vmul.f32 0.5, %v2717_v23  ;;  %v2779_v36 = vmul.f32 %v2747_v39, %v6458_v50  ;;  %2809 = vst [vmem:[%s5694_s30 + $0x68] sm:$0xff] %v2777_v43  ;;  %v6476_v50 = vld [vmem:[#allocation9_spill] sm:$0xff] }
 0x19e   : > { %v3109_v13 = vpop.eup %3108  ;;  %v2720_v58 = vadd.f32 1.0, %v3107_v53  ;;  %v2750_v14 = vmul.f32 0.5, %v2718_v21  ;;  %v2780_v8 = vmul.f32 %v2748_v12, %v6475_v40  ;;  %2810 = vst [vmem:[%s5694_s30 + $0x70] sm:$0xff] %v2778_v55 }
 0x19f   : > { %v3111_v49 = vpop.eup %3110  ;;  %v2721_v16 = vadd.f32 1.0, %v3109_v13  ;;  %v2751_v7 = vmul.f32 0.5, %v2719_v63  ;;  %v2781_v34 = vmul.f32 %v2749_v59, %v6460_v61  ;;  %2811 = vst [vmem:[%s5694_s30 + $0x78] sm:$0xff] %v2779_v36 }
 0x1a0   : > { %v3113_v45 = vpop.eup %3112  ;;  %v2722_v2 = vadd.f32 1.0, %v3111_v49  ;;  %v2752_v26 = vmul.f32 0.5, %v2720_v58  ;;  %v2782_v17 = vmul.f32 %v2750_v14, %v6476_v50  ;;  %2812 = vst [vmem:[%s5694_s30 + $0x80] sm:$0xff] %v2780_v8 }
 0x1a1   : > { %v3115_v24 = vpop.eup %3114  ;;  %v2723_v47 = vadd.f32 1.0, %v3113_v45  ;;  %v2753_v44 = vmul.f32 0.5, %v2721_v16  ;;  %v2783_v29 = vmul.f32 %v2751_v7, %v6462_v30  ;;  %2813 = vst [vmem:[%s5694_s30 + $0x88] sm:$0xff] %v2781_v34 }
 0x1a2   : > { %v3117_v18 = vpop.eup %3116  ;;  %v2724_v46 = vadd.f32 1.0, %v3115_v24  ;;  %v2754_v56 = vmul.f32 0.5, %v2722_v2  ;;  %v2784_v61 = vmul.f32 %v2752_v26, %v6463_v42  ;;  %2814 = vst [vmem:[%s5694_s30 + $0x90] sm:$0xff] %v2782_v17 }
 0x1a3   : > { %v3119_v54 = vpop.eup %3118  ;;  %v2725_v19 = vadd.f32 1.0, %v3117_v18  ;;  %v2755_v41 = vmul.f32 0.5, %v2723_v47  ;;  %v2785_v9 = vmul.f32 %v2753_v44, %v6464_v6  ;;  %2815 = vst [vmem:[%s5694_s30 + $0x98] sm:$0xff] %v2783_v29 }
 0x1a4   : > { %v3121_v0 = vpop.eup %3120  ;;  %v2726_v31 = vadd.f32 1.0, %v3119_v54  ;;  %v2756_v20 = vmul.f32 0.5, %v2724_v46  ;;  %v2786_v30 = vmul.f32 %v2754_v56, %v6465_v28  ;;  %2816 = vst [vmem:[%s5694_s30 + $0xa0] sm:$0xff] %v2784_v61 }
 0x1a5   : > { %v3123_v37 = vpop.eup %3122  ;;  %v2727_v35 = vadd.f32 1.0, %v3121_v0  ;;  %v2757_v60 = vmul.f32 0.5, %v2725_v19  ;;  %v2787_v42 = vmul.f32 %v2755_v41, %v6466_v32  ;;  %2817 = vst [vmem:[%s5694_s30 + $0xa8] sm:$0xff] %v2785_v9 }
 0x1a6   : > { %v3125_v51 = vpop.eup %3124  ;;  %v2728_v48 = vadd.f32 1.0, %v3123_v37  ;;  %v2758_v27 = vmul.f32 0.5, %v2726_v31  ;;  %v2788_v6 = vmul.f32 %v2756_v20, %v6467_v10  ;;  %2818 = vst [vmem:[%s5694_s30 + $0xb0] sm:$0xff] %v2786_v30 }
 0x1a7   : > { %v3127_v62 = vpop.eup %3126  ;;  %v2729_v22 = vadd.f32 1.0, %v3125_v51  ;;  %v2759_v28 = vmul.f32 0.5, %v2727_v35  ;;  %v2789_v33 = vmul.f32 %v2757_v60, %v6468_v5  ;;  %2819 = vst [vmem:[%s5694_s30 + $0xb8] sm:$0xff] %v2787_v42 }
 0x1a8   : > { %v3129_v4 = vpop.eup %3128  ;;  %v2730_v32 = vadd.f32 1.0, %v3127_v62  ;;  %v2760_v23 = vmul.f32 0.5, %v2728_v48  ;;  %v2790_v39 = vmul.f32 %v2758_v27, %v6448_v25  ;;  %2820 = vst [vmem:[%s5694_s30 + $0xc0] sm:$0xff] %v2788_v6 }
 0x1a9   : > { %v2731_v10 = vadd.f32 1.0, %v3129_v4  ;;  %v2761_v43 = vmul.f32 0.5, %v2729_v22  ;;  %v2791_v57 = vmul.f32 %v2759_v28, %v6469_v52  ;;  %2821 = vst [vmem:[%s5694_s30 + $0xc8] sm:$0xff] %v2789_v33 }
 0x1aa   : > { %v2762_v21 = vmul.f32 0.5, %v2730_v32  ;;  %v2792_v5 = vmul.f32 %v2760_v23, %v6470_v38  ;;  %2822 = vst [vmem:[%s5694_s30 + $0xd0] sm:$0xff] %v2790_v39 }
 0x1ab   : > { %v2763_v12 = vmul.f32 0.5, %v2731_v10  ;;  %v2793_v15 = vmul.f32 %v2761_v43, %v6451_v3  ;;  %2823 = vst [vmem:[%s5694_s30 + $0xd8] sm:$0xff] %v2791_v57 }
 0x1ac   : > { %v2794_v55 = vmul.f32 %v2762_v21, %v6452_v11  ;;  %2824 = vst [vmem:[%s5694_s30 + $0xe0] sm:$0xff] %v2792_v5 }
 0x1ad   : > { %v2795_v25 = vmul.f32 %v2763_v12, %v6453_v1  ;;  %2825 = vst [vmem:[%s5694_s30 + $0xe8] sm:$0xff] %v2793_v15 }
 0x1ae   : > { %2826 = vst [vmem:[%s5694_s30 + $0xf0] sm:$0xff] %v2794_v55 }
 0x1af   : > { %2827 = vst [vmem:[%s5694_s30 + $0xf8] sm:$0xff] %v2795_v25 }
 0x1b0 PF: > { %s15_s20 = sadd.s32 1, %s3152_s20   ;;  %s6477_s18 = smov %s3148_s19 }
 0x1b1   : > { %p12_p5 = scmp.ge.s32.totalorder %s15_s20, 4   ;;  %s6478_s19 = smov %s6480_s21 }
 0x1b3   :  { %14 = sbr.rel (!%p12_p5) target bundleno = 2 (0x2), region = 114 }

</bundles_post_ra>
